<compile_context>
chip_gen: v7x
topology: tpu7x:2x2x1
jax: 0.10.0
libtpu: 0.0.40
codegen_flags: <defaults>
</compile_context>

<pallas_src>
import functools

import jax
import jax.numpy as jnp
from jax.experimental import pallas as pl
from jax.experimental.pallas import tpu as pltpu

MXU_DTYPE = jnp.bfloat16   # matmul operand dtype; all accumulation stays f32


# ----------------------------------------------------------------------------------
# One-time preparation (hoisted out of the per-call path).
# ----------------------------------------------------------------------------------
def _flatten_conv_w(w):
    """OIHW (cout, cin, 3, 3) -> (cout, 9*cin) bf16, K ordered tap-major then channel,
    matching the im2col slab built in-kernel (tap t = ky*3 + kx)."""
    cout, cin = w.shape[0], w.shape[1]
    return (jnp.transpose(w, (2, 3, 0, 1))        # (3, 3, cout, cin)
              .reshape(9, cout, cin)
              .transpose(1, 0, 2)                 # (cout, 9, cin)
              .reshape(cout, 9 * cin)
              .astype(MXU_DTYPE))


def _tap_masks(N, H, W):
    """(9, P) 0/1 masks: mask[t, p] == 1 iff tap t of output pixel p is in-bounds."""
    HW = H * W
    p = jnp.arange(N * HW, dtype=jnp.int32)
    y = (p % HW) // W
    x = p % W
    rows = []
    for ky in range(3):
        for kx in range(3):
            dy, dx = ky - 1, kx - 1
            ok = (y + dy >= 0) & (y + dy < H) & (x + dx >= 0) & (x + dx < W)
            rows.append(ok.astype(jnp.float32))
    return jnp.stack(rows, axis=0)


def _tap_shifts(N, H, W):
    """Static lane-roll amounts so roll(x, s, axis=-1)[:, p] == x[:, (p + dy*W+dx) % P]."""
    P = N * H * W
    shifts = []
    for ky in range(3):
        for kx in range(3):
            dy, dx = ky - 1, kx - 1
            shifts.append((-(dy * W + dx)) % P)
    return tuple(shifts)


def prepare_vd_params(params, N, H, W):
    """One-time weight / mask preparation (call once, outside the per-frame path)."""
    c_sig = params["fw3"].shape[0]          # gamma / sigma channels (4)
    c_ll = 4 * c_sig                        # ll channels (16)
    cft = params["dw3"].shape[0]            # ft0/ft1 channels (64)
    c_sig_p = ((c_sig + 7) // 8) * 8        # sigma/gamma rows padded to sublane mult.
    assert params["fw1"].shape[1] == c_ll + c_sig
    assert params["dw1"].shape[1] == cft + c_ll + c_sig

    fw1, dw1, fw3, fb3 = params["fw1"], params["dw1"], params["fw3"], params["fb3"]

    def pad_cin(w):                         # zero-pad input channels c_sig -> c_sig_p
        cout, cin = w.shape[:2]
        pad = jnp.zeros((cout, c_sig_p - cin) + w.shape[2:], w.dtype)
        return jnp.concatenate([w, pad], axis=1)

    # zero-pad fusion conv3 output channels c_sig -> c_sig_p (padded gamma rows are
    # sigmoid(0) and only ever meet zero weight columns downstream).
    fw3_p = jnp.concatenate(
        [fw3, jnp.zeros((c_sig_p - c_sig,) + fw3.shape[1:], fw3.dtype)], axis=0)
    fb3_p = jnp.concatenate([fb3, jnp.zeros((c_sig_p - c_sig,), fb3.dtype)])

    def bias(b):
        return b.reshape(-1, 1).astype(jnp.float32)

    return dict(
        fw1a=_flatten_conv_w(fw1[:, :c_ll]),                       # (64, 144)
        fw1b=_flatten_conv_w(pad_cin(fw1[:, c_ll:c_ll + c_sig])),  # (64, 72)
        fb1=bias(params["fb1"]),
        fw2=_flatten_conv_w(params["fw2"]), fb2=bias(params["fb2"]),
        fw3=_flatten_conv_w(fw3_p), fb3=bias(fb3_p),               # (8, 576), (8, 1)
        dw1a=_flatten_conv_w(dw1[:, :cft]),                        # (64, 576)
        dw1b=_flatten_conv_w(dw1[:, cft:cft + c_ll]),              # (64, 144)
        dw1c=_flatten_conv_w(pad_cin(dw1[:, cft + c_ll:])),        # (64, 72)
        db1=bias(params["db1"]),
        dw2=_flatten_conv_w(params["dw2"]), db2=bias(params["db2"]),
        dw3=_flatten_conv_w(params["dw3"]), db3=bias(params["db3"]),
        tile=params["tile"][:, :, 0, 0].astype(jnp.float32),       # (64, 4)
        masks=_tap_masks(N, H, W),                                 # (9, P)
    )


# ----------------------------------------------------------------------------------
# Kernel
# ----------------------------------------------------------------------------------
def _im2col(x, masks_ref, shifts):
    """x: (cin, P) f32 -> (9*cin, P) bf16 im2col slab (tap-major rows)."""
    taps = []
    for t, s in enumerate(shifts):
        r = x if s == 0 else pltpu.roll(x, shift=s, axis=1)   # XLU lane rotation
        if t != 4:                                            # centre tap never masked
            r = r * masks_ref[t:t + 1, :]
        taps.append(r)
    return jnp.concatenate(taps, axis=0).astype(MXU_DTYPE)


def _conv3x3(srcs, w_refs, b_ref, masks_ref, shifts, act):
    """3x3 stride-1 'same' conv over channel-split sources; returns (cout, P) f32."""
    acc = None
    for x, w_ref in zip(srcs, w_refs):
        slab = _im2col(x, masks_ref, shifts)                  # (9*cin_i, P) bf16
        part = jnp.dot(w_ref[...], slab, preferred_element_type=jnp.float32)
        acc = part if acc is None else acc + part
    acc = acc + b_ref[...]
    if act == "relu":
        return jnp.maximum(acc, 0.0)
    if act == "sigmoid":
        # exp and reciprocal both route to the (otherwise idle) EUP slot.
        return pl.reciprocal(1.0 + jnp.exp(-acc), approx=False)
    return acc


def _vd_kernel(ft0_ref, ft1_ref, coeff_ref, masks_ref,
               fw1a_ref, fw1b_ref, fb1_ref, fw2_ref, fb2_ref, fw3_ref, fb3_ref,
               tile_ref,
               dw1a_ref, dw1b_ref, dw1c_ref, db1_ref, dw2_ref, db2_ref, dw3_ref, db3_ref,
               fusion_out_ref, denoise_out_ref, gamma_ref,
               *, shifts, c_ll, c_sig, c_sig_p):
    ft0 = ft0_ref[...]                                        # (Cft, P) f32
    ft1 = ft1_ref[...]
    ca = coeff_ref[0]                                         # coeff_a (SMEM scalar)
    cb = coeff_ref[1]                                         # coeff_b (SMEM scalar)

    ll0 = ft0[:c_ll, :]
    ll1 = ft1[:c_ll, :]
    # sigma_ll*, padded to c_sig_p rows so every im2col slab piece stays sublane
    # aligned; rows >= c_sig only ever meet zero weight columns downstream.
    s0_p = jnp.clip(ft0[:c_sig_p, :], 0.0, 1.0) * ca + cb     # (8, P)
    s1_p = jnp.clip(ft1[:c_sig_p, :], 0.0, 1.0) * ca + cb     # (8, P)

    # ---- Fusion: 3x3 convs (relu, relu, sigmoid) -> gamma -------------------------
    h = _conv3x3([jnp.abs(ll1 - ll0), s1_p], [fw1a_ref, fw1b_ref], fb1_ref,
                 masks_ref, shifts, "relu")
    h = _conv3x3([h], [fw2_ref], fb2_ref, masks_ref, shifts, "relu")
    gamma_p = _conv3x3([h], [fw3_ref], fb3_ref, masks_ref, shifts, "sigmoid")  # (8, P)
    gamma = gamma_p[:c_sig, :]                                                 # (4, P)

    # ---- tilex16 1x1 conv as VPU broadcast-FMAs + temporal blend ------------------
    gammaM = tile_ref[:, 0:1] * gamma_p[0:1, :]
    for c in range(1, c_sig):
        gammaM = gammaM + tile_ref[:, c:c + 1] * gamma_p[c:c + 1, :]           # (Cft,P)
    fusion_out = ft0 * (1.0 - gammaM) + ft1 * gammaM

    one_m_g = 1.0 - gamma_p
    sigma_p = one_m_g * one_m_g * s0_p + gamma_p * gamma_p * s1_p              # (8, P)

    # ---- Denoise: 3x3 convs (relu, relu, linear) ----------------------------------
    h = _conv3x3([fusion_out, ll1, sigma_p], [dw1a_ref, dw1b_ref, dw1c_ref],
                 db1_ref, masks_ref, shifts, "relu")
    h = _conv3x3([h], [dw2_ref], db2_ref, masks_ref, shifts, "relu")
    denoise_out = _conv3x3([h], [dw3_ref], db3_ref, masks_ref, shifts, None)   # (Cft,P)

    fusion_out_ref[...] = fusion_out
    denoise_out_ref[...] = denoise_out
    gamma_ref[...] = gamma


# ----------------------------------------------------------------------------------
# Wrapper
# ----------------------------------------------------------------------------------
def vd_forward(ft0, ft1, coeff_a, coeff_b, prepped):
    """Pallas equivalent of VD.forward. ft0/ft1: (N, 64, H, W) NCHW f32.
    `prepped` = prepare_vd_params(params, N, H, W) (weights prepped once).
    Returns (fusion_out, denoise_out, gamma) in NCHW."""
    N, Cft, H, W = ft0.shape
    P = N * H * W
    c_sig = prepped["tile"].shape[1]
    c_sig_p = prepped["fw3"].shape[0]
    c_ll = 4 * c_sig
    shifts = _tap_shifts(N, H, W)

    # NCHW -> channels-first (C, N*H*W); lane-dense pixel dim.
    def to_flat(x):
        return jnp.transpose(x, (1, 0, 2, 3)).reshape(x.shape[1], P).astype(jnp.float32)

    ft0_f, ft1_f = to_flat(ft0), to_flat(ft1)
    coeff = jnp.stack([jnp.asarray(coeff_a, jnp.float32),
                       jnp.asarray(coeff_b, jnp.float32)])                     # (2,) SMEM

    operands = (ft0_f, ft1_f, coeff, prepped["masks"],
                prepped["fw1a"], prepped["fw1b"], prepped["fb1"],
                prepped["fw2"], prepped["fb2"], prepped["fw3"], prepped["fb3"],
                prepped["tile"],
                prepped["dw1a"], prepped["dw1b"], prepped["dw1c"], prepped["db1"],
                prepped["dw2"], prepped["db2"], prepped["dw3"], prepped["db3"])

    out_shapes = (jax.ShapeDtypeStruct((Cft, P), jnp.float32),    # fusion_out
                  jax.ShapeDtypeStruct((Cft, P), jnp.float32),    # denoise_out
                  jax.ShapeDtypeStruct((c_sig, P), jnp.float32))  # gamma

    # Useful conv FLOPs only (the gather matmuls are gone).
    flops = 2 * Cft * c_sig * P
    for name in ("fw1a", "fw1b", "fw2", "fw3", "dw1a", "dw1b", "dw1c", "dw2", "dw3"):
        cout, k = prepped[name].shape
        flops += 2 * cout * k * P
    bytes_in = sum(a.size * a.dtype.itemsize for a in operands)
    bytes_out = 4 * (2 * Cft * P + c_sig * P)
    cost = pl.CostEstimate(flops=int(flops), transcendentals=int(2 * c_sig_p * P),
                           bytes_accessed=int(bytes_in + bytes_out))

    kernel = functools.partial(_vd_kernel, shifts=shifts,
                               c_ll=c_ll, c_sig=c_sig, c_sig_p=c_sig_p)
    vmem = pl.BlockSpec(memory_space=pltpu.MemorySpace.VMEM)
    smem = pl.BlockSpec(memory_space=pltpu.MemorySpace.SMEM)

    fo, do, ga = pl.pallas_call(
        kernel,
        out_shape=out_shapes,
        in_specs=[vmem, vmem, smem] + [vmem] * 17,
        out_specs=(vmem, vmem, vmem),
        cost_estimate=cost,
    )(*operands)

    def from_flat(y):
        return jnp.transpose(y.reshape(y.shape[0], N, H, W), (1, 0, 2, 3))

    return from_flat(fo), from_flat(do), from_flat(ga)


# ----------------------------- pure-JAX reference ----------------------------------
def _conv_ref(x, w, b, act):
    y = jax.lax.conv_general_dilated(
        x.astype(MXU_DTYPE), w.astype(MXU_DTYPE),
        window_strides=(1, 1), padding=((1, 1), (1, 1)),
        dimension_numbers=("NCHW", "OIHW", "NCHW"),
        preferred_element_type=jnp.float32)
    y = y + b.reshape(1, -1, 1, 1)
    if act == "relu":
        return jnp.maximum(y, 0.0)
    if act == "sigmoid":
        return 1.0 / (1.0 + jnp.exp(-y))
    return y


def vd_reference(ft0, ft1, coeff_a, coeff_b, params):
    """Pure-JAX mirror of the PyTorch VD.forward graph (correctness check)."""
    c_sig = params["fw3"].shape[0]
    c_ll = 4 * c_sig
    ll0, ll1 = ft0[:, :c_ll], ft1[:, :c_ll]
    s0 = jnp.clip(ft0[:, :c_sig], 0.0, 1.0) * coeff_a + coeff_b
    s1 = jnp.clip(ft1[:, :c_sig], 0.0, 1.0) * coeff_a + coeff_b
    fusion_in = jnp.concatenate([jnp.abs(ll1 - ll0), s1], axis=1)
    h = _conv_ref(fusion_in, params["fw1"], params["fb1"], "relu")
    h = _conv_ref(h, params["fw2"], params["fb2"], "relu")
    gamma = _conv_ref(h, params["fw3"], params["fb3"], "sigmoid")
    gammaM = jnp.einsum("oc,nchw->nohw", params["tile"][:, :, 0, 0], gamma)
    fusion_out = ft0 * (1.0 - gammaM) + ft1 * gammaM
    sigma = (1.0 - gamma) ** 2 * s0 + gamma ** 2 * s1
    denoise_in = jnp.concatenate([fusion_out, ll1, sigma], axis=1)
    h = _conv_ref(denoise_in, params["dw1"], params["db1"], "relu")
    h = _conv_ref(h, params["dw2"], params["db2"], "relu")
    denoise_out = _conv_ref(h, params["dw3"], params["db3"], None)
    return fusion_out, denoise_out, gamma


if __name__ == "__main__":
    # Channel config implied by the module (cfg.px_num = 3, n = 4):
    N, H, W = 2, 8, 8
    n = 4
    c_sig = n                 # gamma / sigma channels          = 4
    c_ll = 4 * n              # ll channels                     = 16
    Cft = 16 * n              # ft0/ft1 channels (= 4**px_num)  = 64
    chid = 16 * n             # hidden conv width               = 64
    fusion_cin = 5 * n        # 20
    denoise_cin = 21 * n      # 84

    key = jax.random.PRNGKey(0)
    ks = iter(jax.random.split(key, 16))

    def conv_init(cin, cout):
        bound = 1.0 / float(cin * 9) ** 0.5        # PyTorch Conv2d default-ish init
        w = jax.random.uniform(next(ks), (cout, cin, 3, 3), jnp.float32, -bound, bound)
        b = jax.random.uniform(next(ks), (cout,), jnp.float32, -bound, bound)
        return w, b

    fw1, fb1 = conv_init(fusion_cin, chid)
    fw2, fb2 = conv_init(chid, chid)
    fw3, fb3 = conv_init(chid, c_sig)
    dw1, db1 = conv_init(denoise_cin, chid)
    dw2, db2 = conv_init(chid, chid)
    dw3, db3 = conv_init(chid, Cft)

    # TODO(synk): the real `tilex16` constant comes from the training repo; here we
    # synthesize the canonical replicate-each-gamma-channel-16x one-hot weight.  The
    # kernel treats it as a generic (Cft, c_sig, 1, 1) 1x1-conv weight either way.
    rep = Cft // c_sig
    tile = jnp.zeros((Cft, c_sig), jnp.float32)
    tile = tile.at[jnp.arange(Cft), jnp.arange(Cft) // rep].set(1.0)
    tile = tile.reshape(Cft, c_sig, 1, 1)

    params = dict(fw1=fw1, fb1=fb1, fw2=fw2, fb2=fb2, fw3=fw3, fb3=fb3,
                  dw1=dw1, db1=db1, dw2=dw2, db2=db2, dw3=dw3, db3=db3, tile=tile)

    ft0 = jax.random.normal(next(ks), (N, Cft, H, W), jnp.float32)
    ft1 = jax.random.normal(next(ks), (N, Cft, H, W), jnp.float32)
    coeff_a = jnp.float32(0.2)
    coeff_b = jnp.float32(0.01)

    # One-time weight/mask prep (hoisted out of the per-frame path).
    prepped = prepare_vd_params(params, N, H, W)

    fo, do, ga = jax.jit(vd_forward)(ft0, ft1, coeff_a, coeff_b, prepped)
    jax.block_until_ready((fo, do, ga))

    # Correctness check against a pure-JAX mirror of the PyTorch graph
    # (same bf16 matmul operands / f32 accumulation as the kernel).
    rfo, rdo, rga = jax.jit(vd_reference)(ft0, ft1, coeff_a, coeff_b, params)
    assert fo.shape == (N, Cft, H, W) and do.shape == (N, Cft, H, W)
    assert ga.shape == (N, c_sig, H, W)
    for got, want in ((fo, rfo), (do, rdo), (ga, rga)):
        err = float(jnp.max(jnp.abs(got - want)))
        assert err < 1e-2, f"max abs err {err}"
    assert bool(jnp.all((ga >= -1e-6) & (ga <= 1.0 + 1e-6)))   # sigmoid range sanity
    print("KERNEL_OK")
</pallas_src>

<mosaic_0001>
module attributes {stable_mosaic.version = 11 : i64} {
  func.func @_vd_kernel(%arg0: memref<64x128xf32, #tpu.memory_space<vmem>>, %arg1: memref<64x128xf32, #tpu.memory_space<vmem>>, %arg2: memref<2xf32, #tpu.memory_space<smem>>, %arg3: memref<9x128xf32, #tpu.memory_space<vmem>>, %arg4: memref<64x144xbf16, #tpu.memory_space<vmem>>, %arg5: memref<64x72xbf16, #tpu.memory_space<vmem>>, %arg6: memref<64x1xf32, #tpu.memory_space<vmem>>, %arg7: memref<64x576xbf16, #tpu.memory_space<vmem>>, %arg8: memref<64x1xf32, #tpu.memory_space<vmem>>, %arg9: memref<8x576xbf16, #tpu.memory_space<vmem>>, %arg10: memref<8x1xf32, #tpu.memory_space<vmem>>, %arg11: memref<64x4xf32, #tpu.memory_space<vmem>>, %arg12: memref<64x576xbf16, #tpu.memory_space<vmem>>, %arg13: memref<64x144xbf16, #tpu.memory_space<vmem>>, %arg14: memref<64x72xbf16, #tpu.memory_space<vmem>>, %arg15: memref<64x1xf32, #tpu.memory_space<vmem>>, %arg16: memref<64x576xbf16, #tpu.memory_space<vmem>>, %arg17: memref<64x1xf32, #tpu.memory_space<vmem>>, %arg18: memref<64x576xbf16, #tpu.memory_space<vmem>>, %arg19: memref<64x1xf32, #tpu.memory_space<vmem>>, %arg20: memref<64x128xf32, #tpu.memory_space<vmem>>, %arg21: memref<64x128xf32, #tpu.memory_space<vmem>>, %arg22: memref<4x128xf32, #tpu.memory_space<vmem>>) attributes {dimension_semantics = [], scalar_prefetch = 0 : i64, scratch_operands = 0 : i64, tpu.core_type = #tpu.core_type<tc>} {
    %c0 = arith.constant 0 : index
    %c0_0 = arith.constant 0 : index
    %0 = vector.load %arg0[%c0, %c0_0] : memref<64x128xf32, #tpu.memory_space<vmem>>, vector<64x128xf32>
    %c0_1 = arith.constant 0 : index
    %c0_2 = arith.constant 0 : index
    %1 = vector.load %arg1[%c0_1, %c0_2] : memref<64x128xf32, #tpu.memory_space<vmem>>, vector<64x128xf32>
    %c0_3 = arith.constant 0 : index
    %2 = memref.load %arg2[%c0_3] : memref<2xf32, #tpu.memory_space<smem>>
    %c1 = arith.constant 1 : index
    %3 = memref.load %arg2[%c1] : memref<2xf32, #tpu.memory_space<smem>>
    %4 = vector.extract_strided_slice %0 {offsets = [0, 0], sizes = [16, 128], strides = [1, 1]} : vector<64x128xf32> to vector<16x128xf32>
    %5 = vector.extract_strided_slice %1 {offsets = [0, 0], sizes = [16, 128], strides = [1, 1]} : vector<64x128xf32> to vector<16x128xf32>
    %6 = vector.extract_strided_slice %0 {offsets = [0, 0], sizes = [8, 128], strides = [1, 1]} : vector<64x128xf32> to vector<8x128xf32>
    %cst = arith.constant 0.000000e+00 : f32
    %cst_4 = arith.constant 1.000000e+00 : f32
    %7 = vector.broadcast %cst : f32 to vector<8x128xf32>
    %8 = arith.maximumf %7, %6 : vector<8x128xf32>
    %9 = vector.broadcast %cst_4 : f32 to vector<8x128xf32>
    %10 = arith.minimumf %9, %8 : vector<8x128xf32>
    %11 = vector.broadcast %2 : f32 to vector<8x128xf32>
    %12 = arith.mulf %10, %11 : vector<8x128xf32>
    %13 = vector.broadcast %3 : f32 to vector<8x128xf32>
    %14 = arith.addf %12, %13 : vector<8x128xf32>
    %15 = vector.extract_strided_slice %1 {offsets = [0, 0], sizes = [8, 128], strides = [1, 1]} : vector<64x128xf32> to vector<8x128xf32>
    %cst_5 = arith.constant 0.000000e+00 : f32
    %cst_6 = arith.constant 1.000000e+00 : f32
    %16 = vector.broadcast %cst_5 : f32 to vector<8x128xf32>
    %17 = arith.maximumf %16, %15 : vector<8x128xf32>
    %18 = vector.broadcast %cst_6 : f32 to vector<8x128xf32>
    %19 = arith.minimumf %18, %17 : vector<8x128xf32>
    %20 = vector.broadcast %2 : f32 to vector<8x128xf32>
    %21 = arith.mulf %19, %20 : vector<8x128xf32>
    %22 = vector.broadcast %3 : f32 to vector<8x128xf32>
    %23 = arith.addf %21, %22 : vector<8x128xf32>
    %24 = arith.subf %5, %4 : vector<16x128xf32>
    %25 = math.absf %24 : vector<16x128xf32>
    %c9_i32 = arith.constant 9 : i32
    %26 = tpu.dynamic_rotate %25 by %c9_i32 dim 1 : vector<16x128xf32>, i32 -> vector<16x128xf32>
    %c0_7 = arith.constant 0 : index
    %c0_8 = arith.constant 0 : index
    %27 = vector.load %arg3[%c0_7, %c0_8] : memref<9x128xf32, #tpu.memory_space<vmem>>, vector<1x128xf32>
    %28 = vector.broadcast %27 : vector<1x128xf32> to vector<16x128xf32>
    %29 = arith.mulf %26, %28 : vector<16x128xf32>
    %c8_i32 = arith.constant 8 : i32
    %30 = tpu.dynamic_rotate %25 by %c8_i32 dim 1 : vector<16x128xf32>, i32 -> vector<16x128xf32>
    %c1_9 = arith.constant 1 : index
    %c0_10 = arith.constant 0 : index
    %31 = vector.load %arg3[%c1_9, %c0_10] : memref<9x128xf32, #tpu.memory_space<vmem>>, vector<1x128xf32>
    %32 = vector.broadcast %31 : vector<1x128xf32> to vector<16x128xf32>
    %33 = arith.mulf %30, %32 : vector<16x128xf32>
    %c7_i32 = arith.constant 7 : i32
    %34 = tpu.dynamic_rotate %25 by %c7_i32 dim 1 : vector<16x128xf32>, i32 -> vector<16x128xf32>
    %c2 = arith.constant 2 : index
    %c0_11 = arith.constant 0 : index
    %35 = vector.load %arg3[%c2, %c0_11] : memref<9x128xf32, #tpu.memory_space<vmem>>, vector<1x128xf32>
    %36 = vector.broadcast %35 : vector<1x128xf32> to vector<16x128xf32>
    %37 = arith.mulf %34, %36 : vector<16x128xf32>
    %c1_i32 = arith.constant 1 : i32
    %38 = tpu.dynamic_rotate %25 by %c1_i32 dim 1 : vector<16x128xf32>, i32 -> vector<16x128xf32>
    %c3 = arith.constant 3 : index
    %c0_12 = arith.constant 0 : index
    %39 = vector.load %arg3[%c3, %c0_12] : memref<9x128xf32, #tpu.memory_space<vmem>>, vector<1x128xf32>
    %40 = vector.broadcast %39 : vector<1x128xf32> to vector<16x128xf32>
    %41 = arith.mulf %38, %40 : vector<16x128xf32>
    %c127_i32 = arith.constant 127 : i32
    %42 = tpu.dynamic_rotate %25 by %c127_i32 dim 1 : vector<16x128xf32>, i32 -> vector<16x128xf32>
    %c5 = arith.constant 5 : index
    %c0_13 = arith.constant 0 : index
    %43 = vector.load %arg3[%c5, %c0_13] : memref<9x128xf32, #tpu.memory_space<vmem>>, vector<1x128xf32>
    %44 = vector.broadcast %43 : vector<1x128xf32> to vector<16x128xf32>
    %45 = arith.mulf %42, %44 : vector<16x128xf32>
    %c121_i32 = arith.constant 121 : i32
    %46 = tpu.dynamic_rotate %25 by %c121_i32 dim 1 : vector<16x128xf32>, i32 -> vector<16x128xf32>
    %c6 = arith.constant 6 : index
    %c0_14 = arith.constant 0 : index
    %47 = vector.load %arg3[%c6, %c0_14] : memref<9x128xf32, #tpu.memory_space<vmem>>, vector<1x128xf32>
    %48 = vector.broadcast %47 : vector<1x128xf32> to vector<16x128xf32>
    %49 = arith.mulf %46, %48 : vector<16x128xf32>
    %c120_i32 = arith.constant 120 : i32
    %50 = tpu.dynamic_rotate %25 by %c120_i32 dim 1 : vector<16x128xf32>, i32 -> vector<16x128xf32>
    %c7 = arith.constant 7 : index
    %c0_15 = arith.constant 0 : index
    %51 = vector.load %arg3[%c7, %c0_15] : memref<9x128xf32, #tpu.memory_space<vmem>>, vector<1x128xf32>
    %52 = vector.broadcast %51 : vector<1x128xf32> to vector<16x128xf32>
    %53 = arith.mulf %50, %52 : vector<16x128xf32>
    %c119_i32 = arith.constant 119 : i32
    %54 = tpu.dynamic_rotate %25 by %c119_i32 dim 1 : vector<16x128xf32>, i32 -> vector<16x128xf32>
    %c8 = arith.constant 8 : index
    %c0_16 = arith.constant 0 : index
    %55 = vector.load %arg3[%c8, %c0_16] : memref<9x128xf32, #tpu.memory_space<vmem>>, vector<1x128xf32>
    %56 = vector.broadcast %55 : vector<1x128xf32> to vector<16x128xf32>
    %57 = arith.mulf %54, %56 : vector<16x128xf32>
    %58 = tpu.concatenate %29, %33, %37, %41, %25, %45, %49, %53, %57 in 0 : vector<16x128xf32>, vector<16x128xf32>, vector<16x128xf32>, vector<16x128xf32>, vector<16x128xf32>, vector<16x128xf32>, vector<16x128xf32>, vector<16x128xf32>, vector<16x128xf32> -> vector<144x128xf32>
    %59 = arith.truncf %58 : vector<144x128xf32> to vector<144x128xbf16>
    %c0_17 = arith.constant 0 : index
    %c0_18 = arith.constant 0 : index
    %60 = vector.load %arg4[%c0_17, %c0_18] : memref<64x144xbf16, #tpu.memory_space<vmem>>, vector<64x144xbf16>
    %cst_19 = arith.constant dense<0.000000e+00> : vector<64x128xf32>
    %61 = tpu.matmul %60, %59, %cst_19 {dimension_numbers = #tpu.dot_dimension_numbers<[1], [0], [0], [1], [0, 0, 1, 1], [], []>} : vector<64x144xbf16>, vector<144x128xbf16>, vector<64x128xf32> -> vector<64x128xf32>
    %c9_i32_20 = arith.constant 9 : i32
    %62 = tpu.dynamic_rotate %23 by %c9_i32_20 dim 1 : vector<8x128xf32>, i32 -> vector<8x128xf32>
    %c0_21 = arith.constant 0 : index
    %c0_22 = arith.constant 0 : index
    %63 = vector.load %arg3[%c0_21, %c0_22] : memref<9x128xf32, #tpu.memory_space<vmem>>, vector<1x128xf32>
    %64 = vector.broadcast %63 : vector<1x128xf32> to vector<8x128xf32>
    %65 = arith.mulf %62, %64 : vector<8x128xf32>
    %c8_i32_23 = arith.constant 8 : i32
    %66 = tpu.dynamic_rotate %23 by %c8_i32_23 dim 1 : vector<8x128xf32>, i32 -> vector<8x128xf32>
    %c1_24 = arith.constant 1 : index
    %c0_25 = arith.constant 0 : index
    %67 = vector.load %arg3[%c1_24, %c0_25] : memref<9x128xf32, #tpu.memory_space<vmem>>, vector<1x128xf32>
    %68 = vector.broadcast %67 : vector<1x128xf32> to vector<8x128xf32>
    %69 = arith.mulf %66, %68 : vector<8x128xf32>
    %c7_i32_26 = arith.constant 7 : i32
    %70 = tpu.dynamic_rotate %23 by %c7_i32_26 dim 1 : vector<8x128xf32>, i32 -> vector<8x128xf32>
    %c2_27 = arith.constant 2 : index
    %c0_28 = arith.constant 0 : index
    %71 = vector.load %arg3[%c2_27, %c0_28] : memref<9x128xf32, #tpu.memory_space<vmem>>, vector<1x128xf32>
    %72 = vector.broadcast %71 : vector<1x128xf32> to vector<8x128xf32>
    %73 = arith.mulf %70, %72 : vector<8x128xf32>
    %c1_i32_29 = arith.constant 1 : i32
    %74 = tpu.dynamic_rotate %23 by %c1_i32_29 dim 1 : vector<8x128xf32>, i32 -> vector<8x128xf32>
    %c3_30 = arith.constant 3 : index
    %c0_31 = arith.constant 0 : index
    %75 = vector.load %arg3[%c3_30, %c0_31] : memref<9x128xf32, #tpu.memory_space<vmem>>, vector<1x128xf32>
    %76 = vector.broadcast %75 : vector<1x128xf32> to vector<8x128xf32>
    %77 = arith.mulf %74, %76 : vector<8x128xf32>
    %c127_i32_32 = arith.constant 127 : i32
    %78 = tpu.dynamic_rotate %23 by %c127_i32_32 dim 1 : vector<8x128xf32>, i32 -> vector<8x128xf32>
    %c5_33 = arith.constant 5 : index
    %c0_34 = arith.constant 0 : index
    %79 = vector.load %arg3[%c5_33, %c0_34] : memref<9x128xf32, #tpu.memory_space<vmem>>, vector<1x128xf32>
    %80 = vector.broadcast %79 : vector<1x128xf32> to vector<8x128xf32>
    %81 = arith.mulf %78, %80 : vector<8x128xf32>
    %c121_i32_35 = arith.constant 121 : i32
    %82 = tpu.dynamic_rotate %23 by %c121_i32_35 dim 1 : vector<8x128xf32>, i32 -> vector<8x128xf32>
    %c6_36 = arith.constant 6 : index
    %c0_37 = arith.constant 0 : index
    %83 = vector.load %arg3[%c6_36, %c0_37] : memref<9x128xf32, #tpu.memory_space<vmem>>, vector<1x128xf32>
    %84 = vector.broadcast %83 : vector<1x128xf32> to vector<8x128xf32>
    %85 = arith.mulf %82, %84 : vector<8x128xf32>
    %c120_i32_38 = arith.constant 120 : i32
    %86 = tpu.dynamic_rotate %23 by %c120_i32_38 dim 1 : vector<8x128xf32>, i32 -> vector<8x128xf32>
    %c7_39 = arith.constant 7 : index
    %c0_40 = arith.constant 0 : index
    %87 = vector.load %arg3[%c7_39, %c0_40] : memref<9x128xf32, #tpu.memory_space<vmem>>, vector<1x128xf32>
    %88 = vector.broadcast %87 : vector<1x128xf32> to vector<8x128xf32>
    %89 = arith.mulf %86, %88 : vector<8x128xf32>
    %c119_i32_41 = arith.constant 119 : i32
    %90 = tpu.dynamic_rotate %23 by %c119_i32_41 dim 1 : vector<8x128xf32>, i32 -> vector<8x128xf32>
    %c8_42 = arith.constant 8 : index
    %c0_43 = arith.constant 0 : index
    %91 = vector.load %arg3[%c8_42, %c0_43] : memref<9x128xf32, #tpu.memory_space<vmem>>, vector<1x128xf32>
    %92 = vector.broadcast %91 : vector<1x128xf32> to vector<8x128xf32>
    %93 = arith.mulf %90, %92 : vector<8x128xf32>
    %94 = tpu.concatenate %65, %69, %73, %77, %23, %81, %85, %89, %93 in 0 : vector<8x128xf32>, vector<8x128xf32>, vector<8x128xf32>, vector<8x128xf32>, vector<8x128xf32>, vector<8x128xf32>, vector<8x128xf32>, vector<8x128xf32>, vector<8x128xf32> -> vector<72x128xf32>
    %95 = arith.truncf %94 : vector<72x128xf32> to vector<72x128xbf16>
    %c0_44 = arith.constant 0 : index
    %c0_45 = arith.constant 0 : index
    %96 = vector.load %arg5[%c0_44, %c0_45] : memref<64x72xbf16, #tpu.memory_space<vmem>>, vector<64x72xbf16>
    %cst_46 = arith.constant dense<0.000000e+00> : vector<64x128xf32>
    %97 = tpu.matmul %96, %95, %cst_46 {dimension_numbers = #tpu.dot_dimension_numbers<[1], [0], [0], [1], [0, 0, 1, 1], [], []>} : vector<64x72xbf16>, vector<72x128xbf16>, vector<64x128xf32> -> vector<64x128xf32>
    %98 = arith.addf %61, %97 : vector<64x128xf32>
    %c0_47 = arith.constant 0 : index
    %c0_48 = arith.constant 0 : index
    %99 = vector.load %arg6[%c0_47, %c0_48] : memref<64x1xf32, #tpu.memory_space<vmem>>, vector<64x1xf32>
    %100 = vector.broadcast %99 : vector<64x1xf32> to vector<64x128xf32>
    %101 = arith.addf %98, %100 : vector<64x128xf32>
    %cst_49 = arith.constant 0.000000e+00 : f32
    %102 = vector.broadcast %cst_49 : f32 to vector<64x128xf32>
    %103 = arith.maximumf %101, %102 : vector<64x128xf32>
    %c9_i32_50 = arith.constant 9 : i32
    %104 = tpu.dynamic_rotate %103 by %c9_i32_50 dim 1 : vector<64x128xf32>, i32 -> vector<64x128xf32>
    %c0_51 = arith.constant 0 : index
    %c0_52 = arith.constant 0 : index
    %105 = vector.load %arg3[%c0_51, %c0_52] : memref<9x128xf32, #tpu.memory_space<vmem>>, vector<1x128xf32>
    %106 = vector.broadcast %105 : vector<1x128xf32> to vector<64x128xf32>
    %107 = arith.mulf %104, %106 : vector<64x128xf32>
    %c8_i32_53 = arith.constant 8 : i32
    %108 = tpu.dynamic_rotate %103 by %c8_i32_53 dim 1 : vector<64x128xf32>, i32 -> vector<64x128xf32>
    %c1_54 = arith.constant 1 : index
    %c0_55 = arith.constant 0 : index
    %109 = vector.load %arg3[%c1_54, %c0_55] : memref<9x128xf32, #tpu.memory_space<vmem>>, vector<1x128xf32>
    %110 = vector.broadcast %109 : vector<1x128xf32> to vector<64x128xf32>
    %111 = arith.mulf %108, %110 : vector<64x128xf32>
    %c7_i32_56 = arith.constant 7 : i32
    %112 = tpu.dynamic_rotate %103 by %c7_i32_56 dim 1 : vector<64x128xf32>, i32 -> vector<64x128xf32>
    %c2_57 = arith.constant 2 : index
    %c0_58 = arith.constant 0 : index
    %113 = vector.load %arg3[%c2_57, %c0_58] : memref<9x128xf32, #tpu.memory_space<vmem>>, vector<1x128xf32>
    %114 = vector.broadcast %113 : vector<1x128xf32> to vector<64x128xf32>
    %115 = arith.mulf %112, %114 : vector<64x128xf32>
    %c1_i32_59 = arith.constant 1 : i32
    %116 = tpu.dynamic_rotate %103 by %c1_i32_59 dim 1 : vector<64x128xf32>, i32 -> vector<64x128xf32>
    %c3_60 = arith.constant 3 : index
    %c0_61 = arith.constant 0 : index
    %117 = vector.load %arg3[%c3_60, %c0_61] : memref<9x128xf32, #tpu.memory_space<vmem>>, vector<1x128xf32>
    %118 = vector.broadcast %117 : vector<1x128xf32> to vector<64x128xf32>
    %119 = arith.mulf %116, %118 : vector<64x128xf32>
    %c127_i32_62 = arith.constant 127 : i32
    %120 = tpu.dynamic_rotate %103 by %c127_i32_62 dim 1 : vector<64x128xf32>, i32 -> vector<64x128xf32>
    %c5_63 = arith.constant 5 : index
    %c0_64 = arith.constant 0 : index
    %121 = vector.load %arg3[%c5_63, %c0_64] : memref<9x128xf32, #tpu.memory_space<vmem>>, vector<1x128xf32>
    %122 = vector.broadcast %121 : vector<1x128xf32> to vector<64x128xf32>
    %123 = arith.mulf %120, %122 : vector<64x128xf32>
    %c121_i32_65 = arith.constant 121 : i32
    %124 = tpu.dynamic_rotate %103 by %c121_i32_65 dim 1 : vector<64x128xf32>, i32 -> vector<64x128xf32>
    %c6_66 = arith.constant 6 : index
    %c0_67 = arith.constant 0 : index
    %125 = vector.load %arg3[%c6_66, %c0_67] : memref<9x128xf32, #tpu.memory_space<vmem>>, vector<1x128xf32>
    %126 = vector.broadcast %125 : vector<1x128xf32> to vector<64x128xf32>
    %127 = arith.mulf %124, %126 : vector<64x128xf32>
    %c120_i32_68 = arith.constant 120 : i32
    %128 = tpu.dynamic_rotate %103 by %c120_i32_68 dim 1 : vector<64x128xf32>, i32 -> vector<64x128xf32>
    %c7_69 = arith.constant 7 : index
    %c0_70 = arith.constant 0 : index
    %129 = vector.load %arg3[%c7_69, %c0_70] : memref<9x128xf32, #tpu.memory_space<vmem>>, vector<1x128xf32>
    %130 = vector.broadcast %129 : vector<1x128xf32> to vector<64x128xf32>
    %131 = arith.mulf %128, %130 : vector<64x128xf32>
    %c119_i32_71 = arith.constant 119 : i32
    %132 = tpu.dynamic_rotate %103 by %c119_i32_71 dim 1 : vector<64x128xf32>, i32 -> vector<64x128xf32>
    %c8_72 = arith.constant 8 : index
    %c0_73 = arith.constant 0 : index
    %133 = vector.load %arg3[%c8_72, %c0_73] : memref<9x128xf32, #tpu.memory_space<vmem>>, vector<1x128xf32>
    %134 = vector.broadcast %133 : vector<1x128xf32> to vector<64x128xf32>
    %135 = arith.mulf %132, %134 : vector<64x128xf32>
    %136 = tpu.concatenate %107, %111, %115, %119, %103, %123, %127, %131, %135 in 0 : vector<64x128xf32>, vector<64x128xf32>, vector<64x128xf32>, vector<64x128xf32>, vector<64x128xf32>, vector<64x128xf32>, vector<64x128xf32>, vector<64x128xf32>, vector<64x128xf32> -> vector<576x128xf32>
    %137 = arith.truncf %136 : vector<576x128xf32> to vector<576x128xbf16>
    %c0_74 = arith.constant 0 : index
    %c0_75 = arith.constant 0 : index
    %138 = vector.load %arg7[%c0_74, %c0_75] : memref<64x576xbf16, #tpu.memory_space<vmem>>, vector<64x576xbf16>
    %cst_76 = arith.constant dense<0.000000e+00> : vector<64x128xf32>
    %139 = tpu.matmul %138, %137, %cst_76 {dimension_numbers = #tpu.dot_dimension_numbers<[1], [0], [0], [1], [0, 0, 1, 1], [], []>} : vector<64x576xbf16>, vector<576x128xbf16>, vector<64x128xf32> -> vector<64x128xf32>
    %c0_77 = arith.constant 0 : index
    %c0_78 = arith.constant 0 : index
    %140 = vector.load %arg8[%c0_77, %c0_78] : memref<64x1xf32, #tpu.memory_space<vmem>>, vector<64x1xf32>
    %141 = vector.broadcast %140 : vector<64x1xf32> to vector<64x128xf32>
    %142 = arith.addf %139, %141 : vector<64x128xf32>
    %cst_79 = arith.constant 0.000000e+00 : f32
    %143 = vector.broadcast %cst_79 : f32 to vector<64x128xf32>
    %144 = arith.maximumf %142, %143 : vector<64x128xf32>
    %c9_i32_80 = arith.constant 9 : i32
    %145 = tpu.dynamic_rotate %144 by %c9_i32_80 dim 1 : vector<64x128xf32>, i32 -> vector<64x128xf32>
    %c0_81 = arith.constant 0 : index
    %c0_82 = arith.constant 0 : index
    %146 = vector.load %arg3[%c0_81, %c0_82] : memref<9x128xf32, #tpu.memory_space<vmem>>, vector<1x128xf32>
    %147 = vector.broadcast %146 : vector<1x128xf32> to vector<64x128xf32>
    %148 = arith.mulf %145, %147 : vector<64x128xf32>
    %c8_i32_83 = arith.constant 8 : i32
    %149 = tpu.dynamic_rotate %144 by %c8_i32_83 dim 1 : vector<64x128xf32>, i32 -> vector<64x128xf32>
    %c1_84 = arith.constant 1 : index
    %c0_85 = arith.constant 0 : index
    %150 = vector.load %arg3[%c1_84, %c0_85] : memref<9x128xf32, #tpu.memory_space<vmem>>, vector<1x128xf32>
    %151 = vector.broadcast %150 : vector<1x128xf32> to vector<64x128xf32>
    %152 = arith.mulf %149, %151 : vector<64x128xf32>
    %c7_i32_86 = arith.constant 7 : i32
    %153 = tpu.dynamic_rotate %144 by %c7_i32_86 dim 1 : vector<64x128xf32>, i32 -> vector<64x128xf32>
    %c2_87 = arith.constant 2 : index
    %c0_88 = arith.constant 0 : index
    %154 = vector.load %arg3[%c2_87, %c0_88] : memref<9x128xf32, #tpu.memory_space<vmem>>, vector<1x128xf32>
    %155 = vector.broadcast %154 : vector<1x128xf32> to vector<64x128xf32>
    %156 = arith.mulf %153, %155 : vector<64x128xf32>
    %c1_i32_89 = arith.constant 1 : i32
    %157 = tpu.dynamic_rotate %144 by %c1_i32_89 dim 1 : vector<64x128xf32>, i32 -> vector<64x128xf32>
    %c3_90 = arith.constant 3 : index
    %c0_91 = arith.constant 0 : index
    %158 = vector.load %arg3[%c3_90, %c0_91] : memref<9x128xf32, #tpu.memory_space<vmem>>, vector<1x128xf32>
    %159 = vector.broadcast %158 : vector<1x128xf32> to vector<64x128xf32>
    %160 = arith.mulf %157, %159 : vector<64x128xf32>
    %c127_i32_92 = arith.constant 127 : i32
    %161 = tpu.dynamic_rotate %144 by %c127_i32_92 dim 1 : vector<64x128xf32>, i32 -> vector<64x128xf32>
    %c5_93 = arith.constant 5 : index
    %c0_94 = arith.constant 0 : index
    %162 = vector.load %arg3[%c5_93, %c0_94] : memref<9x128xf32, #tpu.memory_space<vmem>>, vector<1x128xf32>
    %163 = vector.broadcast %162 : vector<1x128xf32> to vector<64x128xf32>
    %164 = arith.mulf %161, %163 : vector<64x128xf32>
    %c121_i32_95 = arith.constant 121 : i32
    %165 = tpu.dynamic_rotate %144 by %c121_i32_95 dim 1 : vector<64x128xf32>, i32 -> vector<64x128xf32>
    %c6_96 = arith.constant 6 : index
    %c0_97 = arith.constant 0 : index
    %166 = vector.load %arg3[%c6_96, %c0_97] : memref<9x128xf32, #tpu.memory_space<vmem>>, vector<1x128xf32>
    %167 = vector.broadcast %166 : vector<1x128xf32> to vector<64x128xf32>
    %168 = arith.mulf %165, %167 : vector<64x128xf32>
    %c120_i32_98 = arith.constant 120 : i32
    %169 = tpu.dynamic_rotate %144 by %c120_i32_98 dim 1 : vector<64x128xf32>, i32 -> vector<64x128xf32>
    %c7_99 = arith.constant 7 : index
    %c0_100 = arith.constant 0 : index
    %170 = vector.load %arg3[%c7_99, %c0_100] : memref<9x128xf32, #tpu.memory_space<vmem>>, vector<1x128xf32>
    %171 = vector.broadcast %170 : vector<1x128xf32> to vector<64x128xf32>
    %172 = arith.mulf %169, %171 : vector<64x128xf32>
    %c119_i32_101 = arith.constant 119 : i32
    %173 = tpu.dynamic_rotate %144 by %c119_i32_101 dim 1 : vector<64x128xf32>, i32 -> vector<64x128xf32>
    %c8_102 = arith.constant 8 : index
    %c0_103 = arith.constant 0 : index
    %174 = vector.load %arg3[%c8_102, %c0_103] : memref<9x128xf32, #tpu.memory_space<vmem>>, vector<1x128xf32>
    %175 = vector.broadcast %174 : vector<1x128xf32> to vector<64x128xf32>
    %176 = arith.mulf %173, %175 : vector<64x128xf32>
    %177 = tpu.concatenate %148, %152, %156, %160, %144, %164, %168, %172, %176 in 0 : vector<64x128xf32>, vector<64x128xf32>, vector<64x128xf32>, vector<64x128xf32>, vector<64x128xf32>, vector<64x128xf32>, vector<64x128xf32>, vector<64x128xf32>, vector<64x128xf32> -> vector<576x128xf32>
    %178 = arith.truncf %177 : vector<576x128xf32> to vector<576x128xbf16>
    %c0_104 = arith.constant 0 : index
    %c0_105 = arith.constant 0 : index
    %179 = vector.load %arg9[%c0_104, %c0_105] : memref<8x576xbf16, #tpu.memory_space<vmem>>, vector<8x576xbf16>
    %cst_106 = arith.constant dense<0.000000e+00> : vector<8x128xf32>
    %180 = tpu.matmul %179, %178, %cst_106 {dimension_numbers = #tpu.dot_dimension_numbers<[1], [0], [0], [1], [0, 0, 1, 1], [], []>} : vector<8x576xbf16>, vector<576x128xbf16>, vector<8x128xf32> -> vector<8x128xf32>
    %c0_107 = arith.constant 0 : index
    %c0_108 = arith.constant 0 : index
    %181 = vector.load %arg10[%c0_107, %c0_108] : memref<8x1xf32, #tpu.memory_space<vmem>>, vector<8x1xf32>
    %182 = vector.broadcast %181 : vector<8x1xf32> to vector<8x128xf32>
    %183 = arith.addf %180, %182 : vector<8x128xf32>
    %cst_109 = arith.constant 0.000000e+00 : f32
    %184 = vector.broadcast %cst_109 : f32 to vector<8x128xf32>
    %185 = arith.subf %184, %183 : vector<8x128xf32>
    %186 = math.exp %185 : vector<8x128xf32>
    %cst_110 = arith.constant 1.000000e+00 : f32
    %187 = vector.broadcast %cst_110 : f32 to vector<8x128xf32>
    %188 = arith.addf %187, %186 : vector<8x128xf32>
    %189 = tpu.reciprocal %188 : vector<8x128xf32> -> vector<8x128xf32>
    %190 = vector.extract_strided_slice %189 {offsets = [0, 0], sizes = [4, 128], strides = [1, 1]} : vector<8x128xf32> to vector<4x128xf32>
    %c0_111 = arith.constant 0 : index
    %c0_112 = arith.constant 0 : index
    %191 = vector.load %arg11[%c0_111, %c0_112] : memref<64x4xf32, #tpu.memory_space<vmem>>, vector<64x1xf32>
    %192 = vector.extract_strided_slice %189 {offsets = [0, 0], sizes = [1, 128], strides = [1, 1]} : vector<8x128xf32> to vector<1x128xf32>
    %193 = vector.broadcast %191 : vector<64x1xf32> to vector<64x128xf32>
    %194 = vector.broadcast %192 : vector<1x128xf32> to vector<64x128xf32>
    %195 = arith.mulf %193, %194 : vector<64x128xf32>
    %c0_113 = arith.constant 0 : index
    %c1_114 = arith.constant 1 : index
    %196 = vector.load %arg11[%c0_113, %c1_114] : memref<64x4xf32, #tpu.memory_space<vmem>>, vector<64x1xf32>
    %197 = vector.extract_strided_slice %189 {offsets = [1, 0], sizes = [1, 128], strides = [1, 1]} : vector<8x128xf32> to vector<1x128xf32>
    %198 = vector.broadcast %196 : vector<64x1xf32> to vector<64x128xf32>
    %199 = vector.broadcast %197 : vector<1x128xf32> to vector<64x128xf32>
    %200 = arith.mulf %198, %199 : vector<64x128xf32>
    %201 = arith.addf %195, %200 : vector<64x128xf32>
    %c0_115 = arith.constant 0 : index
    %c2_116 = arith.constant 2 : index
    %202 = vector.load %arg11[%c0_115, %c2_116] : memref<64x4xf32, #tpu.memory_space<vmem>>, vector<64x1xf32>
    %203 = vector.extract_strided_slice %189 {offsets = [2, 0], sizes = [1, 128], strides = [1, 1]} : vector<8x128xf32> to vector<1x128xf32>
    %204 = vector.broadcast %202 : vector<64x1xf32> to vector<64x128xf32>
    %205 = vector.broadcast %203 : vector<1x128xf32> to vector<64x128xf32>
    %206 = arith.mulf %204, %205 : vector<64x128xf32>
    %207 = arith.addf %201, %206 : vector<64x128xf32>
    %c0_117 = arith.constant 0 : index
    %c3_118 = arith.constant 3 : index
    %208 = vector.load %arg11[%c0_117, %c3_118] : memref<64x4xf32, #tpu.memory_space<vmem>>, vector<64x1xf32>
    %209 = vector.extract_strided_slice %189 {offsets = [3, 0], sizes = [1, 128], strides = [1, 1]} : vector<8x128xf32> to vector<1x128xf32>
    %210 = vector.broadcast %208 : vector<64x1xf32> to vector<64x128xf32>
    %211 = vector.broadcast %209 : vector<1x128xf32> to vector<64x128xf32>
    %212 = arith.mulf %210, %211 : vector<64x128xf32>
    %213 = arith.addf %207, %212 : vector<64x128xf32>
    %cst_119 = arith.constant 1.000000e+00 : f32
    %214 = vector.broadcast %cst_119 : f32 to vector<64x128xf32>
    %215 = arith.subf %214, %213 : vector<64x128xf32>
    %216 = arith.mulf %0, %215 : vector<64x128xf32>
    %217 = arith.mulf %1, %213 : vector<64x128xf32>
    %218 = arith.addf %216, %217 : vector<64x128xf32>
    %cst_120 = arith.constant 1.000000e+00 : f32
    %219 = vector.broadcast %cst_120 : f32 to vector<8x128xf32>
    %220 = arith.subf %219, %189 : vector<8x128xf32>
    %221 = arith.mulf %220, %220 : vector<8x128xf32>
    %222 = arith.mulf %221, %14 : vector<8x128xf32>
    %223 = arith.mulf %189, %189 : vector<8x128xf32>
    %224 = arith.mulf %223, %23 : vector<8x128xf32>
    %225 = arith.addf %222, %224 : vector<8x128xf32>
    %c9_i32_121 = arith.constant 9 : i32
    %226 = tpu.dynamic_rotate %218 by %c9_i32_121 dim 1 : vector<64x128xf32>, i32 -> vector<64x128xf32>
    %c0_122 = arith.constant 0 : index
    %c0_123 = arith.constant 0 : index
    %227 = vector.load %arg3[%c0_122, %c0_123] : memref<9x128xf32, #tpu.memory_space<vmem>>, vector<1x128xf32>
    %228 = vector.broadcast %227 : vector<1x128xf32> to vector<64x128xf32>
    %229 = arith.mulf %226, %228 : vector<64x128xf32>
    %c8_i32_124 = arith.constant 8 : i32
    %230 = tpu.dynamic_rotate %218 by %c8_i32_124 dim 1 : vector<64x128xf32>, i32 -> vector<64x128xf32>
    %c1_125 = arith.constant 1 : index
    %c0_126 = arith.constant 0 : index
    %231 = vector.load %arg3[%c1_125, %c0_126] : memref<9x128xf32, #tpu.memory_space<vmem>>, vector<1x128xf32>
    %232 = vector.broadcast %231 : vector<1x128xf32> to vector<64x128xf32>
    %233 = arith.mulf %230, %232 : vector<64x128xf32>
    %c7_i32_127 = arith.constant 7 : i32
    %234 = tpu.dynamic_rotate %218 by %c7_i32_127 dim 1 : vector<64x128xf32>, i32 -> vector<64x128xf32>
    %c2_128 = arith.constant 2 : index
    %c0_129 = arith.constant 0 : index
    %235 = vector.load %arg3[%c2_128, %c0_129] : memref<9x128xf32, #tpu.memory_space<vmem>>, vector<1x128xf32>
    %236 = vector.broadcast %235 : vector<1x128xf32> to vector<64x128xf32>
    %237 = arith.mulf %234, %236 : vector<64x128xf32>
    %c1_i32_130 = arith.constant 1 : i32
    %238 = tpu.dynamic_rotate %218 by %c1_i32_130 dim 1 : vector<64x128xf32>, i32 -> vector<64x128xf32>
    %c3_131 = arith.constant 3 : index
    %c0_132 = arith.constant 0 : index
    %239 = vector.load %arg3[%c3_131, %c0_132] : memref<9x128xf32, #tpu.memory_space<vmem>>, vector<1x128xf32>
    %240 = vector.broadcast %239 : vector<1x128xf32> to vector<64x128xf32>
    %241 = arith.mulf %238, %240 : vector<64x128xf32>
    %c127_i32_133 = arith.constant 127 : i32
    %242 = tpu.dynamic_rotate %218 by %c127_i32_133 dim 1 : vector<64x128xf32>, i32 -> vector<64x128xf32>
    %c5_134 = arith.constant 5 : index
    %c0_135 = arith.constant 0 : index
    %243 = vector.load %arg3[%c5_134, %c0_135] : memref<9x128xf32, #tpu.memory_space<vmem>>, vector<1x128xf32>
    %244 = vector.broadcast %243 : vector<1x128xf32> to vector<64x128xf32>
    %245 = arith.mulf %242, %244 : vector<64x128xf32>
    %c121_i32_136 = arith.constant 121 : i32
    %246 = tpu.dynamic_rotate %218 by %c121_i32_136 dim 1 : vector<64x128xf32>, i32 -> vector<64x128xf32>
    %c6_137 = arith.constant 6 : index
    %c0_138 = arith.constant 0 : index
    %247 = vector.load %arg3[%c6_137, %c0_138] : memref<9x128xf32, #tpu.memory_space<vmem>>, vector<1x128xf32>
    %248 = vector.broadcast %247 : vector<1x128xf32> to vector<64x128xf32>
    %249 = arith.mulf %246, %248 : vector<64x128xf32>
    %c120_i32_139 = arith.constant 120 : i32
    %250 = tpu.dynamic_rotate %218 by %c120_i32_139 dim 1 : vector<64x128xf32>, i32 -> vector<64x128xf32>
    %c7_140 = arith.constant 7 : index
    %c0_141 = arith.constant 0 : index
    %251 = vector.load %arg3[%c7_140, %c0_141] : memref<9x128xf32, #tpu.memory_space<vmem>>, vector<1x128xf32>
    %252 = vector.broadcast %251 : vector<1x128xf32> to vector<64x128xf32>
    %253 = arith.mulf %250, %252 : vector<64x128xf32>
    %c119_i32_142 = arith.constant 119 : i32
    %254 = tpu.dynamic_rotate %218 by %c119_i32_142 dim 1 : vector<64x128xf32>, i32 -> vector<64x128xf32>
    %c8_143 = arith.constant 8 : index
    %c0_144 = arith.constant 0 : index
    %255 = vector.load %arg3[%c8_143, %c0_144] : memref<9x128xf32, #tpu.memory_space<vmem>>, vector<1x128xf32>
    %256 = vector.broadcast %255 : vector<1x128xf32> to vector<64x128xf32>
    %257 = arith.mulf %254, %256 : vector<64x128xf32>
    %258 = tpu.concatenate %229, %233, %237, %241, %218, %245, %249, %253, %257 in 0 : vector<64x128xf32>, vector<64x128xf32>, vector<64x128xf32>, vector<64x128xf32>, vector<64x128xf32>, vector<64x128xf32>, vector<64x128xf32>, vector<64x128xf32>, vector<64x128xf32> -> vector<576x128xf32>
    %259 = arith.truncf %258 : vector<576x128xf32> to vector<576x128xbf16>
    %c0_145 = arith.constant 0 : index
    %c0_146 = arith.constant 0 : index
    %260 = vector.load %arg12[%c0_145, %c0_146] : memref<64x576xbf16, #tpu.memory_space<vmem>>, vector<64x576xbf16>
    %cst_147 = arith.constant dense<0.000000e+00> : vector<64x128xf32>
    %261 = tpu.matmul %260, %259, %cst_147 {dimension_numbers = #tpu.dot_dimension_numbers<[1], [0], [0], [1], [0, 0, 1, 1], [], []>} : vector<64x576xbf16>, vector<576x128xbf16>, vector<64x128xf32> -> vector<64x128xf32>
    %c9_i32_148 = arith.constant 9 : i32
    %262 = tpu.dynamic_rotate %5 by %c9_i32_148 dim 1 : vector<16x128xf32>, i32 -> vector<16x128xf32>
    %c0_149 = arith.constant 0 : index
    %c0_150 = arith.constant 0 : index
    %263 = vector.load %arg3[%c0_149, %c0_150] : memref<9x128xf32, #tpu.memory_space<vmem>>, vector<1x128xf32>
    %264 = vector.broadcast %263 : vector<1x128xf32> to vector<16x128xf32>
    %265 = arith.mulf %262, %264 : vector<16x128xf32>
    %c8_i32_151 = arith.constant 8 : i32
    %266 = tpu.dynamic_rotate %5 by %c8_i32_151 dim 1 : vector<16x128xf32>, i32 -> vector<16x128xf32>
    %c1_152 = arith.constant 1 : index
    %c0_153 = arith.constant 0 : index
    %267 = vector.load %arg3[%c1_152, %c0_153] : memref<9x128xf32, #tpu.memory_space<vmem>>, vector<1x128xf32>
    %268 = vector.broadcast %267 : vector<1x128xf32> to vector<16x128xf32>
    %269 = arith.mulf %266, %268 : vector<16x128xf32>
    %c7_i32_154 = arith.constant 7 : i32
    %270 = tpu.dynamic_rotate %5 by %c7_i32_154 dim 1 : vector<16x128xf32>, i32 -> vector<16x128xf32>
    %c2_155 = arith.constant 2 : index
    %c0_156 = arith.constant 0 : index
    %271 = vector.load %arg3[%c2_155, %c0_156] : memref<9x128xf32, #tpu.memory_space<vmem>>, vector<1x128xf32>
    %272 = vector.broadcast %271 : vector<1x128xf32> to vector<16x128xf32>
    %273 = arith.mulf %270, %272 : vector<16x128xf32>
    %c1_i32_157 = arith.constant 1 : i32
    %274 = tpu.dynamic_rotate %5 by %c1_i32_157 dim 1 : vector<16x128xf32>, i32 -> vector<16x128xf32>
    %c3_158 = arith.constant 3 : index
    %c0_159 = arith.constant 0 : index
    %275 = vector.load %arg3[%c3_158, %c0_159] : memref<9x128xf32, #tpu.memory_space<vmem>>, vector<1x128xf32>
    %276 = vector.broadcast %275 : vector<1x128xf32> to vector<16x128xf32>
    %277 = arith.mulf %274, %276 : vector<16x128xf32>
    %c127_i32_160 = arith.constant 127 : i32
    %278 = tpu.dynamic_rotate %5 by %c127_i32_160 dim 1 : vector<16x128xf32>, i32 -> vector<16x128xf32>
    %c5_161 = arith.constant 5 : index
    %c0_162 = arith.constant 0 : index
    %279 = vector.load %arg3[%c5_161, %c0_162] : memref<9x128xf32, #tpu.memory_space<vmem>>, vector<1x128xf32>
    %280 = vector.broadcast %279 : vector<1x128xf32> to vector<16x128xf32>
    %281 = arith.mulf %278, %280 : vector<16x128xf32>
    %c121_i32_163 = arith.constant 121 : i32
    %282 = tpu.dynamic_rotate %5 by %c121_i32_163 dim 1 : vector<16x128xf32>, i32 -> vector<16x128xf32>
    %c6_164 = arith.constant 6 : index
    %c0_165 = arith.constant 0 : index
    %283 = vector.load %arg3[%c6_164, %c0_165] : memref<9x128xf32, #tpu.memory_space<vmem>>, vector<1x128xf32>
    %284 = vector.broadcast %283 : vector<1x128xf32> to vector<16x128xf32>
    %285 = arith.mulf %282, %284 : vector<16x128xf32>
    %c120_i32_166 = arith.constant 120 : i32
    %286 = tpu.dynamic_rotate %5 by %c120_i32_166 dim 1 : vector<16x128xf32>, i32 -> vector<16x128xf32>
    %c7_167 = arith.constant 7 : index
    %c0_168 = arith.constant 0 : index
    %287 = vector.load %arg3[%c7_167, %c0_168] : memref<9x128xf32, #tpu.memory_space<vmem>>, vector<1x128xf32>
    %288 = vector.broadcast %287 : vector<1x128xf32> to vector<16x128xf32>
    %289 = arith.mulf %286, %288 : vector<16x128xf32>
    %c119_i32_169 = arith.constant 119 : i32
    %290 = tpu.dynamic_rotate %5 by %c119_i32_169 dim 1 : vector<16x128xf32>, i32 -> vector<16x128xf32>
    %c8_170 = arith.constant 8 : index
    %c0_171 = arith.constant 0 : index
    %291 = vector.load %arg3[%c8_170, %c0_171] : memref<9x128xf32, #tpu.memory_space<vmem>>, vector<1x128xf32>
    %292 = vector.broadcast %291 : vector<1x128xf32> to vector<16x128xf32>
    %293 = arith.mulf %290, %292 : vector<16x128xf32>
    %294 = tpu.concatenate %265, %269, %273, %277, %5, %281, %285, %289, %293 in 0 : vector<16x128xf32>, vector<16x128xf32>, vector<16x128xf32>, vector<16x128xf32>, vector<16x128xf32>, vector<16x128xf32>, vector<16x128xf32>, vector<16x128xf32>, vector<16x128xf32> -> vector<144x128xf32>
    %295 = arith.truncf %294 : vector<144x128xf32> to vector<144x128xbf16>
    %c0_172 = arith.constant 0 : index
    %c0_173 = arith.constant 0 : index
    %296 = vector.load %arg13[%c0_172, %c0_173] : memref<64x144xbf16, #tpu.memory_space<vmem>>, vector<64x144xbf16>
    %cst_174 = arith.constant dense<0.000000e+00> : vector<64x128xf32>
    %297 = tpu.matmul %296, %295, %cst_174 {dimension_numbers = #tpu.dot_dimension_numbers<[1], [0], [0], [1], [0, 0, 1, 1], [], []>} : vector<64x144xbf16>, vector<144x128xbf16>, vector<64x128xf32> -> vector<64x128xf32>
    %298 = arith.addf %261, %297 : vector<64x128xf32>
    %c9_i32_175 = arith.constant 9 : i32
    %299 = tpu.dynamic_rotate %225 by %c9_i32_175 dim 1 : vector<8x128xf32>, i32 -> vector<8x128xf32>
    %c0_176 = arith.constant 0 : index
    %c0_177 = arith.constant 0 : index
    %300 = vector.load %arg3[%c0_176, %c0_177] : memref<9x128xf32, #tpu.memory_space<vmem>>, vector<1x128xf32>
    %301 = vector.broadcast %300 : vector<1x128xf32> to vector<8x128xf32>
    %302 = arith.mulf %299, %301 : vector<8x128xf32>
    %c8_i32_178 = arith.constant 8 : i32
    %303 = tpu.dynamic_rotate %225 by %c8_i32_178 dim 1 : vector<8x128xf32>, i32 -> vector<8x128xf32>
    %c1_179 = arith.constant 1 : index
    %c0_180 = arith.constant 0 : index
    %304 = vector.load %arg3[%c1_179, %c0_180] : memref<9x128xf32, #tpu.memory_space<vmem>>, vector<1x128xf32>
    %305 = vector.broadcast %304 : vector<1x128xf32> to vector<8x128xf32>
    %306 = arith.mulf %303, %305 : vector<8x128xf32>
    %c7_i32_181 = arith.constant 7 : i32
    %307 = tpu.dynamic_rotate %225 by %c7_i32_181 dim 1 : vector<8x128xf32>, i32 -> vector<8x128xf32>
    %c2_182 = arith.constant 2 : index
    %c0_183 = arith.constant 0 : index
    %308 = vector.load %arg3[%c2_182, %c0_183] : memref<9x128xf32, #tpu.memory_space<vmem>>, vector<1x128xf32>
    %309 = vector.broadcast %308 : vector<1x128xf32> to vector<8x128xf32>
    %310 = arith.mulf %307, %309 : vector<8x128xf32>
    %c1_i32_184 = arith.constant 1 : i32
    %311 = tpu.dynamic_rotate %225 by %c1_i32_184 dim 1 : vector<8x128xf32>, i32 -> vector<8x128xf32>
    %c3_185 = arith.constant 3 : index
    %c0_186 = arith.constant 0 : index
    %312 = vector.load %arg3[%c3_185, %c0_186] : memref<9x128xf32, #tpu.memory_space<vmem>>, vector<1x128xf32>
    %313 = vector.broadcast %312 : vector<1x128xf32> to vector<8x128xf32>
    %314 = arith.mulf %311, %313 : vector<8x128xf32>
    %c127_i32_187 = arith.constant 127 : i32
    %315 = tpu.dynamic_rotate %225 by %c127_i32_187 dim 1 : vector<8x128xf32>, i32 -> vector<8x128xf32>
    %c5_188 = arith.constant 5 : index
    %c0_189 = arith.constant 0 : index
    %316 = vector.load %arg3[%c5_188, %c0_189] : memref<9x128xf32, #tpu.memory_space<vmem>>, vector<1x128xf32>
    %317 = vector.broadcast %316 : vector<1x128xf32> to vector<8x128xf32>
    %318 = arith.mulf %315, %317 : vector<8x128xf32>
    %c121_i32_190 = arith.constant 121 : i32
    %319 = tpu.dynamic_rotate %225 by %c121_i32_190 dim 1 : vector<8x128xf32>, i32 -> vector<8x128xf32>
    %c6_191 = arith.constant 6 : index
    %c0_192 = arith.constant 0 : index
    %320 = vector.load %arg3[%c6_191, %c0_192] : memref<9x128xf32, #tpu.memory_space<vmem>>, vector<1x128xf32>
    %321 = vector.broadcast %320 : vector<1x128xf32> to vector<8x128xf32>
    %322 = arith.mulf %319, %321 : vector<8x128xf32>
    %c120_i32_193 = arith.constant 120 : i32
    %323 = tpu.dynamic_rotate %225 by %c120_i32_193 dim 1 : vector<8x128xf32>, i32 -> vector<8x128xf32>
    %c7_194 = arith.constant 7 : index
    %c0_195 = arith.constant 0 : index
    %324 = vector.load %arg3[%c7_194, %c0_195] : memref<9x128xf32, #tpu.memory_space<vmem>>, vector<1x128xf32>
    %325 = vector.broadcast %324 : vector<1x128xf32> to vector<8x128xf32>
    %326 = arith.mulf %323, %325 : vector<8x128xf32>
    %c119_i32_196 = arith.constant 119 : i32
    %327 = tpu.dynamic_rotate %225 by %c119_i32_196 dim 1 : vector<8x128xf32>, i32 -> vector<8x128xf32>
    %c8_197 = arith.constant 8 : index
    %c0_198 = arith.constant 0 : index
    %328 = vector.load %arg3[%c8_197, %c0_198] : memref<9x128xf32, #tpu.memory_space<vmem>>, vector<1x128xf32>
    %329 = vector.broadcast %328 : vector<1x128xf32> to vector<8x128xf32>
    %330 = arith.mulf %327, %329 : vector<8x128xf32>
    %331 = tpu.concatenate %302, %306, %310, %314, %225, %318, %322, %326, %330 in 0 : vector<8x128xf32>, vector<8x128xf32>, vector<8x128xf32>, vector<8x128xf32>, vector<8x128xf32>, vector<8x128xf32>, vector<8x128xf32>, vector<8x128xf32>, vector<8x128xf32> -> vector<72x128xf32>
    %332 = arith.truncf %331 : vector<72x128xf32> to vector<72x128xbf16>
    %c0_199 = arith.constant 0 : index
    %c0_200 = arith.constant 0 : index
    %333 = vector.load %arg14[%c0_199, %c0_200] : memref<64x72xbf16, #tpu.memory_space<vmem>>, vector<64x72xbf16>
    %cst_201 = arith.constant dense<0.000000e+00> : vector<64x128xf32>
    %334 = tpu.matmul %333, %332, %cst_201 {dimension_numbers = #tpu.dot_dimension_numbers<[1], [0], [0], [1], [0, 0, 1, 1], [], []>} : vector<64x72xbf16>, vector<72x128xbf16>, vector<64x128xf32> -> vector<64x128xf32>
    %335 = arith.addf %298, %334 : vector<64x128xf32>
    %c0_202 = arith.constant 0 : index
    %c0_203 = arith.constant 0 : index
    %336 = vector.load %arg15[%c0_202, %c0_203] : memref<64x1xf32, #tpu.memory_space<vmem>>, vector<64x1xf32>
    %337 = vector.broadcast %336 : vector<64x1xf32> to vector<64x128xf32>
    %338 = arith.addf %335, %337 : vector<64x128xf32>
    %cst_204 = arith.constant 0.000000e+00 : f32
    %339 = vector.broadcast %cst_204 : f32 to vector<64x128xf32>
    %340 = arith.maximumf %338, %339 : vector<64x128xf32>
    %c9_i32_205 = arith.constant 9 : i32
    %341 = tpu.dynamic_rotate %340 by %c9_i32_205 dim 1 : vector<64x128xf32>, i32 -> vector<64x128xf32>
    %c0_206 = arith.constant 0 : index
    %c0_207 = arith.constant 0 : index
    %342 = vector.load %arg3[%c0_206, %c0_207] : memref<9x128xf32, #tpu.memory_space<vmem>>, vector<1x128xf32>
    %343 = vector.broadcast %342 : vector<1x128xf32> to vector<64x128xf32>
    %344 = arith.mulf %341, %343 : vector<64x128xf32>
    %c8_i32_208 = arith.constant 8 : i32
    %345 = tpu.dynamic_rotate %340 by %c8_i32_208 dim 1 : vector<64x128xf32>, i32 -> vector<64x128xf32>
    %c1_209 = arith.constant 1 : index
    %c0_210 = arith.constant 0 : index
    %346 = vector.load %arg3[%c1_209, %c0_210] : memref<9x128xf32, #tpu.memory_space<vmem>>, vector<1x128xf32>
    %347 = vector.broadcast %346 : vector<1x128xf32> to vector<64x128xf32>
    %348 = arith.mulf %345, %347 : vector<64x128xf32>
    %c7_i32_211 = arith.constant 7 : i32
    %349 = tpu.dynamic_rotate %340 by %c7_i32_211 dim 1 : vector<64x128xf32>, i32 -> vector<64x128xf32>
    %c2_212 = arith.constant 2 : index
    %c0_213 = arith.constant 0 : index
    %350 = vector.load %arg3[%c2_212, %c0_213] : memref<9x128xf32, #tpu.memory_space<vmem>>, vector<1x128xf32>
    %351 = vector.broadcast %350 : vector<1x128xf32> to vector<64x128xf32>
    %352 = arith.mulf %349, %351 : vector<64x128xf32>
    %c1_i32_214 = arith.constant 1 : i32
    %353 = tpu.dynamic_rotate %340 by %c1_i32_214 dim 1 : vector<64x128xf32>, i32 -> vector<64x128xf32>
    %c3_215 = arith.constant 3 : index
    %c0_216 = arith.constant 0 : index
    %354 = vector.load %arg3[%c3_215, %c0_216] : memref<9x128xf32, #tpu.memory_space<vmem>>, vector<1x128xf32>
    %355 = vector.broadcast %354 : vector<1x128xf32> to vector<64x128xf32>
    %356 = arith.mulf %353, %355 : vector<64x128xf32>
    %c127_i32_217 = arith.constant 127 : i32
    %357 = tpu.dynamic_rotate %340 by %c127_i32_217 dim 1 : vector<64x128xf32>, i32 -> vector<64x128xf32>
    %c5_218 = arith.constant 5 : index
    %c0_219 = arith.constant 0 : index
    %358 = vector.load %arg3[%c5_218, %c0_219] : memref<9x128xf32, #tpu.memory_space<vmem>>, vector<1x128xf32>
    %359 = vector.broadcast %358 : vector<1x128xf32> to vector<64x128xf32>
    %360 = arith.mulf %357, %359 : vector<64x128xf32>
    %c121_i32_220 = arith.constant 121 : i32
    %361 = tpu.dynamic_rotate %340 by %c121_i32_220 dim 1 : vector<64x128xf32>, i32 -> vector<64x128xf32>
    %c6_221 = arith.constant 6 : index
    %c0_222 = arith.constant 0 : index
    %362 = vector.load %arg3[%c6_221, %c0_222] : memref<9x128xf32, #tpu.memory_space<vmem>>, vector<1x128xf32>
    %363 = vector.broadcast %362 : vector<1x128xf32> to vector<64x128xf32>
    %364 = arith.mulf %361, %363 : vector<64x128xf32>
    %c120_i32_223 = arith.constant 120 : i32
    %365 = tpu.dynamic_rotate %340 by %c120_i32_223 dim 1 : vector<64x128xf32>, i32 -> vector<64x128xf32>
    %c7_224 = arith.constant 7 : index
    %c0_225 = arith.constant 0 : index
    %366 = vector.load %arg3[%c7_224, %c0_225] : memref<9x128xf32, #tpu.memory_space<vmem>>, vector<1x128xf32>
    %367 = vector.broadcast %366 : vector<1x128xf32> to vector<64x128xf32>
    %368 = arith.mulf %365, %367 : vector<64x128xf32>
    %c119_i32_226 = arith.constant 119 : i32
    %369 = tpu.dynamic_rotate %340 by %c119_i32_226 dim 1 : vector<64x128xf32>, i32 -> vector<64x128xf32>
    %c8_227 = arith.constant 8 : index
    %c0_228 = arith.constant 0 : index
    %370 = vector.load %arg3[%c8_227, %c0_228] : memref<9x128xf32, #tpu.memory_space<vmem>>, vector<1x128xf32>
    %371 = vector.broadcast %370 : vector<1x128xf32> to vector<64x128xf32>
    %372 = arith.mulf %369, %371 : vector<64x128xf32>
    %373 = tpu.concatenate %344, %348, %352, %356, %340, %360, %364, %368, %372 in 0 : vector<64x128xf32>, vector<64x128xf32>, vector<64x128xf32>, vector<64x128xf32>, vector<64x128xf32>, vector<64x128xf32>, vector<64x128xf32>, vector<64x128xf32>, vector<64x128xf32> -> vector<576x128xf32>
    %374 = arith.truncf %373 : vector<576x128xf32> to vector<576x128xbf16>
    %c0_229 = arith.constant 0 : index
    %c0_230 = arith.constant 0 : index
    %375 = vector.load %arg16[%c0_229, %c0_230] : memref<64x576xbf16, #tpu.memory_space<vmem>>, vector<64x576xbf16>
    %cst_231 = arith.constant dense<0.000000e+00> : vector<64x128xf32>
    %376 = tpu.matmul %375, %374, %cst_231 {dimension_numbers = #tpu.dot_dimension_numbers<[1], [0], [0], [1], [0, 0, 1, 1], [], []>} : vector<64x576xbf16>, vector<576x128xbf16>, vector<64x128xf32> -> vector<64x128xf32>
    %c0_232 = arith.constant 0 : index
    %c0_233 = arith.constant 0 : index
    %377 = vector.load %arg17[%c0_232, %c0_233] : memref<64x1xf32, #tpu.memory_space<vmem>>, vector<64x1xf32>
    %378 = vector.broadcast %377 : vector<64x1xf32> to vector<64x128xf32>
    %379 = arith.addf %376, %378 : vector<64x128xf32>
    %cst_234 = arith.constant 0.000000e+00 : f32
    %380 = vector.broadcast %cst_234 : f32 to vector<64x128xf32>
    %381 = arith.maximumf %379, %380 : vector<64x128xf32>
    %c9_i32_235 = arith.constant 9 : i32
    %382 = tpu.dynamic_rotate %381 by %c9_i32_235 dim 1 : vector<64x128xf32>, i32 -> vector<64x128xf32>
    %c0_236 = arith.constant 0 : index
    %c0_237 = arith.constant 0 : index
    %383 = vector.load %arg3[%c0_236, %c0_237] : memref<9x128xf32, #tpu.memory_space<vmem>>, vector<1x128xf32>
    %384 = vector.broadcast %383 : vector<1x128xf32> to vector<64x128xf32>
    %385 = arith.mulf %382, %384 : vector<64x128xf32>
    %c8_i32_238 = arith.constant 8 : i32
    %386 = tpu.dynamic_rotate %381 by %c8_i32_238 dim 1 : vector<64x128xf32>, i32 -> vector<64x128xf32>
    %c1_239 = arith.constant 1 : index
    %c0_240 = arith.constant 0 : index
    %387 = vector.load %arg3[%c1_239, %c0_240] : memref<9x128xf32, #tpu.memory_space<vmem>>, vector<1x128xf32>
    %388 = vector.broadcast %387 : vector<1x128xf32> to vector<64x128xf32>
    %389 = arith.mulf %386, %388 : vector<64x128xf32>
    %c7_i32_241 = arith.constant 7 : i32
    %390 = tpu.dynamic_rotate %381 by %c7_i32_241 dim 1 : vector<64x128xf32>, i32 -> vector<64x128xf32>
    %c2_242 = arith.constant 2 : index
    %c0_243 = arith.constant 0 : index
    %391 = vector.load %arg3[%c2_242, %c0_243] : memref<9x128xf32, #tpu.memory_space<vmem>>, vector<1x128xf32>
    %392 = vector.broadcast %391 : vector<1x128xf32> to vector<64x128xf32>
    %393 = arith.mulf %390, %392 : vector<64x128xf32>
    %c1_i32_244 = arith.constant 1 : i32
    %394 = tpu.dynamic_rotate %381 by %c1_i32_244 dim 1 : vector<64x128xf32>, i32 -> vector<64x128xf32>
    %c3_245 = arith.constant 3 : index
    %c0_246 = arith.constant 0 : index
    %395 = vector.load %arg3[%c3_245, %c0_246] : memref<9x128xf32, #tpu.memory_space<vmem>>, vector<1x128xf32>
    %396 = vector.broadcast %395 : vector<1x128xf32> to vector<64x128xf32>
    %397 = arith.mulf %394, %396 : vector<64x128xf32>
    %c127_i32_247 = arith.constant 127 : i32
    %398 = tpu.dynamic_rotate %381 by %c127_i32_247 dim 1 : vector<64x128xf32>, i32 -> vector<64x128xf32>
    %c5_248 = arith.constant 5 : index
    %c0_249 = arith.constant 0 : index
    %399 = vector.load %arg3[%c5_248, %c0_249] : memref<9x128xf32, #tpu.memory_space<vmem>>, vector<1x128xf32>
    %400 = vector.broadcast %399 : vector<1x128xf32> to vector<64x128xf32>
    %401 = arith.mulf %398, %400 : vector<64x128xf32>
    %c121_i32_250 = arith.constant 121 : i32
    %402 = tpu.dynamic_rotate %381 by %c121_i32_250 dim 1 : vector<64x128xf32>, i32 -> vector<64x128xf32>
    %c6_251 = arith.constant 6 : index
    %c0_252 = arith.constant 0 : index
    %403 = vector.load %arg3[%c6_251, %c0_252] : memref<9x128xf32, #tpu.memory_space<vmem>>, vector<1x128xf32>
    %404 = vector.broadcast %403 : vector<1x128xf32> to vector<64x128xf32>
    %405 = arith.mulf %402, %404 : vector<64x128xf32>
    %c120_i32_253 = arith.constant 120 : i32
    %406 = tpu.dynamic_rotate %381 by %c120_i32_253 dim 1 : vector<64x128xf32>, i32 -> vector<64x128xf32>
    %c7_254 = arith.constant 7 : index
    %c0_255 = arith.constant 0 : index
    %407 = vector.load %arg3[%c7_254, %c0_255] : memref<9x128xf32, #tpu.memory_space<vmem>>, vector<1x128xf32>
    %408 = vector.broadcast %407 : vector<1x128xf32> to vector<64x128xf32>
    %409 = arith.mulf %406, %408 : vector<64x128xf32>
    %c119_i32_256 = arith.constant 119 : i32
    %410 = tpu.dynamic_rotate %381 by %c119_i32_256 dim 1 : vector<64x128xf32>, i32 -> vector<64x128xf32>
    %c8_257 = arith.constant 8 : index
    %c0_258 = arith.constant 0 : index
    %411 = vector.load %arg3[%c8_257, %c0_258] : memref<9x128xf32, #tpu.memory_space<vmem>>, vector<1x128xf32>
    %412 = vector.broadcast %411 : vector<1x128xf32> to vector<64x128xf32>
    %413 = arith.mulf %410, %412 : vector<64x128xf32>
    %414 = tpu.concatenate %385, %389, %393, %397, %381, %401, %405, %409, %413 in 0 : vector<64x128xf32>, vector<64x128xf32>, vector<64x128xf32>, vector<64x128xf32>, vector<64x128xf32>, vector<64x128xf32>, vector<64x128xf32>, vector<64x128xf32>, vector<64x128xf32> -> vector<576x128xf32>
    %415 = arith.truncf %414 : vector<576x128xf32> to vector<576x128xbf16>
    %c0_259 = arith.constant 0 : index
    %c0_260 = arith.constant 0 : index
    %416 = vector.load %arg18[%c0_259, %c0_260] : memref<64x576xbf16, #tpu.memory_space<vmem>>, vector<64x576xbf16>
    %cst_261 = arith.constant dense<0.000000e+00> : vector<64x128xf32>
    %417 = tpu.matmul %416, %415, %cst_261 {dimension_numbers = #tpu.dot_dimension_numbers<[1], [0], [0], [1], [0, 0, 1, 1], [], []>} : vector<64x576xbf16>, vector<576x128xbf16>, vector<64x128xf32> -> vector<64x128xf32>
    %c0_262 = arith.constant 0 : index
    %c0_263 = arith.constant 0 : index
    %418 = vector.load %arg19[%c0_262, %c0_263] : memref<64x1xf32, #tpu.memory_space<vmem>>, vector<64x1xf32>
    %419 = vector.broadcast %418 : vector<64x1xf32> to vector<64x128xf32>
    %420 = arith.addf %417, %419 : vector<64x128xf32>
    %c0_264 = arith.constant 0 : index
    %c0_265 = arith.constant 0 : index
    %421 = vector.load %arg20[%c0_264, %c0_265] : memref<64x128xf32, #tpu.memory_space<vmem>>, vector<64x128xf32>
    tpu.vector_store %arg20[%c0_264, %c0_265], %218 {strides = array<i32>} : memref<64x128xf32, #tpu.memory_space<vmem>>, vector<64x128xf32>,
    %c0_266 = arith.constant 0 : index
    %c0_267 = arith.constant 0 : index
    %422 = vector.load %arg21[%c0_266, %c0_267] : memref<64x128xf32, #tpu.memory_space<vmem>>, vector<64x128xf32>
    tpu.vector_store %arg21[%c0_266, %c0_267], %420 {strides = array<i32>} : memref<64x128xf32, #tpu.memory_space<vmem>>, vector<64x128xf32>,
    %c0_268 = arith.constant 0 : index
    %c0_269 = arith.constant 0 : index
    %423 = vector.load %arg22[%c0_268, %c0_269] : memref<4x128xf32, #tpu.memory_space<vmem>>, vector<4x128xf32>
    tpu.vector_store %arg22[%c0_268, %c0_269], %190 {strides = array<i32>} : memref<4x128xf32, #tpu.memory_space<vmem>>, vector<4x128xf32>,
    return
  }
}

</mosaic_0001>

<bundles_post_ra>
// kernel: vd_forward.1
= control target key start
LH: loop header
LB: loop body
LE: loop exit
PB: predicated region body
PF: predicated region fallthrough
CT: control target
= control target key end

     0   :  { %s7599_s0 = inlined_call_operand.vmem [shape: f32[64,128], index: 0, kind: input, shape index: {}]   ;;  %s7600_s1 = inlined_call_operand.vmem [shape: f32[64,128], index: 1, kind: input, shape index: {}]   ;;  %s7601_s2 = inlined_call_operand.vmem [shape: f32[2], index: 2, kind: input, shape index: {}]   ;;  %s7602_s3 = inlined_call_operand.hbm [shape: f32[9,128], index: 3, kind: input, shape index: {}]   ;;  %s7603_s4 = inlined_call_operand.vmem [shape: bf16[64,144], index: 4, kind: input, shape index: {}]   ;;  %s7604_s5 = inlined_call_operand.vmem [shape: bf16[64,72], index: 5, kind: input, shape index: {}]   ;;  %s7605_s6 = inlined_call_operand.vmem [shape: f32[64,1], index: 6, kind: input, shape index: {}]   ;;  %s7606_s7 = inlined_call_operand.vmem [shape: bf16[64,576], index: 7, kind: input, shape index: {}]   ;;  %s7607_s8 = inlined_call_operand.vmem [shape: f32[64,1], index: 8, kind: input, shape index: {}]   ;;  %s7608_s9 = inlined_call_operand.hbm [shape: bf16[8,576], index: 9, kind: input, shape index: {}]   ;;  %s7609_s10 = inlined_call_operand.vmem [shape: f32[8,1], index: 10, kind: input, shape index: {}]   ;;  %s7610_s11 = inlined_call_operand.vmem [shape: f32[64,4], index: 11, kind: input, shape index: {}]   ;;  %s7611_s12 = inlined_call_operand.vmem [shape: bf16[64,576], index: 12, kind: input, shape index: {}]   ;;  %s7612_s13 = inlined_call_operand.hbm [shape: bf16[64,144], index: 13, kind: input, shape index: {}]   ;;  %s7613_s14 = inlined_call_operand.hbm [shape: bf16[64,72], index: 14, kind: input, shape index: {}]   ;;  %s7614_s15 = inlined_call_operand.vmem [shape: f32[64,1], index: 15, kind: input, shape index: {}]   ;;  %s7615_s16 = inlined_call_operand.vmem [shape: bf16[64,576], index: 16, kind: input, shape index: {}]   ;;  %s7616_s17 = inlined_call_operand.vmem [shape: f32[64,1], index: 17, kind: input, shape index: {}]   ;;  %s7617_s18 = inlined_call_operand.vmem [shape: bf16[64,576], index: 18, kind: input, shape index: {}]   ;;  %s7618_s19 = inlined_call_operand.vmem [shape: f32[64,1], index: 19, kind: input, shape index: {}]   ;;  %s7619_s20 = inlined_call_operand.vmem [shape: f32[64,128], index: 20, kind: output, shape index: {0}]   ;;  %s7620_s21 = inlined_call_operand.vmem [shape: f32[64,128], index: 21, kind: output, shape index: {1}]   ;;  %s7621_s22 = inlined_call_operand.vmem [shape: f32[4,128], index: 22, kind: output, shape index: {2}]  }
   0x1   :  { %7642 = sst [smem:[#allocation15_spill]] %s7599_s0 }
   0x2   :  { %7643 = sst [smem:[#allocation16_spill]] %s7600_s1 }
   0x3   :  { %7644 = sst [smem:[#allocation17_spill]] %s7601_s2 }
   0x4   :  { %7645 = sst [smem:[#allocation18_spill]] %s7602_s3 }
   0x5   :  { %7646 = sst [smem:[#allocation19_spill]] %s7603_s4 }
   0x6   :  { %7647 = sst [smem:[#allocation20_spill]] %s7604_s5 }
   0x7   :  { %7648 = sst [smem:[#allocation21_spill]] %s7605_s6 }
   0x8   :  { %7649 = sst [smem:[#allocation22_spill]] %s7620_s21 }
   0x9   :  { %28 = vsyncpa [#allocation4], 0 }
   0xa   :  { %29 = vsyncpa [#allocation3], 0 }
   0xb   :  { %30 = vsyncpa [#allocation7], 0  ;;  %s7650_s29 = sld [smem:[#allocation17_spill]] }
  0x11   :  { %s42_s30 = sshll.u32 %s7650_s29, 4  ;;  %s43_s30 = int_to_ptr.vmem [resolvable:$true] %s42_s30 }
  0x12   :  { %31 = vsyncpa [#allocation10], 0  ;;  %s5061_s4 = smov [#allocation6]   ;;  %s4953_s5 = scalar_lea.hbm %s7608_s9, 320 }
  0x13   :  { %s74_s0 = sshll.u32 %s5061_s4, 4  ;;  %p4954_p0 = scmp.ne.s32.totalorder %s7608_s9, %s4953_s5  ;;  %s75_s0 = int_to_ptr.vmem [resolvable:$true] %s74_s0 }
  0x14   :  { %p4957_p1 = scmp.lt.u32.totalorder %s4953_s5, %s7608_s9 }
  0x16   :  { %p4959_p2 = pnand %p4957_p1, %p4954_p0 }
  0x18   :  { %4962 = shalt.err (!%p4959_p2)
}
  0x19   :  { %s4963_s2 = scalar_lea.vmem %s75_s0, 320  ;;  %p4968_p4 = scmp.lt.s32.totalorder %s75_s0, %s75_s0 }
  0x1a   :  { %p4964_p3 = scmp.ne.s32.totalorder %s75_s0, %s4963_s2  ;;  %p4969_p5 = scmp.lt.s32.totalorder %s4963_s2, %s4963_s2 }
  0x1c   :  { %p4970_p6 = por %p4969_p5, %p4968_p4 }
  0x1e   :  { %p4971_p7 = pnand %p4970_p6, %p4964_p3 }
  0x20   :  { %4974 = shalt.err (!%p4971_p7)
}
  0x21   :  { %77 = dma.hbm_to_vmem [thread:$0]  %s7608_s9, 320, %s75_s0, [#allocation7]  }
  0x22   :  { %s4975_s28 = scalar_lea.vmem %s43_s30, 16  ;;  %p4980_p9 = scmp.lt.s32.totalorder %s43_s30, %s43_s30 }
  0x23   :  { %p4976_p8 = scmp.ne.s32.totalorder %s43_s30, %s4975_s28  ;;  %p4981_p10 = scmp.lt.s32.totalorder %s4975_s28, %s4975_s28 }
  0x25   :  { %p4982_p11 = por %p4981_p10, %p4980_p9 }
  0x27   :  { %p4983_p12 = pnand %p4982_p11, %p4976_p8 }
  0x29   :  { %4986 = shalt.err (!%p4983_p12)
}
  0x2a   :  { %s5062_s29 = smov [#allocation2]   ;;  %s5063_s4 = smov [#allocation5]  }
  0x2b   :  { %45 = dma.vmem_to_smem %s43_s30, 16, %s5062_s29, [#allocation4]  }
  0x2c   :  { %s51_s23 = sshll.u32 %s5063_s4, 4  ;;  %s7651_s24 = sld [smem:[#allocation18_spill]]  ;;  %s52_s23 = int_to_ptr.vmem [resolvable:$true] %s51_s23 }
  0x32   :  { %s4987_s6 = scalar_lea.hbm %s7651_s24, 256 }
  0x33   :  { %p4988_p13 = scmp.ne.s32.totalorder %s7651_s24, %s4987_s6  ;;  %p4991_p0 = scmp.lt.u32.totalorder %s4987_s6, %s7651_s24 }
  0x35   :  { %p4993_p1 = pnand %p4991_p0, %p4988_p13 }
  0x37   :  { %4996 = shalt.err (!%p4993_p1)
}
  0x38   :  { %s4997_s2 = scalar_lea.vmem %s52_s23, 256  ;;  %p5002_p3 = scmp.lt.s32.totalorder %s52_s23, %s52_s23 }
  0x39   :  { %p4998_p2 = scmp.ne.s32.totalorder %s52_s23, %s4997_s2  ;;  %p5003_p4 = scmp.lt.s32.totalorder %s4997_s2, %s4997_s2 }
  0x3b   :  { %p5004_p5 = por %p5003_p4, %p5002_p3 }
  0x3d   :  { %p5005_p6 = pnand %p5004_p5, %p4998_p2 }
  0x3f   :  { %5008 = shalt.err (!%p5005_p6)
}
  0x40   :  { %s5064_s30 = smov 128   ;;  %s7631_s27 = smov 8  }
  0x41   :  { %57 = dma.hbm_to_vmem [thread:$0]  %s7651_s24, 256, %s52_s23, [#allocation3], %s5064_s30, %s5064_s30, %s7631_s27  }
  0x42   :  { %s5066_s29 = smov [#allocation8]   ;;  %s5067_s1 = smov [#allocation9]  }
  0x43   :  { %s89_s4 = sshll.u32 %s5066_s29, 4  ;;  %s101_s5 = sshll.u32 %s5067_s1, 4  ;;  %s90_s4 = int_to_ptr.vmem [resolvable:$true] %s89_s4  ;;  %s102_s5 = int_to_ptr.vmem [resolvable:$true] %s101_s5 }
  0x44   :  { %s5009_s26 = scalar_lea.hbm %s7612_s13, 1024 }
  0x45   :  { %p5010_p7 = scmp.ne.s32.totalorder %s7612_s13, %s5009_s26  ;;  %p5013_p8 = scmp.lt.u32.totalorder %s5009_s26, %s7612_s13 }
  0x47   :  { %p5015_p9 = pnand %p5013_p8, %p5010_p7 }
  0x49   :  { %5018 = shalt.err (!%p5015_p9)
}
  0x4a   :  { %s5019_s23 = scalar_lea.vmem %s90_s4, 1024  ;;  %p5024_p11 = scmp.lt.s32.totalorder %s90_s4, %s90_s4 }
  0x4b   :  { %p5020_p10 = scmp.ne.s32.totalorder %s90_s4, %s5019_s23  ;;  %p5025_p12 = scmp.lt.s32.totalorder %s5019_s23, %s5019_s23 }
  0x4d   :  { %p5026_p13 = por %p5025_p12, %p5024_p11 }
  0x4f   :  { %p5027_p0 = pnand %p5026_p13, %p5020_p10 }
  0x51   :  { %5030 = shalt.err (!%p5027_p0)
}
  0x52   :  { %95 = dma.hbm_to_vmem [thread:$0]  %s7612_s13, 1024, %s90_s4, [#allocation7], %s5064_s30, %s5064_s30, %s7631_s27  }
  0x53   :  { %s5031_s21 = scalar_lea.hbm %s7613_s14, 512 }
  0x54   :  { %p5032_p1 = scmp.ne.s32.totalorder %s7613_s14, %s5031_s21  ;;  %p5035_p2 = scmp.lt.u32.totalorder %s5031_s21, %s7613_s14 }
  0x56   :  { %p5037_p3 = pnand %p5035_p2, %p5032_p1 }
  0x58   :  { %5040 = shalt.err (!%p5037_p3)
}
  0x59   :  { %s5041_s9 = scalar_lea.vmem %s102_s5, 512  ;;  %p5046_p5 = scmp.lt.s32.totalorder %s102_s5, %s102_s5 }
  0x5a   :  { %p5042_p4 = scmp.ne.s32.totalorder %s102_s5, %s5041_s9  ;;  %p5047_p6 = scmp.lt.s32.totalorder %s5041_s9, %s5041_s9 }
  0x5c   :  { %p5048_p7 = por %p5047_p6, %p5046_p5 }
  0x5e   :  { %p5049_p8 = pnand %p5048_p7, %p5042_p4 }
  0x60   :  { %5052 = shalt.err (!%p5049_p8)
}
  0x61   :  { %s5068_s13 = smov 64   ;;  %s5069_s30 = smov 4  }
  0x62   :  { %107 = dma.hbm_to_vmem [thread:$0]  %s7613_s14, 512, %s102_s5, [#allocation10], %s5068_s13, %s5068_s13, %s5069_s30  }
  0x63   :  { %5053 = dma.done.wait [#allocation4], 16  }
  0x64   :  { %5054 = vsyncadd [#allocation4], 4294967280 }
  0x65   :  { %5055 = dma.done.wait [#allocation3], 256  }
  0x66   :  { %5056 = vsyncadd [#allocation3], 4294967040 }
  0x67   :  { %5057 = dma.done.wait [#allocation7], 1344  }
  0x68   :  { %5058 = vsyncadd [#allocation7], 4294965952 }
  0x69   :  { %5059 = dma.done.wait [#allocation10], 512  }
  0x6a   :  { %5060 = vsyncadd [#allocation10], 4294966784 }
  0x6b   :  { %133 = sfence }
  0x6c   :  { %s7652_s24 = sld [smem:[#allocation15_spill]]  ;;  %s7653_s29 = sld [smem:[#allocation16_spill]]  ;;  %v5070_v5 = vmov 0   ;;  %vm447_vm0 = vcmask 130048   ;;  %vm329_vm1 = vcmask 588800   ;;  %vm342_vm2 = vcmask 1043456  }
  0x6d   :  { %460 = vmatprep.subr.bf16.mxu1 %v5070_v5  ;;  %4749 = vset.pattern.permute.xlu1 %v5070_v5  ;;  %s5071_s6 = smov 9   ;;  %s5278_s25 = sld [smem:[#allocation2]]  ;;  %v5364_v28 = vld [vmem:[#allocation5] ss:$0 sm:$0xff]  ;;  %v5366_v29 = vld [vmem:[#allocation5 + $0x1] ss:$0 sm:$0xff] }
  0x6e   :  { %4748 = vset.pattern.permute.xlu0 %v5070_v5  ;;  %s5072_s26 = smov 7   ;;  %s5284_s9 = sld [smem:[#allocation2 + $0x1]]  ;;  %v5372_v37 = vld [vmem:[#allocation5 + $0x2] ss:$0 sm:$0xff]  ;;  %v5377_v43 = vld [vmem:[#allocation5 + $0x3] ss:$0 sm:$0xff] }
  0x6f   :  { %s7635_s13 = smov 1   ;;  %s7629_s30 = smov 127   ;;  %v5383_v52 = vld [vmem:[#allocation5 + $0x5] ss:$0 sm:$0xff]  ;;  %v5388_v57 = vld [vmem:[#allocation5 + $0x6] ss:$0 sm:$0xff] }
  0x70   :  { %s7633_s4 = smov 121   ;;  %s7654_s23 = sld [smem:[#allocation19_spill]]  ;;  %vm989_vm3 = vcmask 523264   ;;  %vm5082_vm4 = vmmov 0  }
  0x71   :  { %s7639_s3 = smov 120   ;;  %s7637_s28 = smov 119  }
  0x72   :  { %v135_v0 = vld [vmem:[%s7652_s24] sm:$0xff]  ;;  %v136_v2 = vld [vmem:[%s7652_s24 + $0x8] sm:$0xff]  ;;  %s7655_s14 = sld [smem:[#allocation20_spill]]  ;;  %s7656_s2 = sld [smem:[#allocation21_spill]] }
  0x73   :  { %v143_v1 = vld [vmem:[%s7653_s29] sm:$0xff]  ;;  %v144_v4 = vld [vmem:[%s7653_s29 + $0x8] sm:$0xff]  ;;  %v155_v12 = vstv %s5278_s25  ;;  %s7659_s21 = smov 8   ;;  %s7660_s1 = smov 120  }
  0x74   :  { %v163_v3 = vsub.f32 %v143_v1, %v135_v0  ;;  %v164_v6 = vsub.f32 %v144_v4, %v136_v2  ;;  %v159_v9 = vmax.f32 %v143_v1, 0.0  ;;  %v7641_v14 = vstv %s5284_s9  ;;  %v5398_v2 = vld [vmem:[#allocation5 + $0x7] ss:$0 sm:$0xff]  ;;  %s7662_s5 = smov 119  }
  0x76   :  { %v5266_v7 = vand.u32 2147483647, %v163_v3  ;;  %v5272_v8 = vand.u32 2147483647, %v164_v6  ;;  %v160_v11 = vmin.f32 %v159_v9, 1.0 }
  0x77   :  { %v4772_v16 = vld [vmem:[%s7654_s23 + $0x4] ss:$8 sps:$4 sm:$0xff]  }
  0x78   :  { %178 = vrot.lane.b32.xlu1 %v5266_v7, %s7631_s27  ;;  %167 = vrot.lane.b32.xlu0 %v5266_v7, %s5071_s6  ;;  %v259_v10 = vpack.c.bf16 %v5272_v8, %v5266_v7  ;;  %v161_v13 = vmul.f32 %v160_v11, %v155_v12  ;;  %v4776_v17 = vld [vmem:[%s7655_s14] sm:$0xff]   ;;  %v526_v18 = vld [vmem:[%s7656_s2 + $0x8] sm:$0xff] }
  0x79   :  { %4067 = vmatprep.mubr.msk.bf16.mxu1 %vm447_vm0, %v4772_v16  ;;  %4622 = vmatprep.mubr.msk.bf16.mxu0 %vm329_vm1, %v4776_v17  ;;  %v525_v19 = vld [vmem:[%s7656_s2] sm:$0xff]  ;;  %v527_v20 = vld [vmem:[%s7656_s2 + $0x10] sm:$0xff]  ;;  %v528_v21 = vld [vmem:[%s7656_s2 + $0x18] sm:$0xff] }
  0x7a   :  { %v5306_v15 = vadd.f32 %v161_v13, %v7641_v14  ;;  %v529_v22 = vld [vmem:[%s7656_s2 + $0x20] sm:$0xff]  ;;  %v530_v23 = vld [vmem:[%s7656_s2 + $0x28] sm:$0xff]  ;;  %v531_v24 = vld [vmem:[%s7656_s2 + $0x30] sm:$0xff] }
  0x7b   :  { %v532_v25 = vld [vmem:[%s7656_s2 + $0x38] sm:$0xff]  ;;  %v5405_v16 = vld [vmem:[#allocation5 + $0x8] ss:$0 sm:$0xff] }
  0x7c   :  { %180 = vrot.lane.b32.xlu1 %v5272_v8, %s7631_s27  ;;  %169 = vrot.lane.b32.xlu0 %v5272_v8, %s5071_s6 }
  0x80   :  { %191 = vrot.lane.b32.xlu1 %v5272_v8, %s5072_s26  ;;  %189 = vrot.lane.b32.xlu0 %v5266_v7, %s5072_s26 }
  0x84   :  { %202 = vrot.lane.b32.xlu1 %v5272_v8, %s7635_s13  ;;  %200 = vrot.lane.b32.xlu0 %v5266_v7, %s7635_s13 }
  0x88   :  { %213 = vrot.lane.b32.xlu1 %v5272_v8, %s7629_s30  ;;  %211 = vrot.lane.b32.xlu0 %v5266_v7, %s7629_s30 }
  0x8c   :  { %224 = vrot.lane.b32.xlu1 %v5272_v8, %s7633_s4  ;;  %222 = vrot.lane.b32.xlu0 %v5266_v7, %s7633_s4 }
  0x90   :  { %275 = vrot.lane.b32.xlu1 %v5306_v15, %s7631_s27  ;;  %272 = vrot.lane.b32.xlu0 %v5306_v15, %s5071_s6 }
  0x94   :  { %235 = vrot.lane.b32.xlu1 %v5272_v8, %s7639_s3  ;;  %233 = vrot.lane.b32.xlu0 %v5266_v7, %s7639_s3 }
  0x98   :  { %281 = vrot.lane.b32.xlu1 %v5306_v15, %s7635_s13  ;;  %278 = vrot.lane.b32.xlu0 %v5306_v15, %s5072_s26  ;;  %s7661_s13 = smov 127  }
  0x9c   :  { %246 = vrot.lane.b32.xlu1 %v5272_v8, %s7637_s28  ;;  %244 = vrot.lane.b32.xlu0 %v5266_v7, %s7637_s28 }
  0xa0   :  { %284 = vrot.lane.b32.xlu0 %v5306_v15, %s7629_s30  ;;  %287 = vrot.lane.b32.xlu1 %v5306_v15, %s7633_s4  ;;  %s7664_s30 = sld [smem:[#allocation22_spill]] }
  0xa4   :  { %290 = vrot.lane.b32.xlu0 %v5306_v15, %s7639_s3  ;;  %293 = vrot.lane.b32.xlu1 %v5306_v15, %s7637_s28 }
  0xa8   :  { %540 = vperm.xlu1 %4749, %v526_v18   ;;  %535 = vperm.xlu0 %4748, %v525_v19  }
  0xac   :  { %545 = vperm.xlu1 %4749, %v527_v20   ;;  %550 = vperm.xlu0 %4748, %v528_v21  }
  0xb0   :  { %555 = vperm.xlu1 %4749, %v529_v22   ;;  %560 = vperm.xlu0 %4748, %v530_v23  }
  0xb4   :  { %565 = vperm.xlu1 %4749, %v531_v24   ;;  %570 = vperm.xlu0 %4748, %v532_v25   ;;  %v4770_v25 = vld [vmem:[%s7654_s23] ss:$8 sps:$4 sm:$0xff]  }
  0xea   :  { %v179_v26 = vpop.permute.xlu1 %178  ;;  %v168_v27 = vpop.permute.xlu0 %167 }
  0xeb   :  { %v176_v32 = vmul.f32 %v5364_v28, %v168_v27  ;;  %v187_v34 = vmul.f32 %v5366_v29, %v179_v26 }
  0xee   :  { %v181_v30 = vpop.permute.xlu1 %180  ;;  %v170_v31 = vpop.permute.xlu0 %169 }
  0xef   :  { %v177_v33 = vmul.f32 %v5364_v28, %v170_v31  ;;  %v188_v35 = vmul.f32 %v5366_v29, %v181_v30  ;;  %v4773_v30 = vld [vmem:[%s7654_s23 + $0x14] ss:$8 sps:$4 sm:$0xff]  }
  0xf1   :  { %v255_v36 = vpack.c.bf16 %v177_v33, %v176_v32  ;;  %v256_v40 = vpack.c.bf16 %v188_v35, %v187_v34 }
  0xf2   :  { %v192_v38 = vpop.permute.xlu1 %191  ;;  %v190_v39 = vpop.permute.xlu0 %189 }
  0xf3   :  { %461 = vmatpush1.bf16.msra.mxu1 %v255_v36  ;;  %v199_v41 = vmul.f32 %v5372_v37, %v192_v38  ;;  %v198_v42 = vmul.f32 %v5372_v37, %v190_v39 }
  0xf4   :  { %462 = vmatprep.subr.bf16.mxu1 %v5070_v5 }
  0xf5   :  { %v257_v46 = vpack.c.bf16 %v199_v41, %v198_v42  ;;  %v4778_v41 = vld [vmem:[%s7654_s23 + $0x24] ss:$8 sps:$4 sm:$0xff]  }
  0xf6   :  { %v203_v44 = vpop.permute.xlu1 %202  ;;  %v201_v45 = vpop.permute.xlu0 %200 }
  0xf7   :  { %463 = vmatpush1.bf16.msra.mxu1 %v256_v40  ;;  %v210_v47 = vmul.f32 %v5377_v43, %v203_v44  ;;  %v209_v48 = vmul.f32 %v5377_v43, %v201_v45  ;;  %v4775_v40 = vld [vmem:[%s7654_s23 + $0x10] ss:$8 sps:$4 sm:$0xff]   ;;  %v4777_v44 = vld [vmem:[%s7655_s14 + $0x8] sm:$0xff]  }
  0xf8   :  { %464 = vmatprep.subr.bf16.mxu1 %v5070_v5  ;;  %v4781_v45 = vld [vmem:[%s7655_s14 + $0x10] sm:$0xff]  }
  0xf9   :  { %v258_v51 = vpack.c.bf16 %v210_v47, %v209_v48  ;;  %v4783_v47 = vld [vmem:[%s7654_s23 + $0x34] ss:$8 sps:$4 sm:$0xff]  }
  0xfa   :  { %v214_v49 = vpop.permute.xlu1 %213  ;;  %v212_v50 = vpop.permute.xlu0 %211  ;;  %v4782_v48 = vld [vmem:[%s7655_s14 + $0x18] sm:$0xff]   ;;  %s7658_s14 = smov 121  }
  0xfb   :  { %465 = vmatpush1.bf16.msra.mxu1 %v257_v46  ;;  %v221_v55 = vmul.f32 %v5383_v52, %v214_v49  ;;  %v220_v56 = vmul.f32 %v5383_v52, %v212_v50  ;;  %v4780_v46 = vld [vmem:[%s7654_s23 + $0x20] ss:$8 sps:$4 sm:$0xff]   ;;  %v4785_v49 = vld [vmem:[%s7654_s23 + $0x30] ss:$8 sps:$4 sm:$0xff]   ;;  %s7657_s23 = smov 1  }
  0xfc   :  { %466 = vmatprep.subr.bf16.mxu1 %v5070_v5 }
  0xfd   :  { %v260_v62 = vpack.c.bf16 %v221_v55, %v220_v56 }
  0xfe   :  { %v225_v53 = vpop.permute.xlu1 %224  ;;  %v223_v54 = vpop.permute.xlu0 %222 }
  0xff   :  { %467 = vmatpush1.bf16.msra.mxu1 %v258_v51  ;;  %v232_v63 = vmul.f32 %v5388_v57, %v225_v53  ;;  %v231_v0 = vmul.f32 %v5388_v57, %v223_v54 }
 0x100   :  { %468 = vmatprep.subr.bf16.mxu1 %v5070_v5 }
 0x101   :  { %v261_v6 = vpack.c.bf16 %v232_v63, %v231_v0 }
 0x102   :  { %v276_v58 = vpop.permute.xlu1 %275  ;;  %v273_v59 = vpop.permute.xlu0 %272 }
 0x103   :  { %v277_v60 = vmul.f32 %v5366_v29, %v276_v58  ;;  %v274_v61 = vmul.f32 %v5364_v28, %v273_v59  ;;  %469 = vmatpush1.bf16.msra.mxu1 %v259_v10 }
 0x104   :  { %470 = vmatprep.subr.bf16.mxu1 %v5070_v5 }
 0x105   :  { %v296_v1 = vpack.c.bf16 %v277_v60, %v274_v61 }
 0x106   :  { %v236_v3 = vpop.permute.xlu1 %235  ;;  %v234_v4 = vpop.permute.xlu0 %233 }
 0x107   :  { %4612 = vmatprep.subr.bf16.mxu0 %v296_v1  ;;  %471 = vmatpush1.bf16.msra.mxu1 %v260_v62  ;;  %v243_v7 = vmul.f32 %v5398_v2, %v236_v3  ;;  %v242_v8 = vmul.f32 %v5398_v2, %v234_v4 }
 0x108   :  { %4613 = vmatpush3.bf16.msra.mxu0 %v296_v1  ;;  %472 = vmatprep.subr.bf16.mxu1 %v5070_v5 }
 0x109   :  { %v262_v17 = vpack.c.bf16 %v243_v7, %v242_v8 }
 0x10a   :  { %v282_v9 = vpop.permute.xlu1 %281  ;;  %v279_v10 = vpop.permute.xlu0 %278 }
 0x10b   :  { %v283_v11 = vmul.f32 %v5377_v43, %v282_v9  ;;  %v280_v13 = vmul.f32 %v5372_v37, %v279_v10  ;;  %473 = vmatpush1.bf16.msra.mxu1 %v261_v6 }
 0x10c   :  { %474 = vmatprep.subr.bf16.mxu1 %v5070_v5 }
 0x10d   :  { %v297_v18 = vpack.c.bf16 %v283_v11, %v280_v13 }
 0x10e   :  { %v247_v19 = vpop.permute.xlu1 %246  ;;  %v245_v20 = vpop.permute.xlu0 %244 }
 0x10f   :  { %v254_v21 = vmul.f32 %v5405_v16, %v247_v19  ;;  %v253_v22 = vmul.f32 %v5405_v16, %v245_v20  ;;  %4614 = vmatprep.subr.bf16.mxu0 %v297_v18  ;;  %475 = vmatpush1.bf16.msra.mxu1 %v262_v17 }
 0x110   :  { %4615 = vmatpush3.bf16.msra.mxu0 %v297_v18  ;;  %476 = vmatprep.subr.bf16.mxu1 %v5070_v5 }
 0x111   :  { %v263_v23 = vpack.c.bf16 %v254_v21, %v253_v22 }
 0x112   :  { %v285_v24 = vpop.permute.xlu0 %284  ;;  %v288_v26 = vpop.permute.xlu1 %287 }
 0x113   :  { %v286_v27 = vmul.f32 %v5383_v52, %v285_v24  ;;  %477 = vmatpush1.bf16.msra.mxu1 %v263_v23  ;;  %v289_v32 = vmul.f32 %v5388_v57, %v288_v26 }
 0x115   :  { %v298_v31 = vpack.c.bf16 %v286_v27, %v5306_v15 }
 0x116   :  { %v291_v33 = vpop.permute.xlu0 %290  ;;  %493 = vmatmul.mubr.bf16.vlgmr.msra.gmra.mrb[0].mxu1 %v4770_v25  ;;  %v294_v34 = vpop.permute.xlu1 %293 }
 0x117   :  { %v292_v35 = vmul.f32 %v5398_v2, %v291_v33  ;;  %4616 = vmatprep.subr.bf16.mxu0 %v298_v31  ;;  %v295_v36 = vmul.f32 %v5405_v16, %v294_v34  ;;  %4068 = vmatprep.mubr.msk.bf16.mxu1 %vm447_vm0, %v4773_v30 }
 0x118   :  { %4617 = vmatpush3.bf16.msra.mxu0 %v298_v31 }
 0x119   :  { %v299_v38 = vpack.c.bf16 %v292_v35, %v289_v32  ;;  %v300_v39 = vpack.c.bf16 %v295_v36, %v295_v36 }
 0x11b   :  { %4618 = vmatprep.subr.bf16.mxu0 %v299_v38  ;;  %v344_v42 = vsel %vm342_vm2, %v300_v39, 0 }
 0x11c   :  { %4619 = vmatpush3.bf16.msra.mxu0 %v299_v38 }
 0x11d   :  { %4724 = vmatprep.subr.msk.bf16.mxu0 %vm342_vm2, %v300_v39 }
 0x11e   :  { %501 = vmatmul.mubr.bf16.gmra.mrb[4].mxu1 %v4775_v40 }
 0x11f   :  { %4069 = vmatprep.mubr.msk.bf16.mxu1 %vm447_vm0, %v4778_v41 }
 0x120   :  { %4621 = vmatpush3.bf16.msra.mxu0 %v344_v42 }
 0x123   :  { %4623 = vmatmul.mubr.msk.bf16.vlgmr.msra.gmra.mrb[0].mxu0 %vm329_vm1, %v4777_v44 }
 0x124   :  { %4626 = vmatprep.mubr.msk.bf16.mxu0 %vm329_vm1, %v4781_v45 }
 0x126   :  { %509 = vmatmul.mubr.bf16.gmra.mrb[8].mxu1 %v4780_v46 }
 0x127   :  { %4070 = vmatprep.mubr.msk.bf16.mxu1 %vm447_vm0, %v4783_v47  ;;  %v536_v63 = vpop.permute.xlu0 %535  ;;  %v541_v10 = vpop.permute.xlu1 %540 }
 0x12b   :  { %4627 = vmatmul.mubr.msk.bf16.gmra.mrb[4].mxu0 %vm329_vm1, %v4782_v48  ;;  %v546_v34 = vpop.permute.xlu1 %545  ;;  %v551_v36 = vpop.permute.xlu0 %550 }
 0x12e   :  { %517 = vmatmul.mubr.bf16.gmra.mrb[12].mxu1 %v4785_v49 }
 0x12f   :  { %v556_v41 = vpop.permute.xlu1 %555  ;;  %v561_v44 = vpop.permute.xlu0 %560 }
 0x133   :  { %v566_v48 = vpop.permute.xlu1 %565 }
 0x1e9   :  { %v494_v50 = vpop.f32.mrb[0].mxu1 }
 0x1ea   :  { %v496_v51 = vpop.f32.mrb[1].mxu1 }
 0x1eb   :  { %v497_v53 = vpop.f32.mrb[2].mxu1 }
 0x1ec   :  { %v499_v54 = vpop.f32.mrb[3].mxu1 }
 0x1f1   :  { %v502_v55 = vpop.f32.mrb[4].mxu1 }
 0x1f2   :  { %v504_v56 = vpop.f32.mrb[5].mxu1 }
 0x1f3   :  { %v505_v58 = vpop.f32.mrb[6].mxu1  ;;  %v4796_v56 = vld [vmem:[%s7606_s7 + $0xc] ss:$20 sps:$4 sm:$0xff]  }
 0x1f4   :  { %v507_v59 = vpop.f32.mrb[7].mxu1  ;;  %1099 = vmatprep.mubr.bf16.mxu1 %v4796_v56 }
 0x1f6   :  { %v4624_v60 = vpop.f32.mrb[0].mxu0 }
 0x1f7   :  { %v503_v61 = vadd.f32 %v4624_v60, %v502_v55  ;;  %v380_v62 = vpop.f32.mrb[1].mxu0  ;;  %v4788_v55 = vld [vmem:[%s7606_s7 + $0x4] ss:$20 sps:$4 sm:$0xff]  }
 0x1f8   :  { %v495_v0 = vadd.f32 %v494_v50, %v380_v62  ;;  %v4625_v1 = vpop.f32.mrb[2].mxu0  ;;  %v571_v50 = vpop.permute.xlu0 %570  ;;  %1034 = vmatprep.mubr.bf16.mxu0 %v4788_v55 }
 0x1f9   :  { %v506_v3 = vadd.f32 %v4625_v1, %v505_v58  ;;  %v383_v4 = vpop.f32.mrb[3].mxu0  ;;  %v510_v6 = vpop.f32.mrb[8].mxu1  ;;  %v575_v35 = vadd.f32 %v546_v34, %v503_v61 }
 0x1fa   :  { %v573_v7 = vadd.f32 %v536_v63, %v495_v0  ;;  %v498_v8 = vadd.f32 %v497_v53, %v383_v4  ;;  %v512_v9 = vpop.f32.mrb[9].mxu1 }
 0x1fb   :  { %v513_v11 = vpop.f32.mrb[10].mxu1  ;;  %v576_v38 = vadd.f32 %v551_v36, %v506_v3  ;;  %v5484_v39 = vmax.f32 %v575_v35, 0.0 }
 0x1fc   :  { %v5454_v13 = vmax.f32 %v573_v7, 0.0  ;;  %v574_v17 = vadd.f32 %v541_v10, %v498_v8  ;;  %v515_v18 = vpop.f32.mrb[11].mxu1  ;;  %v841_v8 = vld [vmem:[%s7607_s8] sm:$0xff]  ;;  %v842_v10 = vld [vmem:[%s7607_s8 + $0x8] sm:$0xff] }
 0x1fd   :  { %v5488_v40 = vmax.f32 %v576_v38, 0.0 }
 0x1fe   :  { %v5456_v19 = vmax.f32 %v574_v17, 0.0  ;;  %v4628_v20 = vpop.f32.mrb[4].mxu0  ;;  %637 = vrot.lane.b32.xlu1 %v5454_v13, %s5072_s26 }
 0x1ff   :  { %v396_v21 = vpop.f32.mrb[5].mxu0 }
 0x200   :  { %v511_v22 = vadd.f32 %v510_v6, %v396_v21  ;;  %v4629_v23 = vpop.f32.mrb[6].mxu0  ;;  %639 = vrot.lane.b32.xlu0 %v5456_v19, %s5072_s26 }
 0x201   :  { %v399_v24 = vpop.f32.mrb[7].mxu0  ;;  %v518_v25 = vpop.f32.mrb[12].mxu1 }
 0x202   :  { %v514_v26 = vadd.f32 %v513_v11, %v399_v24  ;;  %v519_v27 = vadd.f32 %v4628_v20, %v518_v25  ;;  %v520_v30 = vpop.f32.mrb[13].mxu1  ;;  %589 = vrot.lane.b32.xlu1 %v5454_v13, %s5071_s6  ;;  %v577_v42 = vadd.f32 %v556_v41, %v511_v22  ;;  %v843_v20 = vld [vmem:[%s7607_s8 + $0x10] sm:$0xff]  ;;  %v797_v25 = vpack.c.bf16 %v5456_v19, %v5454_v13 }
 0x203   :  { %v521_v31 = vpop.f32.mrb[14].mxu1  ;;  %v846_v30 = vld [vmem:[%s7607_s8 + $0x28] sm:$0xff] }
 0x204   :  { %v522_v32 = vadd.f32 %v4629_v23, %v521_v31  ;;  %591 = vrot.lane.b32.xlu0 %v5456_v19, %s5071_s6  ;;  %v523_v33 = vpop.f32.mrb[15].mxu1  ;;  %v578_v45 = vadd.f32 %v561_v44, %v514_v26  ;;  %v5512_v46 = vmax.f32 %v577_v42, 0.0  ;;  %v579_v49 = vadd.f32 %v566_v48, %v519_v27  ;;  %v844_v23 = vld [vmem:[%s7607_s8 + $0x18] sm:$0xff]  ;;  %v845_v26 = vld [vmem:[%s7607_s8 + $0x20] sm:$0xff] }
 0x206   :  { %661 = vrot.lane.b32.xlu1 %v5454_v13, %s7657_s23  ;;  %v5516_v47 = vmax.f32 %v578_v45, 0.0  ;;  %v580_v51 = vadd.f32 %v571_v50, %v522_v32  ;;  %v5536_v53 = vmax.f32 %v579_v49, 0.0  ;;  %v848_v32 = vld [vmem:[%s7607_s8 + $0x38] sm:$0xff] }
 0x208   :  { %663 = vrot.lane.b32.xlu0 %v5456_v19, %s7657_s23  ;;  %v5540_v54 = vmax.f32 %v580_v51, 0.0 }
 0x20a   :  { %709 = vrot.lane.b32.xlu1 %v5454_v13, %s7658_s14 }
 0x20c   :  { %711 = vrot.lane.b32.xlu0 %v5456_v19, %s7658_s14 }
 0x20e   :  { %613 = vrot.lane.b32.xlu1 %v5454_v13, %s7659_s21 }
 0x210   :  { %615 = vrot.lane.b32.xlu0 %v5456_v19, %s7659_s21 }
 0x212   :  { %733 = vrot.lane.b32.xlu1 %v5454_v13, %s7660_s1 }
 0x214   :  { %735 = vrot.lane.b32.xlu0 %v5456_v19, %s7660_s1 }
 0x216   :  { %685 = vrot.lane.b32.xlu1 %v5454_v13, %s7661_s13 }
 0x218   :  { %687 = vrot.lane.b32.xlu0 %v5456_v19, %s7661_s13 }
 0x21a   :  { %641 = vrot.lane.b32.xlu1 %v5484_v39, %s5072_s26 }
 0x21c   :  { %643 = vrot.lane.b32.xlu0 %v5488_v40, %s5072_s26 }
 0x21e   :  { %593 = vrot.lane.b32.xlu1 %v5484_v39, %s5071_s6 }
 0x220   :  { %595 = vrot.lane.b32.xlu0 %v5488_v40, %s5071_s6 }
 0x222   :  { %665 = vrot.lane.b32.xlu1 %v5484_v39, %s7657_s23 }
 0x224   :  { %667 = vrot.lane.b32.xlu0 %v5488_v40, %s7657_s23 }
 0x226   :  { %713 = vrot.lane.b32.xlu1 %v5484_v39, %s7658_s14 }
 0x228   :  { %715 = vrot.lane.b32.xlu0 %v5488_v40, %s7658_s14 }
 0x22a   :  { %617 = vrot.lane.b32.xlu1 %v5484_v39, %s7659_s21 }
 0x22c   :  { %619 = vrot.lane.b32.xlu0 %v5488_v40, %s7659_s21 }
 0x22e   :  { %737 = vrot.lane.b32.xlu1 %v5484_v39, %s7660_s1 }
 0x230   :  { %739 = vrot.lane.b32.xlu0 %v5488_v40, %s7660_s1 }
 0x232   :  { %645 = vrot.lane.b32.xlu1 %v5512_v46, %s5072_s26 }
 0x234   :  { %647 = vrot.lane.b32.xlu0 %v5516_v47, %s5072_s26 }
 0x236   :  { %597 = vrot.lane.b32.xlu1 %v5512_v46, %s5071_s6 }
 0x238   :  { %599 = vrot.lane.b32.xlu0 %v5516_v47, %s5071_s6 }
 0x23a   :  { %669 = vrot.lane.b32.xlu1 %v5512_v46, %s7657_s23 }
 0x23c   :  { %671 = vrot.lane.b32.xlu0 %v5516_v47, %s7657_s23 }
 0x23e   :  { %717 = vrot.lane.b32.xlu1 %v5512_v46, %s7658_s14 }
 0x240   :  { %719 = vrot.lane.b32.xlu0 %v5516_v47, %s7658_s14 }
 0x242   :  { %621 = vrot.lane.b32.xlu1 %v5512_v46, %s7659_s21 }
 0x244   :  { %623 = vrot.lane.b32.xlu0 %v5516_v47, %s7659_s21 }
 0x246   :  { %649 = vrot.lane.b32.xlu1 %v5536_v53, %s5072_s26 }
 0x248   :  { %651 = vrot.lane.b32.xlu0 %v5540_v54, %s5072_s26 }
 0x24a   :  { %601 = vrot.lane.b32.xlu1 %v5536_v53, %s5071_s6 }
 0x24c   :  { %603 = vrot.lane.b32.xlu0 %v5540_v54, %s5071_s6 }
 0x24e   :  { %689 = vrot.lane.b32.xlu1 %v5484_v39, %s7661_s13 }
 0x250   :  { %691 = vrot.lane.b32.xlu0 %v5488_v40, %s7661_s13 }
 0x252   :  { %673 = vrot.lane.b32.xlu1 %v5536_v53, %s7657_s23 }
 0x254   :  { %675 = vrot.lane.b32.xlu0 %v5540_v54, %s7657_s23 }
 0x256   :  { %721 = vrot.lane.b32.xlu1 %v5536_v53, %s7658_s14 }
 0x258   :  { %723 = vrot.lane.b32.xlu0 %v5540_v54, %s7658_s14 }
 0x25a   :  { %625 = vrot.lane.b32.xlu1 %v5536_v53, %s7659_s21 }
 0x25c   :  { %627 = vrot.lane.b32.xlu0 %v5540_v54, %s7659_s21 }
 0x25e   :  { %741 = vrot.lane.b32.xlu1 %v5512_v46, %s7660_s1 }
 0x260   :  { %743 = vrot.lane.b32.xlu0 %v5516_v47, %s7660_s1 }
 0x262   :  { %693 = vrot.lane.b32.xlu1 %v5512_v46, %s7661_s13 }
 0x264   :  { %695 = vrot.lane.b32.xlu0 %v5516_v47, %s7661_s13 }
 0x266   :  { %745 = vrot.lane.b32.xlu1 %v5536_v53, %s7660_s1 }
 0x268   :  { %747 = vrot.lane.b32.xlu0 %v5540_v54, %s7660_s1 }
 0x26a   :  { %697 = vrot.lane.b32.xlu1 %v5536_v53, %s7661_s13 }
 0x26c   :  { %699 = vrot.lane.b32.xlu0 %v5540_v54, %s7661_s13 }
 0x26e   :  { %757 = vrot.lane.b32.xlu1 %v5454_v13, %s7662_s5  ;;  %v847_v13 = vld [vmem:[%s7607_s8 + $0x30] sm:$0xff] }
 0x270   :  { %759 = vrot.lane.b32.xlu0 %v5456_v19, %s7662_s5  ;;  %v638_v58 = vpop.permute.xlu1 %637 }
 0x271   :  { %v653_v60 = vmul.f32 %v5372_v37, %v638_v58 }
 0x272   :  { %v640_v59 = vpop.permute.xlu0 %639  ;;  %761 = vrot.lane.b32.xlu1 %v5484_v39, %s7662_s5 }
 0x273   :  { %v654_v61 = vmul.f32 %v5372_v37, %v640_v59 }
 0x274   :  { %763 = vrot.lane.b32.xlu0 %v5488_v40, %s7662_s5  ;;  %v590_v62 = vpop.permute.xlu1 %589 }
 0x275   :  { %v789_v63 = vpack.c.bf16 %v654_v61, %v653_v60  ;;  %v605_v1 = vmul.f32 %v5364_v28, %v590_v62 }
 0x276   :  { %v592_v0 = vpop.permute.xlu0 %591  ;;  %765 = vrot.lane.b32.xlu1 %v5512_v46, %s7662_s5 }
 0x277   :  { %v606_v3 = vmul.f32 %v5364_v28, %v592_v0  ;;  %4202 = vmatprep.subr.bf16.mxu0 %v789_v63  ;;  %v798_v63 = vpack.c.bf16 %v5488_v40, %v5484_v39 }
 0x278   :  { %767 = vrot.lane.b32.xlu0 %v5516_v47, %s7662_s5  ;;  %v5604_v4 = vpop.permute.xlu1 %661 }
 0x279   :  { %v781_v6 = vpack.c.bf16 %v606_v3, %v605_v1 }
 0x27a   :  { %v5606_v7 = vpop.permute.xlu0 %663  ;;  %769 = vrot.lane.b32.xlu1 %v5536_v53, %s7662_s5 }
 0x27b   :  { %4203 = vmatpush3.bf16.msra.mxu0 %v781_v6 }
 0x27c   :  { %771 = vrot.lane.b32.xlu0 %v5540_v54, %s7662_s5  ;;  %v710_v9 = vpop.permute.xlu1 %709 }
 0x27d   :  { %v725_v17 = vmul.f32 %v5388_v57, %v710_v9 }
 0x27e   :  { %v712_v11 = vpop.permute.xlu0 %711  ;;  %851 = vperm.xlu1 %4749, %v841_v8  }
 0x27f   :  { %v726_v18 = vmul.f32 %v5388_v57, %v712_v11 }
 0x280   :  { %856 = vperm.xlu0 %4748, %v842_v10   ;;  %v5623_v21 = vpop.permute.xlu1 %613 }
 0x281   :  { %v805_v22 = vpack.c.bf16 %v726_v18, %v725_v17 }
 0x282   :  { %v5628_v24 = vpop.permute.xlu0 %615  ;;  %861 = vperm.xlu1 %4749, %v843_v20  }
 0x283   :  { %4242 = vmatprep.subr.bf16.mxu1 %v805_v22 }
 0x284   :  { %866 = vperm.xlu0 %4748, %v844_v23   ;;  %v5635_v27 = vpop.permute.xlu1 %733  ;;  %4243 = vmatpush3.bf16.msra.mxu1 %v797_v25 }
 0x286   :  { %v5640_v31 = vpop.permute.xlu0 %735  ;;  %871 = vperm.xlu1 %4749, %v845_v26  }
 0x288   :  { %876 = vperm.xlu0 %4748, %v846_v30   ;;  %v5645_v19 = vpop.permute.xlu1 %685 }
 0x28a   :  { %v5650_v33 = vpop.permute.xlu0 %687  ;;  %881 = vperm.xlu1 %4749, %v847_v13  }
 0x28c   :  { %886 = vperm.xlu0 %4748, %v848_v32   ;;  %v642_v34 = vpop.permute.xlu1 %641 }
 0x28d   :  { %v655_v36 = vmul.f32 %v5372_v37, %v642_v34 }
 0x28e   :  { %v644_v35 = vpop.permute.xlu0 %643 }
 0x28f   :  { %v656_v38 = vmul.f32 %v5372_v37, %v644_v35  ;;  %v799_v35 = vpack.c.bf16 %v5516_v47, %v5512_v46  ;;  %v677_v46 = vmul.f32 %v5377_v43, %v5604_v4 }
 0x290   :  { %v594_v41 = vpop.permute.xlu1 %593 }
 0x291   :  { %v790_v42 = vpack.c.bf16 %v656_v38, %v655_v36  ;;  %v607_v45 = vmul.f32 %v5364_v28, %v594_v41 }
 0x292   :  { %v596_v44 = vpop.permute.xlu0 %595 }
 0x293   :  { %v608_v48 = vmul.f32 %v5364_v28, %v596_v44  ;;  %4204 = vmatprep.subr.bf16.mxu0 %v790_v42 }
 0x294   :  { %v666_v49 = vpop.permute.xlu1 %665 }
 0x295   :  { %v782_v50 = vpack.c.bf16 %v608_v48, %v607_v45  ;;  %v678_v48 = vmul.f32 %v5377_v43, %v5606_v7  ;;  %v629_v7 = vmul.f32 %v5366_v29, %v5623_v21 }
 0x296   :  { %v668_v51 = vpop.permute.xlu0 %667 }
 0x297   :  { %4205 = vmatpush3.bf16.msra.mxu0 %v782_v50 }
 0x298   :  { %v714_v55 = vpop.permute.xlu1 %713 }
 0x299   :  { %v727_v58 = vmul.f32 %v5388_v57, %v714_v55 }
 0x29a   :  { %v716_v56 = vpop.permute.xlu0 %715 }
 0x29b   :  { %v728_v59 = vmul.f32 %v5388_v57, %v716_v56 }
 0x29c   :  { %v618_v60 = vpop.permute.xlu1 %617 }
 0x29d   :  { %v806_v61 = vpack.c.bf16 %v728_v59, %v727_v58  ;;  %v630_v58 = vmul.f32 %v5366_v29, %v5628_v24 }
 0x29e   :  { %v620_v62 = vpop.permute.xlu0 %619 }
 0x29f   :  { %4244 = vmatprep.subr.bf16.mxu1 %v806_v61  ;;  %v680_v61 = vmul.f32 %v5377_v43, %v668_v51  ;;  %v632_v4 = vmul.f32 %v5366_v29, %v620_v62 }
 0x2a0   :  { %v5660_v0 = vpop.permute.xlu1 %737  ;;  %4245 = vmatpush3.bf16.msra.mxu1 %v798_v63 }
 0x2a2   :  { %v5662_v1 = vpop.permute.xlu0 %739 }
 0x2a4   :  { %v646_v3 = vpop.permute.xlu1 %645 }
 0x2a5   :  { %v657_v8 = vmul.f32 %v5372_v37, %v646_v3  ;;  %v679_v3 = vmul.f32 %v5377_v43, %v666_v49  ;;  %v750_v49 = vmul.f32 %v5398_v2, %v5640_v31 }
 0x2a6   :  { %v648_v6 = vpop.permute.xlu0 %647 }
 0x2a7   :  { %v658_v9 = vmul.f32 %v5372_v37, %v648_v6  ;;  %v785_v6 = vpack.c.bf16 %v630_v58, %v629_v7 }
 0x2a8   :  { %v598_v10 = vpop.permute.xlu1 %597 }
 0x2a9   :  { %v791_v11 = vpack.c.bf16 %v658_v9, %v657_v8  ;;  %v609_v18 = vmul.f32 %v5364_v28, %v598_v10  ;;  %v794_v8 = vpack.c.bf16 %v680_v61, %v679_v3  ;;  %v631_v10 = vmul.f32 %v5366_v29, %v618_v60  ;;  %v4792_v3 = vld [vmem:[%s7606_s7 + $0x54] ss:$20 sps:$4 sm:$0xff]  }
 0x2aa   :  { %v600_v17 = vpop.permute.xlu0 %599 }
 0x2ab   :  { %v610_v20 = vmul.f32 %v5364_v28, %v600_v17  ;;  %4206 = vmatprep.subr.bf16.mxu0 %v791_v11  ;;  %v786_v21 = vpack.c.bf16 %v632_v4, %v631_v10 }
 0x2ac   :  { %v670_v39 = vpop.permute.xlu1 %669 }
 0x2ad   :  { %v783_v40 = vpack.c.bf16 %v610_v20, %v609_v18  ;;  %v681_v51 = vmul.f32 %v5377_v43, %v670_v39  ;;  %v749_v39 = vmul.f32 %v5398_v2, %v5635_v27 }
 0x2ae   :  { %v672_v22 = vpop.permute.xlu0 %671 }
 0x2af   :  { %4207 = vmatpush3.bf16.msra.mxu0 %v783_v40  ;;  %v682_v9 = vmul.f32 %v5377_v43, %v672_v22 }
 0x2b0   :  { %v718_v23 = vpop.permute.xlu1 %717 }
 0x2b1   :  { %v729_v26 = vmul.f32 %v5388_v57, %v718_v23  ;;  %v795_v18 = vpack.c.bf16 %v682_v9, %v681_v51 }
 0x2b2   :  { %v720_v25 = vpop.permute.xlu0 %719 }
 0x2b3   :  { %v730_v30 = vmul.f32 %v5388_v57, %v720_v25 }
 0x2b4   :  { %v622_v13 = vpop.permute.xlu1 %621 }
 0x2b5   :  { %v807_v32 = vpack.c.bf16 %v730_v30, %v729_v26  ;;  %v633_v40 = vmul.f32 %v5366_v29, %v622_v13  ;;  %v809_v30 = vpack.c.bf16 %v750_v49, %v749_v39 }
 0x2b6   :  { %v624_v34 = vpop.permute.xlu0 %623 }
 0x2b7   :  { %4246 = vmatprep.subr.bf16.mxu1 %v807_v32  ;;  %v634_v17 = vmul.f32 %v5366_v29, %v624_v34  ;;  %v702_v32 = vmul.f32 %v5383_v52, %v5650_v33  ;;  %v751_v33 = vmul.f32 %v5398_v2, %v5660_v0 }
 0x2b8   :  { %v650_v36 = vpop.permute.xlu1 %649  ;;  %4247 = vmatpush3.bf16.msra.mxu1 %v799_v35  ;;  %v800_v35 = vpack.c.bf16 %v5540_v54, %v5536_v53 }
 0x2b9   :  { %v659_v41 = vmul.f32 %v5372_v37, %v650_v36  ;;  %v787_v26 = vpack.c.bf16 %v634_v17, %v633_v40  ;;  %v701_v36 = vmul.f32 %v5383_v52, %v5645_v19  ;;  %v4789_v19 = vld [vmem:[%s7606_s7 + $0x2c] ss:$20 sps:$4 sm:$0xff]  }
 0x2ba   :  { %v652_v38 = vpop.permute.xlu0 %651 }
 0x2bb   :  { %v660_v42 = vmul.f32 %v5372_v37, %v652_v38  ;;  %v793_v37 = vpack.c.bf16 %v678_v48, %v677_v46  ;;  %v801_v53 = vpack.c.bf16 %v702_v32, %v701_v36  ;;  %v4804_v32 = vld [vmem:[%s7606_s7 + $0x5c] ss:$20 sps:$4 sm:$0xff]  }
 0x2bc   :  { %v602_v44 = vpop.permute.xlu1 %601 }
 0x2bd   :  { %v792_v45 = vpack.c.bf16 %v660_v42, %v659_v41  ;;  %v611_v55 = vmul.f32 %v5364_v28, %v602_v44 }
 0x2be   :  { %v604_v50 = vpop.permute.xlu0 %603 }
 0x2bf   :  { %v612_v56 = vmul.f32 %v5364_v28, %v604_v50  ;;  %4208 = vmatprep.subr.bf16.mxu0 %v792_v45 }
 0x2c0   :  { %v690_v47 = vpop.permute.xlu1 %689 }
 0x2c1   :  { %v784_v59 = vpack.c.bf16 %v612_v56, %v611_v55  ;;  %v703_v0 = vmul.f32 %v5383_v52, %v690_v47  ;;  %v4791_v47 = vld [vmem:[%s7606_s7 + $0x28] ss:$20 sps:$4 sm:$0xff]  }
 0x2c2   :  { %v692_v63 = vpop.permute.xlu0 %691 }
 0x2c3   :  { %4209 = vmatpush3.bf16.msra.mxu0 %v784_v59  ;;  %v704_v54 = vmul.f32 %v5383_v52, %v692_v63 }
 0x2c4   :  { %4210 = vmatprep.subr.bf16.mxu0 %v793_v37  ;;  %v674_v28 = vpop.permute.xlu1 %673 }
 0x2c5   :  { %v683_v23 = vmul.f32 %v5377_v43, %v674_v28  ;;  %v802_v50 = vpack.c.bf16 %v704_v54, %v703_v0  ;;  %v4813_v54 = vld [vmem:[%s7606_s7 + $0x88] ss:$20 sps:$4 sm:$0xff]  }
 0x2c6   :  { %v676_v24 = vpop.permute.xlu0 %675 }
 0x2c7   :  { %4211 = vmatpush3.bf16.msra.mxu0 %v785_v6  ;;  %v684_v62 = vmul.f32 %v5377_v43, %v676_v24 }
 0x2c8   :  { %4212 = vmatprep.subr.bf16.mxu0 %v794_v8  ;;  %v722_v11 = vpop.permute.xlu1 %721 }
 0x2c9   :  { %v731_v22 = vmul.f32 %v5388_v57, %v722_v11  ;;  %v796_v34 = vpack.c.bf16 %v684_v62, %v683_v23  ;;  %v4797_v11 = vld [vmem:[%s7606_s7 + $0x50] ss:$20 sps:$4 sm:$0xff]  }
 0x2ca   :  { %v724_v20 = vpop.permute.xlu0 %723 }
 0x2cb   :  { %v732_v60 = vmul.f32 %v5388_v57, %v724_v20  ;;  %4213 = vmatpush3.bf16.msra.mxu0 %v786_v21  ;;  %v752_v57 = vmul.f32 %v5398_v2, %v5662_v1 }
 0x2cc   :  { %4214 = vmatprep.subr.bf16.mxu0 %v795_v18  ;;  %v626_v25 = vpop.permute.xlu1 %625  ;;  %v4800_v18 = vld [vmem:[%s7606_s7 + $0x34] ss:$20 sps:$4 sm:$0xff]  }
 0x2cd   :  { %v808_v31 = vpack.c.bf16 %v732_v60, %v731_v22  ;;  %v635_v27 = vmul.f32 %v5366_v29, %v626_v25  ;;  %v810_v42 = vpack.c.bf16 %v752_v57, %v751_v33  ;;  %v4802_v25 = vld [vmem:[%s7606_s7 + $0x78] ss:$20 sps:$4 sm:$0xff]  }
 0x2ce   :  { %v628_v13 = vpop.permute.xlu0 %627  ;;  %v4808_v33 = vld [vmem:[%s7606_s7 + $0x38] ss:$20 sps:$4 sm:$0xff]  }
 0x2cf   :  { %v636_v43 = vmul.f32 %v5366_v29, %v628_v13  ;;  %4215 = vmatpush3.bf16.msra.mxu0 %v787_v26  ;;  %4248 = vmatprep.subr.bf16.mxu1 %v808_v31  ;;  %v4786_v29 = vld [vmem:[%s7606_s7] ss:$20 sps:$4 sm:$0xff]   ;;  %v4803_v26 = vld [vmem:[%s7606_s7 + $0x30] ss:$20 sps:$4 sm:$0xff]  }
 0x2d0   :  { %4216 = vmatprep.subr.bf16.mxu0 %v796_v34  ;;  %v742_v38 = vpop.permute.xlu1 %741  ;;  %4249 = vmatpush3.bf16.msra.mxu1 %v800_v35  ;;  %v4807_v13 = vld [vmem:[%s7606_s7 + $0x10] ss:$20 sps:$4 sm:$0xff]  }
 0x2d1   :  { %v788_v41 = vpack.c.bf16 %v636_v43, %v635_v27  ;;  %4250 = vmatprep.subr.bf16.mxu1 %v809_v30  ;;  %v753_v48 = vmul.f32 %v5398_v2, %v742_v38  ;;  %v4806_v38 = vld [vmem:[%s7606_s7 + $0x58] ss:$20 sps:$4 sm:$0xff]  }
 0x2d2   :  { %v744_v1 = vpop.permute.xlu0 %743 }
 0x2d3   :  { %v754_v44 = vmul.f32 %v5398_v2, %v744_v1  ;;  %4217 = vmatpush3.bf16.msra.mxu0 %v788_v41  ;;  %v4809_v41 = vld [vmem:[%s7606_s7 + $0x84] ss:$20 sps:$4 sm:$0xff]  }
 0x2d4   :  { %v694_v45 = vpop.permute.xlu1 %693  ;;  %4251 = vmatpush3.bf16.msra.mxu1 %v801_v53  ;;  %v4811_v53 = vld [vmem:[%s7606_s7 + $0x80] ss:$20 sps:$4 sm:$0xff]  }
 0x2d5   :  { %4252 = vmatprep.subr.bf16.mxu1 %v810_v42  ;;  %v811_v56 = vpack.c.bf16 %v754_v44, %v753_v48  ;;  %v705_v46 = vmul.f32 %v5383_v52, %v694_v45 }
 0x2d6   :  { %v696_v55 = vpop.permute.xlu0 %695  ;;  %1035 = vmatmul.mubr.bf16.vlgmr.msra.gmra.mrb[8].mxu0 %v4786_v29 }
 0x2d7   :  { %v706_v58 = vmul.f32 %v5383_v52, %v696_v55  ;;  %1042 = vmatprep.mubr.bf16.mxu0 %v4789_v19 }
 0x2d8   :  { %v746_v59 = vpop.permute.xlu1 %745  ;;  %4253 = vmatpush3.bf16.msra.mxu1 %v802_v50 }
 0x2d9   :  { %v803_v37 = vpack.c.bf16 %v706_v58, %v705_v46  ;;  %4254 = vmatprep.subr.bf16.mxu1 %v811_v56  ;;  %v755_v63 = vmul.f32 %v5398_v2, %v746_v59 }
 0x2da   :  { %v748_v61 = vpop.permute.xlu0 %747 }
 0x2db   :  { %v756_v7 = vmul.f32 %v5398_v2, %v748_v61  ;;  %v4794_v2 = vld [vmem:[%s7606_s7 + $0x8] ss:$20 sps:$4 sm:$0xff]  }
 0x2dc   :  { %v698_v28 = vpop.permute.xlu1 %697  ;;  %4255 = vmatpush3.bf16.msra.mxu1 %v803_v37 }
 0x2dd   :  { %v812_v6 = vpack.c.bf16 %v756_v7, %v755_v63  ;;  %v707_v8 = vmul.f32 %v5383_v52, %v698_v28 }
 0x2de   :  { %v700_v4 = vpop.permute.xlu0 %699  ;;  %1043 = vmatmul.mubr.bf16.gmra.mrb[12].mxu0 %v4791_v47 }
 0x2df   :  { %v708_v9 = vmul.f32 %v5383_v52, %v700_v4  ;;  %4256 = vmatprep.subr.bf16.mxu1 %v812_v6  ;;  %1050 = vmatprep.mubr.bf16.mxu0 %v4792_v3  ;;  %v4798_v52 = vld [vmem:[%s7606_s7 + $0x7c] ss:$20 sps:$4 sm:$0xff]  }
 0x2e0   :  { %v758_v24 = vpop.permute.xlu1 %757 }
 0x2e1   :  { %v804_v10 = vpack.c.bf16 %v708_v9, %v707_v8  ;;  %v773_v21 = vmul.f32 %v5405_v16, %v758_v24 }
 0x2e2   :  { %v760_v51 = vpop.permute.xlu0 %759 }
 0x2e3   :  { %v774_v17 = vmul.f32 %v5405_v16, %v760_v51  ;;  %4257 = vmatpush3.bf16.msra.mxu1 %v804_v10 }
 0x2e4   :  { %v762_v49 = vpop.permute.xlu1 %761 }
 0x2e5   :  { %v813_v62 = vpack.c.bf16 %v774_v17, %v773_v21  ;;  %v775_v40 = vmul.f32 %v5405_v16, %v762_v49 }
 0x2e6   :  { %v764_v20 = vpop.permute.xlu0 %763  ;;  %1051 = vmatmul.mubr.bf16.gmra.mrb[16].mxu0 %v4797_v11  ;;  %1100 = vmatmul.mubr.bf16.vlgmr.msra.gmra.mrb[16].mxu1 %v4794_v2 }
 0x2e7   :  { %v776_v22 = vmul.f32 %v5405_v16, %v764_v20  ;;  %4630 = vmatprep.subr.bf16.mxu0 %v813_v62  ;;  %1058 = vmatprep.mubr.bf16.mxu0 %v4798_v52 }
 0x2e8   :  { %4631 = vmatpush3.bf16.msra.mxu0 %v813_v62  ;;  %v766_v60 = vpop.permute.xlu1 %765  ;;  %1107 = vmatprep.mubr.bf16.mxu1 %v4800_v18 }
 0x2e9   :  { %v814_v39 = vpack.c.bf16 %v776_v22, %v775_v40  ;;  %v777_v31 = vmul.f32 %v5405_v16, %v766_v60 }
 0x2ea   :  { %v768_v23 = vpop.permute.xlu0 %767 }
 0x2eb   :  { %v778_v30 = vmul.f32 %v5405_v16, %v768_v23  ;;  %4632 = vmatprep.subr.bf16.mxu0 %v814_v39 }
 0x2ec   :  { %4633 = vmatpush3.bf16.msra.mxu0 %v814_v39  ;;  %v770_v34 = vpop.permute.xlu1 %769 }
 0x2ed   :  { %v815_v35 = vpack.c.bf16 %v778_v30, %v777_v31  ;;  %v779_v27 = vmul.f32 %v5405_v16, %v770_v34 }
 0x2ee   :  { %v772_v57 = vpop.permute.xlu0 %771  ;;  %1059 = vmatmul.mubr.bf16.gmra.mrb[20].mxu0 %v4802_v25  ;;  %1108 = vmatmul.mubr.bf16.gmra.mrb[20].mxu1 %v4803_v26 }
 0x2ef   :  { %v780_v43 = vmul.f32 %v5405_v16, %v772_v57  ;;  %4634 = vmatprep.subr.bf16.mxu0 %v815_v35  ;;  %1115 = vmatprep.mubr.bf16.mxu1 %v4804_v32  ;;  %v4812_v16 = vld [vmem:[%s7606_s7 + $0x60] ss:$20 sps:$4 sm:$0xff]  }
 0x2f0   :  { %4635 = vmatpush3.bf16.msra.mxu0 %v815_v35  ;;  %4638 = vmatprep.mubr.msk.bf16.mxu0 %vm989_vm3, %v4807_v13 }
 0x2f1   :  { %v816_v36 = vpack.c.bf16 %v780_v43, %v779_v27 }
 0x2f3   :  { %4636 = vmatprep.subr.bf16.mxu0 %v816_v36 }
 0x2f4   :  { %4637 = vmatpush3.bf16.msra.mxu0 %v816_v36 }
 0x2f6   :  { %1116 = vmatmul.mubr.bf16.gmra.mrb[24].mxu1 %v4806_v38 }
 0x2f7   :  { %4639 = vmatmul.mubr.msk.bf16.vlgmr.msra.gmra.mrb[24].mxu0 %vm989_vm3, %v4808_v33  ;;  %1123 = vmatprep.mubr.bf16.mxu1 %v4809_v41 }
 0x2f8   :  { %4642 = vmatprep.mubr.msk.bf16.mxu0 %vm989_vm3, %v4812_v16 }
 0x2fd   :  { %v852_v58 = vpop.permute.xlu1 %851 }
 0x2fe   :  { %1124 = vmatmul.mubr.bf16.gmra.mrb[28].mxu1 %v4811_v53 }
 0x2ff   :  { %4643 = vmatmul.mubr.msk.bf16.gmra.mrb[28].mxu0 %vm989_vm3, %v4813_v54  ;;  %v857_v59 = vpop.permute.xlu0 %856 }
 0x301   :  { %v862_v21 = vpop.permute.xlu1 %861 }
 0x303   :  { %v867_v17 = vpop.permute.xlu0 %866 }
 0x305   :  { %v872_v13 = vpop.permute.xlu1 %871 }
 0x307   :  { %v877_v35 = vpop.permute.xlu0 %876 }
 0x3a9   :  { %v4218_v1 = vpop.f32.mrb[8].mxu0 }
 0x3aa   :  { %v4219_v29 = vpop.f32.mrb[9].mxu0 }
 0x3ab   :  { %v4220_v42 = vadd.f32 %v4219_v29, %v4218_v1  ;;  %v4221_v44 = vpop.f32.mrb[10].mxu0 }
 0x3ac   :  { %v4222_v19 = vpop.f32.mrb[11].mxu0 }
 0x3ad   :  { %v4223_v0 = vadd.f32 %v4222_v19, %v4221_v44  ;;  %v1037_v7 = vadd.f32 %v4220_v42, %v852_v58 }
 0x3af   :  { %v1040_v24 = vadd.f32 %v4223_v0, %v857_v59  ;;  %v887_v59 = vpop.permute.xlu0 %886 }
 0x3b1   :  { %v4224_v45 = vpop.f32.mrb[12].mxu0 }
 0x3b2   :  { %v4225_v48 = vpop.f32.mrb[13].mxu0 }
 0x3b3   :  { %v4226_v50 = vadd.f32 %v4225_v48, %v4224_v45  ;;  %v4227_v55 = vpop.f32.mrb[14].mxu0 }
 0x3b4   :  { %v4228_v56 = vpop.f32.mrb[15].mxu0 }
 0x3b5   :  { %v4229_v46 = vadd.f32 %v4228_v56, %v4227_v55  ;;  %v1045_v20 = vadd.f32 %v4226_v50, %v862_v21  ;;  %v882_v56 = vpop.permute.xlu1 %881 }
 0x3b7   :  { %v1048_v26 = vadd.f32 %v4229_v46, %v867_v17 }
 0x3b9   :  { %v4230_v37 = vpop.f32.mrb[16].mxu0  ;;  %v4258_v61 = vpop.f32.mrb[16].mxu1 }
 0x3ba   :  { %v4231_v47 = vpop.f32.mrb[17].mxu0  ;;  %v4259_v63 = vpop.f32.mrb[17].mxu1 }
 0x3bb   :  { %v4232_v3 = vadd.f32 %v4231_v47, %v4230_v37  ;;  %v4260_v28 = vadd.f32 %v4259_v63, %v4258_v61  ;;  %v4233_v6 = vpop.f32.mrb[18].mxu0  ;;  %v4261_v4 = vpop.f32.mrb[18].mxu1 }
 0x3bc   :  { %v4234_v8 = vpop.f32.mrb[19].mxu0  ;;  %v4262_v9 = vpop.f32.mrb[19].mxu1 }
 0x3bd   :  { %v4235_v10 = vadd.f32 %v4234_v8, %v4233_v6  ;;  %v4263_v51 = vadd.f32 %v4262_v9, %v4261_v4  ;;  %v1102_v2 = vadd.f32 %v4260_v28, %v1037_v7  ;;  %v1053_v36 = vadd.f32 %v4232_v3, %v872_v13  ;;  %v1436_v13 = vld [vmem:[%s7609_s10] sm:$0xff] }
 0x3bf   :  { %v1105_v11 = vadd.f32 %v4263_v51, %v1040_v24  ;;  %v1056_v53 = vadd.f32 %v4235_v10, %v877_v35 }
 0x3c1   :  { %v4236_v52 = vpop.f32.mrb[20].mxu0  ;;  %v4264_v49 = vpop.f32.mrb[20].mxu1 }
 0x3c2   :  { %v4237_v18 = vpop.f32.mrb[21].mxu0  ;;  %v4265_v62 = vpop.f32.mrb[21].mxu1 }
 0x3c3   :  { %v4238_v40 = vadd.f32 %v4237_v18, %v4236_v52  ;;  %v4266_v22 = vadd.f32 %v4265_v62, %v4264_v49  ;;  %v4239_v60 = vpop.f32.mrb[22].mxu0  ;;  %v4267_v39 = vpop.f32.mrb[22].mxu1 }
 0x3c4   :  { %v4240_v23 = vpop.f32.mrb[23].mxu0  ;;  %v4268_v25 = vpop.f32.mrb[23].mxu1 }
 0x3c5   :  { %v4241_v31 = vadd.f32 %v4240_v23, %v4239_v60  ;;  %v4269_v30 = vadd.f32 %v4268_v25, %v4267_v39  ;;  %v1110_v32 = vadd.f32 %v4266_v22, %v1045_v20  ;;  %v1061_v3 = vadd.f32 %v4238_v40, %v882_v56  ;;  %v5910_v22 = vld [vmem:[#allocation6] sm:$0xff]  ;;  %v5922_v39 = vld [vmem:[#allocation6 + $0x8] sm:$0xff] }
 0x3c6   :  { %v4096_v60 = vcombine.high %v5910_v22, %v5910_v22  ;;  %v4098_v23 = vcombine.high %v5922_v39, %v5922_v39  ;;  %v6004_v56 = vld [vmem:[%s7610_s11 + $0x18] sm:$0xff] }
 0x3c7   :  { %v1113_v34 = vadd.f32 %v4269_v30, %v1048_v26  ;;  %v1064_v10 = vadd.f32 %v4241_v31, %v887_v59  ;;  %v6006_v59 = vld [vmem:[#allocation5 + $0x2] ss:$0 sm:$0xff] }
 0x3c8   :  { %1494 = vmatprep.mubr.bf16.mxu1 %v4096_v60  ;;  %1534 = vmatprep.mubr.bf16.mxu0 %v4098_v23 }
 0x3c9   :  { %v4270_v57 = vpop.f32.mrb[24].mxu1 }
 0x3ca   :  { %v4271_v27 = vpop.f32.mrb[25].mxu1  ;;  %v4640_v43 = vpop.f32.mrb[24].mxu0 }
 0x3cb   :  { %v4272_v38 = vadd.f32 %v4271_v27, %v4270_v57  ;;  %v1175_v33 = vadd.f32 %v4640_v43, %v1110_v32  ;;  %v4273_v41 = vpop.f32.mrb[26].mxu1  ;;  %v1166_v16 = vpop.f32.mrb[25].mxu0  ;;  %v1588_v27 = vld [vmem:[%s7610_s11 + $0x8] sm:$0xff] }
 0x3cc   :  { %v1167_v54 = vadd.f32 %v1166_v16, %v1102_v2  ;;  %v4274_v1 = vpop.f32.mrb[27].mxu1  ;;  %v4641_v29 = vpop.f32.mrb[26].mxu0 }
 0x3cd   :  { %v5788_v42 = vmax.f32 %v1175_v33, 0.0  ;;  %v4275_v44 = vadd.f32 %v4274_v1, %v4273_v41  ;;  %v1178_v19 = vadd.f32 %v4641_v29, %v1113_v34  ;;  %v1169_v0 = vpop.f32.mrb[27].mxu0  ;;  %v1118_v45 = vadd.f32 %v4272_v38, %v1053_v36  ;;  %v5967_v38 = vld [vmem:[%s7610_s11] sm:$0xff]  ;;  %v5989_v29 = vld [vmem:[%s7610_s11 + $0x28] sm:$0xff] }
 0x3ce   :  { %v1170_v48 = vadd.f32 %v1169_v0, %v1105_v11  ;;  %v5794_v46 = vmax.f32 %v1167_v54, 0.0  ;;  %v5078_v33 = vmov 1  }
 0x3cf   :  { %v5790_v50 = vmax.f32 %v1178_v19, 0.0  ;;  %1257 = vrot.lane.b32.xlu1 %v5788_v42, %s5072_s26  ;;  %v1121_v55 = vadd.f32 %v4275_v44, %v1056_v53  ;;  %4750 = vset.pattern.permute.xlu0 %v5078_v33  ;;  %v5979_v53 = vld [vmem:[%s7610_s11 + $0x10] sm:$0xff]  ;;  %v5079_v44 = vmov 2  }
 0x3d0   :  { %v5796_v58 = vmax.f32 %v1170_v48, 0.0 }
 0x3d1   :  { %v4276_v37 = vpop.f32.mrb[28].mxu1  ;;  %1259 = vrot.lane.b32.xlu0 %v5790_v50, %s5072_s26  ;;  %v1414_v61 = vpack.c.bf16 %v5790_v50, %v5788_v42 }
 0x3d2   :  { %v4277_v47 = vpop.f32.mrb[29].mxu1  ;;  %v4644_v63 = vpop.f32.mrb[28].mxu0  ;;  %v1413_v7 = vpack.c.bf16 %v5796_v58, %v5794_v46 }
 0x3d3   :  { %v4278_v28 = vadd.f32 %v4277_v47, %v4276_v37  ;;  %v4279_v6 = vpop.f32.mrb[30].mxu1  ;;  %v1182_v4 = vpop.f32.mrb[29].mxu0  ;;  %1209 = vrot.lane.b32.xlu1 %v5788_v42, %s5071_s6 }
 0x3d4   :  { %v1183_v8 = vadd.f32 %v1182_v4, %v1118_v45  ;;  %v4280_v9 = vpop.f32.mrb[31].mxu1  ;;  %v4645_v24 = vpop.f32.mrb[30].mxu0  ;;  %v5080_v45 = vmov 3  }
 0x3d5   :  { %v1126_v51 = vadd.f32 %v4278_v28, %v1061_v3  ;;  %v4281_v2 = vadd.f32 %v4280_v9, %v4279_v6  ;;  %v1185_v11 = vpop.f32.mrb[31].mxu0  ;;  %1211 = vrot.lane.b32.xlu0 %v5790_v50, %s5071_s6 }
 0x3d6   :  { %v1186_v21 = vadd.f32 %v1185_v11, %v1121_v55  ;;  %v5886_v20 = vmax.f32 %v1183_v8, 0.0  ;;  %v6018_v8 = vld [vmem:[#allocation5] ss:$0 sm:$0xff] }
 0x3d7   :  { %v1191_v17 = vadd.f32 %v4644_v63, %v1126_v51  ;;  %v1129_v52 = vadd.f32 %v4281_v2, %v1064_v10  ;;  %1329 = vrot.lane.b32.xlu1 %v5788_v42, %s7658_s14  ;;  %v6013_v63 = vld [vmem:[%s7610_s11 + $0x20] sm:$0xff] }
 0x3d8   :  { %v5890_v40 = vmax.f32 %v1186_v21, 0.0 }
 0x3d9   :  { %v1194_v49 = vadd.f32 %v4645_v24, %v1129_v52  ;;  %1331 = vrot.lane.b32.xlu0 %v5790_v50, %s7658_s14  ;;  %v5862_v18 = vmax.f32 %v1191_v17, 0.0 }
 0x3db   :  { %1281 = vrot.lane.b32.xlu1 %v5788_v42, %s7657_s23  ;;  %v5866_v62 = vmax.f32 %v1194_v49, 0.0  ;;  %v6029_v49 = vld [vmem:[#allocation5 + $0x6] ss:$0 sm:$0xff] }
 0x3dd   :  { %1283 = vrot.lane.b32.xlu0 %v5790_v50, %s7657_s23 }
 0x3df   :  { %1233 = vrot.lane.b32.xlu1 %v5788_v42, %s7659_s21 }
 0x3e1   :  { %1235 = vrot.lane.b32.xlu0 %v5790_v50, %s7659_s21 }
 0x3e3   :  { %1353 = vrot.lane.b32.xlu1 %v5788_v42, %s7660_s1 }
 0x3e5   :  { %1355 = vrot.lane.b32.xlu0 %v5790_v50, %s7660_s1 }
 0x3e7   :  { %1305 = vrot.lane.b32.xlu1 %v5788_v42, %s7661_s13 }
 0x3e9   :  { %1307 = vrot.lane.b32.xlu0 %v5790_v50, %s7661_s13 }
 0x3eb   :  { %1377 = vrot.lane.b32.xlu1 %v5788_v42, %s7662_s5 }
 0x3ed   :  { %1379 = vrot.lane.b32.xlu0 %v5790_v50, %s7662_s5 }
 0x3ef   :  { %1253 = vrot.lane.b32.xlu1 %v5794_v46, %s5072_s26 }
 0x3f1   :  { %1255 = vrot.lane.b32.xlu0 %v5796_v58, %s5072_s26 }
 0x3f3   :  { %1205 = vrot.lane.b32.xlu1 %v5794_v46, %s5071_s6 }
 0x3f5   :  { %1207 = vrot.lane.b32.xlu0 %v5796_v58, %s5071_s6 }
 0x3f7   :  { %1325 = vrot.lane.b32.xlu1 %v5794_v46, %s7658_s14 }
 0x3f9   :  { %1327 = vrot.lane.b32.xlu0 %v5796_v58, %s7658_s14 }
 0x3fb   :  { %1277 = vrot.lane.b32.xlu1 %v5794_v46, %s7657_s23 }
 0x3fd   :  { %1279 = vrot.lane.b32.xlu0 %v5796_v58, %s7657_s23 }
 0x3ff   :  { %1229 = vrot.lane.b32.xlu1 %v5794_v46, %s7659_s21 }
 0x401   :  { %1231 = vrot.lane.b32.xlu0 %v5796_v58, %s7659_s21 }
 0x403   :  { %1349 = vrot.lane.b32.xlu1 %v5794_v46, %s7660_s1 }
 0x405   :  { %1351 = vrot.lane.b32.xlu0 %v5796_v58, %s7660_s1 }
 0x407   :  { %1301 = vrot.lane.b32.xlu1 %v5794_v46, %s7661_s13 }
 0x409   :  { %1303 = vrot.lane.b32.xlu0 %v5796_v58, %s7661_s13 }
 0x40b   :  { %1373 = vrot.lane.b32.xlu1 %v5794_v46, %s7662_s5 }
 0x40d   :  { %1375 = vrot.lane.b32.xlu0 %v5796_v58, %s7662_s5 }
 0x40f   :  { %1265 = vrot.lane.b32.xlu1 %v5862_v18, %s5072_s26 }
 0x411   :  { %1267 = vrot.lane.b32.xlu0 %v5866_v62, %s5072_s26 }
 0x413   :  { %1217 = vrot.lane.b32.xlu1 %v5862_v18, %s5071_s6 }
 0x415   :  { %1219 = vrot.lane.b32.xlu0 %v5866_v62, %s5071_s6 }
 0x417   :  { %1337 = vrot.lane.b32.xlu1 %v5862_v18, %s7658_s14 }
 0x419   :  { %1339 = vrot.lane.b32.xlu0 %v5866_v62, %s7658_s14 }
 0x41b   :  { %1289 = vrot.lane.b32.xlu1 %v5862_v18, %s7657_s23 }
 0x41d   :  { %1291 = vrot.lane.b32.xlu0 %v5866_v62, %s7657_s23 }
 0x41f   :  { %1241 = vrot.lane.b32.xlu1 %v5862_v18, %s7659_s21 }
 0x421   :  { %1243 = vrot.lane.b32.xlu0 %v5866_v62, %s7659_s21 }
 0x423   :  { %1261 = vrot.lane.b32.xlu1 %v5886_v20, %s5072_s26 }
 0x425   :  { %1263 = vrot.lane.b32.xlu0 %v5890_v40, %s5072_s26 }
 0x427   :  { %1213 = vrot.lane.b32.xlu1 %v5886_v20, %s5071_s6 }
 0x429   :  { %1215 = vrot.lane.b32.xlu0 %v5890_v40, %s5071_s6 }
 0x42b   :  { %1361 = vrot.lane.b32.xlu1 %v5862_v18, %s7660_s1 }
 0x42d   :  { %1363 = vrot.lane.b32.xlu0 %v5866_v62, %s7660_s1 }
 0x42f   :  { %1333 = vrot.lane.b32.xlu1 %v5886_v20, %s7658_s14 }
 0x431   :  { %1335 = vrot.lane.b32.xlu0 %v5890_v40, %s7658_s14 }
 0x433   :  { %1285 = vrot.lane.b32.xlu1 %v5886_v20, %s7657_s23 }
 0x435   :  { %1287 = vrot.lane.b32.xlu0 %v5890_v40, %s7657_s23 }
 0x437   :  { %1237 = vrot.lane.b32.xlu1 %v5886_v20, %s7659_s21 }
 0x439   :  { %1239 = vrot.lane.b32.xlu0 %v5890_v40, %s7659_s21 }
 0x43b   :  { %1357 = vrot.lane.b32.xlu1 %v5886_v20, %s7660_s1 }
 0x43d   :  { %1359 = vrot.lane.b32.xlu0 %v5890_v40, %s7660_s1 }
 0x43f   :  { %1309 = vrot.lane.b32.xlu1 %v5886_v20, %s7661_s13 }
 0x441   :  { %v1258_v25 = vpop.permute.xlu1 %1257  ;;  %1311 = vrot.lane.b32.xlu0 %v5890_v40, %s7661_s13 }
 0x442   :  { %v1271_v10 = vmul.f32 %v6006_v59, %v1258_v25 }
 0x443   :  { %v1260_v26 = vpop.permute.xlu0 %1259  ;;  %1313 = vrot.lane.b32.xlu1 %v5862_v18, %s7661_s13 }
 0x444   :  { %v1272_v6 = vmul.f32 %v6006_v59, %v1260_v26 }
 0x445   :  { %v5934_v31 = vpop.permute.xlu1 %1209  ;;  %1315 = vrot.lane.b32.xlu0 %v5866_v62, %s7661_s13 }
 0x446   :  { %v1406_v21 = vpack.c.bf16 %v1272_v6, %v1271_v10  ;;  %v1223_v52 = vmul.f32 %v6018_v8, %v5934_v31 }
 0x447   :  { %v1212_v30 = vpop.permute.xlu0 %1211  ;;  %1381 = vrot.lane.b32.xlu1 %v5886_v20, %s7662_s5 }
 0x448   :  { %v1224_v2 = vmul.f32 %v6018_v8, %v1212_v30 }
 0x449   :  { %v5940_v32 = vpop.permute.xlu1 %1329  ;;  %1383 = vrot.lane.b32.xlu0 %v5890_v40, %s7662_s5 }
 0x44a   :  { %v1398_v30 = vpack.c.bf16 %v1224_v2, %v1223_v52 }
 0x44b   :  { %v5944_v34 = vpop.permute.xlu0 %1331  ;;  %1385 = vrot.lane.b32.xlu1 %v5862_v18, %s7662_s5 }
 0x44c   :  { %v1344_v60 = vmul.f32 %v6029_v49, %v5944_v34 }
 0x44d   :  { %v5951_v35 = vpop.permute.xlu1 %1281  ;;  %1387 = vrot.lane.b32.xlu0 %v5866_v62, %s7662_s5 }
 0x44f   :  { %v5955_v57 = vpop.permute.xlu0 %1283  ;;  %1439 = vperm.xlu1 %4749, %v1436_v13   ;;  %v1343_v13 = vmul.f32 %v6029_v49, %v5940_v32  ;;  %v6052_v32 = vld [vmem:[%s7610_s11 + $0x38] sm:$0xff] }
 0x451   :  { %v5960_v43 = vpop.permute.xlu1 %1233  ;;  %1648 = vperm.xlu0 %4750, %v5967_v38   ;;  %v1422_v34 = vpack.c.bf16 %v1344_v60, %v1343_v13 }
 0x453   :  { %v5962_v36 = vpop.permute.xlu0 %1235  ;;  %1602 = vperm.xlu1 %4749, %v1588_v27  }
 0x455   :  { %v5971_v41 = vpop.permute.xlu1 %1353  ;;  %1656 = vperm.xlu0 %4750, %v5979_v53  }
 0x457   :  { %v5973_v16 = vpop.permute.xlu0 %1355  ;;  %4751 = vset.pattern.permute.xlu1 %v5078_v33 }
 0x458   :  { %1652 = vperm.xlu1 %4751, %v1588_v27  }
 0x459   :  { %v5982_v54 = vpop.permute.xlu1 %1305  ;;  %1668 = vperm.xlu0 %4750, %v5989_v29  }
 0x45b   :  { %v5984_v1 = vpop.permute.xlu0 %1307 }
 0x45c   :  { %4752 = vset.pattern.permute.xlu1 %v5079_v44 }
 0x45d   :  { %v5993_v19 = vpop.permute.xlu1 %1377  ;;  %1700 = vperm.xlu1 %4752, %v5967_v38   ;;  %4759 = vset.pattern.permute.xlu0 %v5080_v45 }
 0x45e   :  { %1756 = vperm.xlu0 %4759, %v1588_v27  }
 0x45f   :  { %v5996_v0 = vpop.permute.xlu0 %1379 }
 0x461   :  { %v1254_v48 = vpop.permute.xlu1 %1253  ;;  %4753 = vset.pattern.permute.xlu1 %v5070_v5 }
 0x462   :  { %1607 = vperm.xlu1 %4753, %v5979_v53   ;;  %v1269_v37 = vmul.f32 %v6006_v59, %v1254_v48  ;;  %1768 = vperm.xlu0 %4759, %v6013_v63  }
 0x463   :  { %v1256_v55 = vpop.permute.xlu0 %1255 }
 0x464   :  { %v1270_v47 = vmul.f32 %v6006_v59, %v1256_v55 }
 0x465   :  { %v1206_v3 = vpop.permute.xlu1 %1205 }
 0x466   :  { %v1405_v28 = vpack.c.bf16 %v1270_v47, %v1269_v37  ;;  %1612 = vperm.xlu1 %4753, %v6004_v56   ;;  %v1221_v9 = vmul.f32 %v6018_v8, %v1206_v3  ;;  %4764 = vset.pattern.permute.xlu0 %v5079_v44  ;;  %v6085_v47 = vld [vmem:[%s7653_s29] sm:$0xff] }
 0x467   :  { %v1208_v4 = vpop.permute.xlu0 %1207  ;;  %1704 = vperm.xlu0 %4764, %v1588_v27  }
 0x468   :  { %v1222_v24 = vmul.f32 %v6018_v8, %v1208_v4  ;;  %4290 = vmatprep.subr.bf16.mxu1 %v1405_v28 }
 0x469   :  { %v1326_v51 = vpop.permute.xlu1 %1325 }
 0x46a   :  { %v1397_v11 = vpack.c.bf16 %v1222_v24, %v1221_v9  ;;  %4754 = vset.pattern.permute.xlu1 %v5078_v33  ;;  %v1341_v23 = vmul.f32 %v6029_v49, %v1326_v51 }
 0x46b   :  { %v1328_v17 = vpop.permute.xlu0 %1327  ;;  %1660 = vperm.xlu1 %4754, %v6004_v56   ;;  %1716 = vperm.xlu0 %4764, %v6013_v63  }
 0x46c   :  { %v1342_v25 = vmul.f32 %v6029_v49, %v1328_v17  ;;  %4291 = vmatpush3.bf16.msra.mxu1 %v1397_v11 }
 0x46d   :  { %4292 = vmatprep.subr.bf16.mxu1 %v1406_v21  ;;  %v6035_v26 = vpop.permute.xlu1 %1277 }
 0x46e   :  { %v1421_v27 = vpack.c.bf16 %v1342_v25, %v1341_v23 }
 0x46f   :  { %v6040_v31 = vpop.permute.xlu0 %1279  ;;  %4755 = vset.pattern.permute.xlu1 %v5080_v45  ;;  %1728 = vperm.xlu0 %4764, %v6052_v32  }
 0x470   :  { %4293 = vmatpush3.bf16.msra.mxu1 %v1398_v30  ;;  %4312 = vmatprep.subr.bf16.mxu0 %v1421_v27 }
 0x471   :  { %v6043_v48 = vpop.permute.xlu1 %1229  ;;  %4313 = vmatpush3.bf16.msra.mxu0 %v1413_v7  ;;  %1752 = vperm.xlu1 %4755, %v5967_v38  }
 0x472   :  { %4314 = vmatprep.subr.bf16.mxu0 %v1422_v34 }
 0x473   :  { %v6055_v55 = vpop.permute.xlu0 %1231  ;;  %4767 = vset.pattern.permute.xlu0 %v5070_v5 }
 0x474   :  { %1597 = vperm.xlu0 %4767, %v5967_v38  }
 0x475   :  { %v6057_v37 = vpop.permute.xlu1 %1349  ;;  %4315 = vmatpush3.bf16.msra.mxu0 %v1414_v61  ;;  %4756 = vset.pattern.permute.xlu1 %v5079_v44 }
 0x476   :  { %1708 = vperm.xlu1 %4756, %v5979_v53  }
 0x477   :  { %v6065_v46 = vpop.permute.xlu0 %1351 }
 0x478   :  { %1617 = vperm.xlu0 %4767, %v6013_v63  }
 0x479   :  { %v6068_v58 = vpop.permute.xlu1 %1301 }
 0x47a   :  { %1712 = vperm.xlu1 %4756, %v6004_v56  }
 0x47b   :  { %v6071_v7 = vpop.permute.xlu0 %1303 }
 0x47c   :  { %1632 = vperm.xlu0 %4767, %v6052_v32  }
 0x47d   :  { %v6074_v42 = vpop.permute.xlu1 %1373 }
 0x47e   :  { %4757 = vset.pattern.permute.xlu1 %v5070_v5 }
 0x47f   :  { %v6077_v50 = vpop.permute.xlu0 %1375  ;;  %1622 = vperm.xlu1 %4757, %v5989_v29  }
 0x480   :  { %2093 = vrot.lane.b32.xlu0 %v6085_v47, %s5071_s6 }
 0x481   :  { %v1266_v61 = vpop.permute.xlu1 %1265 }
 0x482   :  { %v1275_v30 = vmul.f32 %v6006_v59, %v1266_v61 }
 0x483   :  { %v1268_v38 = vpop.permute.xlu0 %1267  ;;  %4758 = vset.pattern.permute.xlu1 %v5078_v33 }
 0x484   :  { %1664 = vperm.xlu1 %4758, %v6013_v63   ;;  %2099 = vrot.lane.b32.xlu0 %v6085_v47, %s7659_s21  ;;  %v1276_v52 = vmul.f32 %v6006_v59, %v1268_v38  ;;  %v6135_v38 = vld [vmem:[#allocation5 + $0x3] ss:$0 sm:$0xff] }
 0x485   :  { %v1218_v3 = vpop.permute.xlu1 %1217  ;;  %v1293_v61 = vmul.f32 %v6135_v38, %v6035_v26 }
 0x487   :  { %v1220_v28 = vpop.permute.xlu0 %1219 }
 0x488   :  { %4760 = vset.pattern.permute.xlu1 %v5080_v45  ;;  %2105 = vrot.lane.b32.xlu0 %v6085_v47, %s5072_s26  ;;  %v1228_v27 = vmul.f32 %v6018_v8, %v1220_v28 }
 0x489   :  { %v6093_v6 = vpop.permute.xlu1 %1337  ;;  %1760 = vperm.xlu1 %4760, %v5979_v53  }
 0x48b   :  { %v1340_v4 = vpop.permute.xlu0 %1339 }
 0x48c   :  { %2111 = vrot.lane.b32.xlu0 %v6085_v47, %s7657_s23 }
 0x48d   :  { %v6098_v9 = vpop.permute.xlu1 %1289  ;;  %1764 = vperm.xlu1 %4760, %v6004_v56   ;;  %v6116_v56 = vld [vmem:[%s7610_s11 + $0x30] sm:$0xff] }
 0x48f   :  { %v6101_v63 = vpop.permute.xlu0 %1291 }
 0x490   :  { %2117 = vrot.lane.b32.xlu0 %v6085_v47, %s7661_s13 }
 0x491   :  { %v6105_v24 = vpop.permute.xlu1 %1241  ;;  %4761 = vset.pattern.permute.xlu1 %v5079_v44 }
 0x492   :  { %1720 = vperm.xlu1 %4761, %v5989_v29  }
 0x493   :  { %v6109_v53 = vpop.permute.xlu0 %1243 }
 0x494   :  { %2123 = vrot.lane.b32.xlu0 %v6085_v47, %s7658_s14 }
 0x495   :  { %v1262_v10 = vpop.permute.xlu1 %1261 }
 0x496   :  { %4762 = vset.pattern.permute.xlu1 %v5070_v5  ;;  %v1273_v2 = vmul.f32 %v6006_v59, %v1262_v10  ;;  %v1408_v10 = vpack.c.bf16 %v1276_v52, %v1275_v30 }
 0x497   :  { %v1264_v51 = vpop.permute.xlu0 %1263  ;;  %1627 = vperm.xlu1 %4762, %v6116_v56  }
 0x498   :  { %v1274_v11 = vmul.f32 %v6006_v59, %v1264_v51  ;;  %2129 = vrot.lane.b32.xlu0 %v6085_v47, %s7660_s1 }
 0x499   :  { %v1214_v21 = vpop.permute.xlu1 %1213 }
 0x49a   :  { %v1407_v17 = vpack.c.bf16 %v1274_v11, %v1273_v2  ;;  %v1225_v23 = vmul.f32 %v6018_v8, %v1214_v21  ;;  %v1227_v2 = vmul.f32 %v6018_v8, %v1218_v3  ;;  %v6147_v11 = vld [vmem:[#allocation5 + $0x1] ss:$0 sm:$0xff] }
 0x49b   :  { %v1216_v60 = vpop.permute.xlu0 %1215  ;;  %4763 = vset.pattern.permute.xlu1 %v5078_v33  ;;  %v1294_v33 = vmul.f32 %v6135_v38, %v6040_v31  ;;  %v1246_v31 = vmul.f32 %v6147_v11, %v6055_v55  ;;  %v1245_v3 = vmul.f32 %v6147_v11, %v6043_v48  ;;  %v1295_v55 = vmul.f32 %v6135_v38, %v5951_v35 }
 0x49c   :  { %v1226_v25 = vmul.f32 %v6018_v8, %v1216_v60  ;;  %4294 = vmatprep.subr.bf16.mxu1 %v1407_v17  ;;  %1672 = vperm.xlu1 %4763, %v6116_v56   ;;  %v1400_v21 = vpack.c.bf16 %v1228_v27, %v1227_v2  ;;  %v1296_v17 = vmul.f32 %v6135_v38, %v5955_v57 }
 0x49d   :  { %v6132_v13 = vpop.permute.xlu1 %1361  ;;  %2135 = vrot.lane.b32.xlu0 %v6085_v47, %s7662_s5  ;;  %v1409_v52 = vpack.c.bf16 %v1294_v33, %v1293_v61  ;;  %v1248_v57 = vmul.f32 %v6147_v11, %v5962_v36  ;;  %v1401_v48 = vpack.c.bf16 %v1246_v31, %v1245_v3  ;;  %v1247_v33 = vmul.f32 %v6147_v11, %v5960_v43 }
 0x49e   :  { %v1399_v34 = vpack.c.bf16 %v1226_v25, %v1225_v23  ;;  %v1348_v23 = vmul.f32 %v6029_v49, %v1340_v4  ;;  %v1347_v4 = vmul.f32 %v6029_v49, %v6093_v6 }
 0x49f   :  { %v6139_v51 = vpop.permute.xlu0 %1363  ;;  %v1402_v43 = vpack.c.bf16 %v1248_v57, %v1247_v33 }
 0x4a0   :  { %4295 = vmatpush3.bf16.msra.mxu1 %v1399_v34  ;;  %1676 = vperm.xlu1 %4763, %v6052_v32   ;;  %v1410_v34 = vpack.c.bf16 %v1296_v17, %v1295_v55  ;;  %v1424_v61 = vpack.c.bf16 %v1348_v23, %v1347_v4 }
 0x4a1   :  { %4296 = vmatprep.subr.bf16.mxu1 %v1408_v10  ;;  %v1334_v28 = vpop.permute.xlu1 %1333  ;;  %v6168_v10 = vld [vmem:[#allocation5 + $0x7] ss:$0 sm:$0xff] }
 0x4a2   :  { %v1345_v26 = vmul.f32 %v6029_v49, %v1334_v28  ;;  %v1366_v35 = vmul.f32 %v6168_v10, %v6065_v46  ;;  %v1365_v31 = vmul.f32 %v6168_v10, %v6057_v37  ;;  %v6179_v46 = vld [vmem:[#allocation5 + $0x5] ss:$0 sm:$0xff]  ;;  %v1368_v37 = vmul.f32 %v6168_v10, %v5973_v16 }
 0x4a3   :  { %v1336_v60 = vpop.permute.xlu0 %1335 }
 0x4a4   :  { %v1346_v25 = vmul.f32 %v6029_v49, %v1336_v60  ;;  %4297 = vmatpush3.bf16.msra.mxu1 %v1400_v21  ;;  %4765 = vset.pattern.permute.xlu1 %v5080_v45  ;;  %v1425_v3 = vpack.c.bf16 %v1366_v35, %v1365_v31 }
 0x4a5   :  { %4298 = vmatprep.subr.bf16.mxu1 %v1409_v52  ;;  %v1286_v30 = vpop.permute.xlu1 %1285  ;;  %1772 = vperm.xlu1 %4765, %v5989_v29   ;;  %v1415_v29 = vpack.c.bf16 %v5890_v40, %v5886_v20  ;;  %v1318_v20 = vmul.f32 %v6179_v46, %v6071_v7  ;;  %v1300_v40 = vmul.f32 %v6135_v38, %v6101_v63 }
 0x4a6   :  { %v1423_v27 = vpack.c.bf16 %v1346_v25, %v1345_v26  ;;  %v1297_v36 = vmul.f32 %v6135_v38, %v1286_v30  ;;  %v1416_v52 = vpack.c.bf16 %v5866_v62, %v5862_v18  ;;  %v1317_v7 = vmul.f32 %v6179_v46, %v6068_v58 }
 0x4a7   :  { %v1288_v2 = vpop.permute.xlu0 %1287  ;;  %v1299_v63 = vmul.f32 %v6135_v38, %v6098_v9  ;;  %v1367_v18 = vmul.f32 %v6168_v10, %v5971_v41  ;;  %v1252_v62 = vmul.f32 %v6147_v11, %v6109_v53  ;;  %v1320_v26 = vmul.f32 %v6179_v46, %v5984_v1  ;;  %v6209_v1 = vld [vmem:[#allocation5 + $0x8] ss:$0 sm:$0xff] }
 0x4a8   :  { %v1298_v28 = vmul.f32 %v6135_v38, %v1288_v2  ;;  %4299 = vmatpush3.bf16.msra.mxu1 %v1401_v48  ;;  %4316 = vmatprep.subr.bf16.mxu0 %v1423_v27  ;;  %v1417_v25 = vpack.c.bf16 %v1318_v20, %v1317_v7  ;;  %v1251_v30 = vmul.f32 %v6147_v11, %v6105_v24 }
 0x4a9   :  { %4300 = vmatprep.subr.bf16.mxu1 %v1410_v34  ;;  %v1238_v6 = vpop.permute.xlu1 %1237  ;;  %4317 = vmatpush3.bf16.msra.mxu0 %v1415_v29  ;;  %v1412_v55 = vpack.c.bf16 %v1300_v40, %v1299_v63  ;;  %v1426_v9 = vpack.c.bf16 %v1368_v37, %v1367_v18  ;;  %v1319_v41 = vmul.f32 %v6179_v46, %v5982_v54  ;;  %v5081_v29 = vmov 0.0  }
 0x4aa   :  { %v1411_v21 = vpack.c.bf16 %v1298_v28, %v1297_v36  ;;  %4318 = vmatprep.subr.bf16.mxu0 %v1424_v61  ;;  %4766 = vset.pattern.permute.xlu1 %v5079_v44  ;;  %v1249_v44 = vmul.f32 %v6147_v11, %v1238_v6  ;;  %v1404_v48 = vpack.c.bf16 %v1252_v62, %v1251_v30 }
 0x4ab   :  { %v1240_v17 = vpop.permute.xlu0 %1239  ;;  %1724 = vperm.xlu1 %4766, %v6116_v56   ;;  %v1418_v24 = vpack.c.bf16 %v1320_v26, %v1319_v41  ;;  %v1389_v27 = vmul.f32 %v6209_v1, %v6074_v42  ;;  %v4095_v34 = vcombine.low %v5910_v22, %v5910_v22  ;;  %v1392_v42 = vmul.f32 %v6209_v1, %v5996_v0 }
 0x4ac   :  { %v1250_v60 = vmul.f32 %v6147_v11, %v1240_v17  ;;  %4301 = vmatpush3.bf16.msra.mxu1 %v1402_v43  ;;  %v1371_v61 = vmul.f32 %v6168_v10, %v6132_v13  ;;  %v1391_v36 = vmul.f32 %v6209_v1, %v5993_v19  ;;  %v6234_v19 = vld [vmem:[%s7653_s29 + $0x8] sm:$0xff]  ;;  %v4097_v17 = vcombine.low %v5922_v39, %v5922_v39  ;;  %v4818_v39 = vld [vmem:[#allocation6 + $0x10] ss:$0 sps:$4 sm:$0xff]  }
 0x4ad   :  { %4302 = vmatprep.subr.bf16.mxu1 %v1411_v21  ;;  %v1358_v23 = vpop.permute.xlu1 %1357  ;;  %4319 = vmatpush3.bf16.msra.mxu0 %v1416_v52 }
 0x4ae   :  { %v1403_v16 = vpack.c.bf16 %v1250_v60, %v1249_v44  ;;  %4320 = vmatprep.subr.bf16.mxu0 %v1425_v3  ;;  %v1369_v4 = vmul.f32 %v6168_v10, %v1358_v23  ;;  %v1430_v31 = vpack.c.bf16 %v1392_v42, %v1391_v36 }
 0x4af   :  { %v1360_v58 = vpop.permute.xlu0 %1359  ;;  %4768 = vset.pattern.permute.xlu1 %v5080_v45  ;;  %v1390_v45 = vmul.f32 %v6209_v1, %v6077_v50 }
 0x4b0   :  { %v1370_v57 = vmul.f32 %v6168_v10, %v1360_v58  ;;  %4303 = vmatpush3.bf16.msra.mxu1 %v1403_v16  ;;  %1776 = vperm.xlu1 %4768, %v6116_v56   ;;  %v1372_v56 = vmul.f32 %v6168_v10, %v6139_v51 }
 0x4b1   :  { %4304 = vmatprep.subr.bf16.mxu1 %v1412_v55  ;;  %v1310_v53 = vpop.permute.xlu1 %1309  ;;  %4321 = vmatpush3.bf16.msra.mxu0 %v1417_v25  ;;  %v1429_v51 = vpack.c.bf16 %v1390_v45, %v1389_v27 }
 0x4b2   :  { %4322 = vmatprep.subr.bf16.mxu0 %v1426_v9  ;;  %v1427_v33 = vpack.c.bf16 %v1370_v57, %v1369_v4  ;;  %v1321_v35 = vmul.f32 %v6179_v46, %v1310_v53  ;;  %v1428_v6 = vpack.c.bf16 %v1372_v56, %v1371_v61 }
 0x4b3   :  { %v1312_v54 = vpop.permute.xlu0 %1311 }
 0x4b4   :  { %v1322_v50 = vmul.f32 %v6179_v46, %v1312_v54  ;;  %4305 = vmatpush3.bf16.msra.mxu1 %v1404_v48  ;;  %1780 = vperm.xlu1 %4768, %v6052_v32  }
 0x4b5   :  { %v1314_v2 = vpop.permute.xlu1 %1313  ;;  %4323 = vmatpush3.bf16.msra.mxu0 %v1418_v24  ;;  %4646 = vmatprep.subr.bf16.mxu1 %v5081_v29 }
 0x4b6   :  { %v1419_v22 = vpack.c.bf16 %v1322_v50, %v1321_v35  ;;  %4324 = vmatprep.subr.bf16.mxu0 %v1427_v33  ;;  %v1323_v32 = vmul.f32 %v6179_v46, %v1314_v2 }
 0x4b7   :  { %v1316_v28 = vpop.permute.xlu0 %1315  ;;  %1495 = vmatmul.mubr.bf16.vlgmr.msra.gmra.mrb[32].mxu1 %v4095_v34 }
 0x4b8   :  { %v1324_v43 = vmul.f32 %v6179_v46, %v1316_v28  ;;  %4647 = vmatpush3.bf16.msra.mxu1 %v1429_v51  ;;  %4654 = vmatprep.mubr.msk.bf16.mxu1 %vm5082_vm4, %v5081_v29 }
 0x4b9   :  { %v1382_v0 = vpop.permute.xlu1 %1381  ;;  %4325 = vmatpush3.bf16.msra.mxu0 %v1419_v22  ;;  %4648 = vmatprep.subr.bf16.mxu1 %v5081_v29 }
 0x4ba   :  { %v1420_v13 = vpack.c.bf16 %v1324_v43, %v1323_v32  ;;  %4326 = vmatprep.subr.bf16.mxu0 %v1428_v6  ;;  %2095 = vrot.lane.b32.xlu1 %v6234_v19, %s5071_s6  ;;  %v1393_v20 = vmul.f32 %v6209_v1, %v1382_v0 }
 0x4bb   :  { %v1384_v21 = vpop.permute.xlu0 %1383  ;;  %4769 = vset.pattern.permute.xlu1 %v5070_v5 }
 0x4bc   :  { %v1394_v40 = vmul.f32 %v6209_v1, %v1384_v21  ;;  %4649 = vmatpush3.bf16.msra.mxu1 %v1430_v31 }
 0x4bd   :  { %v1386_v52 = vpop.permute.xlu1 %1385  ;;  %4327 = vmatpush3.bf16.msra.mxu0 %v1420_v13  ;;  %4650 = vmatprep.subr.bf16.mxu1 %v5081_v29 }
 0x4be   :  { %v1431_v37 = vpack.c.bf16 %v1394_v40, %v1393_v20  ;;  %2101 = vrot.lane.b32.xlu1 %v6234_v19, %s7659_s21  ;;  %2206 = vmatprep.subr.bf16.mxu0 %v5070_v5  ;;  %v1395_v44 = vmul.f32 %v6209_v1, %v1386_v52 }
 0x4bf   :  { %v1388_v3 = vpop.permute.xlu0 %1387 }
 0x4c0   :  { %v1396_v60 = vmul.f32 %v6209_v1, %v1388_v3  ;;  %1535 = vmatmul.mubr.bf16.vlgmr.msra.gmra.mrb[32].mxu0 %v4097_v17  ;;  %4651 = vmatpush3.bf16.msra.mxu1 %v1431_v37 }
 0x4c1   :  { %4652 = vmatprep.subr.bf16.mxu1 %v5081_v29 }
 0x4c2   :  { %v1432_v7 = vpack.c.bf16 %v1396_v60, %v1395_v44  ;;  %2107 = vrot.lane.b32.xlu1 %v6234_v19, %s5072_s26 }
 0x4c4   :  { %4653 = vmatpush3.bf16.msra.mxu1 %v1432_v7 }
 0x4c6   :  { %2113 = vrot.lane.b32.xlu1 %v6234_v19, %s7657_s23 }
 0x4c7   :  { %4655 = vmatmul.mubr.msk.bf16.vlgmr.msra.gmra.mrb[36].mxu1 %vm989_vm3, %v4818_v39 }
 0x4ca   :  { %2119 = vrot.lane.b32.xlu1 %v6234_v19, %s7661_s13 }
 0x4ce   :  { %2125 = vrot.lane.b32.xlu1 %v6234_v19, %s7658_s14  ;;  %v1440_v63 = vpop.permute.xlu1 %1439 }
 0x4d0   :  { %v6283_v41 = vpop.permute.xlu0 %1648 }
 0x4d2   :  { %2131 = vrot.lane.b32.xlu1 %v6234_v19, %s7660_s1  ;;  %v6261_v23 = vpop.permute.xlu1 %1602 }
 0x4d4   :  { %v6287_v45 = vpop.permute.xlu0 %1656 }
 0x4d6   :  { %2137 = vrot.lane.b32.xlu1 %v6234_v19, %s7662_s5 }
 0x4d7   :  { %v6263_v18 = vpop.permute.xlu1 %1652 }
 0x4d8   :  { %v6291_v4 = vpop.permute.xlu0 %1668 }
 0x4dc   :  { %v6265_v62 = vpop.permute.xlu1 %1700 }
 0x4dd   :  { %v6293_v24 = vpop.permute.xlu0 %1756 }
 0x4e1   :  { %v6267_v16 = vpop.permute.xlu1 %1607  ;;  %v6297_v56 = vpop.permute.xlu0 %1768 }
 0x4e5   :  { %v6269_v26 = vpop.permute.xlu1 %1612 }
 0x4e6   :  { %v6301_v34 = vpop.permute.xlu0 %1704 }
 0x4ea   :  { %v6271_v25 = vpop.permute.xlu1 %1660  ;;  %v6305_v35 = vpop.permute.xlu0 %1716 }
 0x4ee   :  { %v6309_v2 = vpop.permute.xlu0 %1728 }
 0x4f0   :  { %v6273_v55 = vpop.permute.xlu1 %1752 }
 0x4f3   :  { %v6313_v28 = vpop.permute.xlu0 %1597 }
 0x4f5   :  { %v6275_v58 = vpop.permute.xlu1 %1708 }
 0x4f7   :  { %v6317_v43 = vpop.permute.xlu0 %1617 }
 0x4f9   :  { %v6277_v9 = vpop.permute.xlu1 %1712 }
 0x4fb   :  { %v6321_v52 = vpop.permute.xlu0 %1632 }
 0x4fe   :  { %v6279_v30 = vpop.permute.xlu1 %1622 }
 0x503   :  { %v6281_v57 = vpop.permute.xlu1 %1664 }
 0x508   :  { %v6285_v53 = vpop.permute.xlu1 %1760 }
 0x50c   :  { %v6289_v48 = vpop.permute.xlu1 %1764 }
 0x511   :  { %v6295_v27 = vpop.permute.xlu1 %1720 }
 0x516   :  { %v6299_v54 = vpop.permute.xlu1 %1627 }
 0x51b   :  { %v6303_v33 = vpop.permute.xlu1 %1672 }
 0x51f   :  { %v6307_v50 = vpop.permute.xlu1 %1676 }
 0x524   :  { %v6311_v29 = vpop.permute.xlu1 %1772 }
 0x52a   :  { %v6315_v6 = vpop.permute.xlu1 %1724 }
 0x52f   :  { %v6319_v31 = vpop.permute.xlu1 %1776 }
 0x533   :  { %v6323_v3 = vpop.permute.xlu1 %1780 }
 0x58a   :  { %v4306_v42 = vpop.f32.mrb[32].mxu1 }
 0x58b   :  { %v4307_v51 = vpop.f32.mrb[33].mxu1 }
 0x58c   :  { %v4308_v61 = vadd.f32 %v4307_v51, %v4306_v42  ;;  %v4309_v22 = vpop.f32.mrb[34].mxu1  ;;  %v2094_v51 = vpop.permute.xlu0 %2093 }
 0x58d   :  { %v4310_v36 = vpop.f32.mrb[35].mxu1  ;;  %v2096_v22 = vpop.permute.xlu1 %2095  ;;  %v2097_v14 = vmul.f32 %v6018_v8, %v2094_v51  ;;  %v1635_v51 = vlaneseq }
 0x58e   :  { %v1497_v13 = vadd.f32 %v4308_v61, %v1440_v63  ;;  %v2098_v63 = vmul.f32 %v6018_v8, %v2096_v22 }
 0x590   :  { %v2141_v61 = vpack.c.bf16 %v2098_v63, %v2097_v14 }
 0x592   :  { %2207 = vmatpush1.bf16.msra.mxu0 %v2141_v61  ;;  %v2145_v61 = vpack.c.bf16 %v6234_v19, %v6085_v47 }
 0x593   :  { %v4328_v32 = vpop.f32.mrb[32].mxu0  ;;  %2208 = vmatprep.subr.bf16.mxu0 %v5070_v5 }
 0x594   :  { %v4329_v0 = vpop.f32.mrb[33].mxu0 }
 0x595   :  { %v4330_v21 = vadd.f32 %v4329_v0, %v4328_v32  ;;  %v4331_v20 = vpop.f32.mrb[34].mxu0  ;;  %v2100_v32 = vpop.permute.xlu0 %2099 }
 0x596   :  { %v4332_v40 = vpop.f32.mrb[35].mxu0  ;;  %v2102_v0 = vpop.permute.xlu1 %2101 }
 0x597   :  { %v1537_v17 = vadd.f32 %v4330_v21, %v1497_v13  ;;  %v2103_v13 = vmul.f32 %v6147_v11, %v2100_v32  ;;  %v2104_v21 = vmul.f32 %v6147_v11, %v2102_v0 }
 0x599   :  { %v2142_v20 = vpack.c.bf16 %v2104_v21, %v2103_v13  ;;  %v2106_v40 = vpop.permute.xlu0 %2105 }
 0x59a   :  { %v1576_v37 = vpop.f32.mrb[36].mxu1 }
 0x59b   :  { %v1577_v44 = vadd.f32 %v1576_v37, %v1537_v17  ;;  %v4656_v60 = vpop.f32.mrb[37].mxu1  ;;  %v2108_v17 = vpop.permute.xlu1 %2107  ;;  %v2109_v37 = vmul.f32 %v6006_v59, %v2106_v40  ;;  %2209 = vmatpush1.bf16.msra.mxu0 %v2142_v20 }
 0x59c   :  { %v1579_v7 = vpop.f32.mrb[38].mxu1  ;;  %2210 = vmatprep.subr.bf16.mxu0 %v5070_v5 }
 0x59d   :  { %v1582_v39 = vsub.f32 0.0, %v1577_v44  ;;  %v4657_v42 = vpop.f32.mrb[39].mxu1  ;;  %v2110_v44 = vmul.f32 %v6006_v59, %v2108_v17  ;;  %v2112_v8 = vpop.permute.xlu0 %2111  ;;  %v1636_v59 = vshrl.u32 %v1635_v51, 7 }
 0x59f   :  { %v1583_v36 = vmul.f32 1.442695, %v1582_v39  ;;  %v2143_v14 = vpack.c.bf16 %v2110_v44, %v2109_v37  ;;  %v2114_v60 = vpop.permute.xlu1 %2113  ;;  %v2115_v39 = vmul.f32 %v6135_v38, %v2112_v8  ;;  %v1637_v0 = vsub.s32 0, %v1636_v59 }
 0x5a0   :  { %v2116_v11 = vmul.f32 %v6135_v38, %v2114_v60  ;;  %v1681_v13 = vsub.s32 1, %v1636_v59  ;;  %v1733_v21 = vsub.s32 2, %v1636_v59  ;;  %v1785_v20 = vsub.s32 3, %v1636_v59 }
 0x5a1   :  { %4919 = vpow2.f32 %v1583_v36  ;;  %2211 = vmatpush1.bf16.msra.mxu0 %v2143_v14  ;;  %v2118_v36 = vpop.permute.xlu0 %2117 }
 0x5a2   :  { %2212 = vmatprep.subr.bf16.mxu0 %v5070_v5  ;;  %v2144_v22 = vpack.c.bf16 %v2116_v11, %v2115_v39  ;;  %v2121_v32 = vmul.f32 %v6179_v46, %v2118_v36 }
 0x5a3   :  { %v2120_v63 = vpop.permute.xlu1 %2119 }
 0x5a4   :  { %v2122_v38 = vmul.f32 %v6179_v46, %v2120_v63 }
 0x5a5   :  { %2213 = vmatpush1.bf16.msra.mxu0 %v2144_v22  ;;  %v2124_v17 = vpop.permute.xlu0 %2123 }
 0x5a6   :  { %2214 = vmatprep.subr.bf16.mxu0 %v5070_v5  ;;  %v2146_v40 = vpack.c.bf16 %v2122_v38, %v2121_v32  ;;  %v2127_v44 = vmul.f32 %v6029_v49, %v2124_v17 }
 0x5a7   :  { %v2126_v37 = vpop.permute.xlu1 %2125 }
 0x5a8   :  { %v2128_v14 = vmul.f32 %v6029_v49, %v2126_v37 }
 0x5a9   :  { %2215 = vmatpush1.bf16.msra.mxu0 %v2145_v61 }
 0x5aa   :  { %2216 = vmatprep.subr.bf16.mxu0 %v5070_v5  ;;  %v2147_v49 = vpack.c.bf16 %v2128_v14, %v2127_v44 }
 0x5ab   :  { %v4920_v7 = vpop.eup %4919 }
 0x5ac   :  { %v1585_v42 = vadd.f32 1.0, %v4920_v7 }
 0x5ad   :  { %2217 = vmatpush1.bf16.msra.mxu0 %v2146_v40 }
 0x5ae   :  { %4921 = vrcp.f32 %v1585_v42  ;;  %2218 = vmatprep.subr.bf16.mxu0 %v5070_v5 }
 0x5b1   :  { %2219 = vmatpush1.bf16.msra.mxu0 %v2147_v49 }
 0x5b2   :  { %2220 = vmatprep.subr.bf16.mxu0 %v5070_v5 }
 0x5b8   :  { %v6344_v8 = vpop.eup %4921 }
 0x5b9   :  { %4025 = vst [vmem:[%s7621_s22] sm:$0xf] %v6344_v8  ;;  %v6351_v46 = vrot.slane %v6344_v8, %v1637_v0  ;;  %v6354_v60 = vrot.slane %v6344_v8, %v1681_v13  ;;  %v6357_v7 = vrot.slane %v6344_v8, %v1733_v21  ;;  %v6360_v39 = vrot.slane %v6344_v8, %v1785_v20  ;;  %v138_v20 = vld [vmem:[%s7652_s24 + $0x18] sm:$0xff] }
 0x5bb   :  { %v1642_v11 = vmul.f32 %v6351_v46, %v6269_v26  ;;  %v1686_v42 = vmul.f32 %v6354_v60, %v6271_v25  ;;  %v1738_v51 = vmul.f32 %v6357_v7, %v6277_v9  ;;  %v1790_v22 = vmul.f32 %v6360_v39, %v6289_v48 }
 0x5bc   :  { %v1788_v59 = vmul.f32 %v6360_v39, %v6293_v24  ;;  %v1644_v36 = vmul.f32 %v6351_v46, %v6279_v30  ;;  %v1688_v63 = vmul.f32 %v6354_v60, %v6291_v4  ;;  %v1740_v26 = vmul.f32 %v6357_v7, %v6295_v27 }
 0x5bd   :  { %v1694_v25 = vadd.f32 %v1686_v42, %v1642_v11  ;;  %v6381_v9 = vmul.f32 %v6360_v39, %v6297_v56  ;;  %v1645_v48 = vmul.f32 %v6351_v46, %v6299_v54  ;;  %v1640_v24 = vmul.f32 %v6351_v46, %v6261_v23 }
 0x5be   :  { %v1696_v30 = vadd.f32 %v1688_v63, %v1644_v36  ;;  %v1684_v4 = vmul.f32 %v6354_v60, %v6263_v18  ;;  %v1736_v27 = vmul.f32 %v6357_v7, %v6301_v34  ;;  %v1689_v61 = vmul.f32 %v6354_v60, %v6303_v33  ;;  %v146_v18 = vld [vmem:[%s7653_s29 + $0x18] sm:$0xff] }
 0x5bf   :  { %v1746_v56 = vadd.f32 %v1738_v51, %v1694_v25  ;;  %v1739_v32 = vmul.f32 %v6357_v7, %v6305_v35  ;;  %v1690_v54 = vmul.f32 %v6354_v60, %v6307_v50  ;;  %v1742_v23 = vmul.f32 %v6357_v7, %v6309_v2  ;;  %v148_v35 = vld [vmem:[%s7653_s29 + $0x28] sm:$0xff] }
 0x5c0   :  { %v1748_v38 = vadd.f32 %v1740_v26, %v1696_v30  ;;  %v1692_v0 = vadd.f32 %v1684_v4, %v1640_v24  ;;  %v1697_v34 = vadd.f32 %v1689_v61, %v1645_v48  ;;  %v1792_v33 = vmul.f32 %v6360_v39, %v6311_v29 }
 0x5c1   :  { %v1798_v13 = vadd.f32 %v1790_v22, %v1746_v56  ;;  %v1639_v50 = vmul.f32 %v6351_v46, %v6313_v28  ;;  %v1683_v2 = vmul.f32 %v6354_v60, %v6283_v41  ;;  %v1735_v21 = vmul.f32 %v6357_v7, %v6265_v62  ;;  %v140_v41 = vld [vmem:[%s7652_s24 + $0x28] sm:$0xff] }
 0x5c2   :  { %v1744_v40 = vadd.f32 %v1736_v27, %v1692_v0  ;;  %v1800_v29 = vadd.f32 %v1792_v33, %v1748_v38  ;;  %v1787_v17 = vmul.f32 %v6360_v39, %v6273_v55  ;;  %v1741_v37 = vmul.f32 %v6357_v7, %v6315_v6 }
 0x5c3   :  { %v1806_v44 = vsub.f32 1.0, %v1798_v13  ;;  %v1822_v28 = vmul.f32 %v1798_v13, %v146_v18  ;;  %v1691_v14 = vadd.f32 %v1683_v2, %v1639_v50  ;;  %v1643_v62 = vmul.f32 %v6351_v46, %v6317_v43  ;;  %v2130_v43 = vpop.permute.xlu0 %2129  ;;  %v6464_v50 = vld [vmem:[%s7652_s24] sm:$0xff] }
 0x5c4   :  { %v1796_v49 = vadd.f32 %v1788_v59, %v1744_v40  ;;  %v1808_v11 = vsub.f32 1.0, %v1800_v29  ;;  %v1824_v42 = vmul.f32 %v1800_v29, %v148_v35  ;;  %v1749_v51 = vadd.f32 %v1741_v37, %v1697_v34  ;;  %v2132_v59 = vpop.permute.xlu1 %2131  ;;  %v150_v37 = vld [vmem:[%s7653_s29 + $0x38] sm:$0xff] }
 0x5c5   :  { %v1814_v22 = vmul.f32 %v1806_v44, %v138_v20  ;;  %v1743_v36 = vadd.f32 %v1735_v21, %v1691_v14  ;;  %v1687_v55 = vmul.f32 %v6354_v60, %v6281_v57  ;;  %v1793_v6 = vmul.f32 %v6360_v39, %v6319_v31  ;;  %v149_v57 = vld [vmem:[%s7653_s29 + $0x30] sm:$0xff]  ;;  %v4933_v31 = vld [vmem:[%s7652_s24 + $0x8] sm:$0xff] }
 0x5c6   :  { %v1804_v63 = vsub.f32 1.0, %v1796_v49  ;;  %v1820_v26 = vmul.f32 %v6234_v19, %v1796_v49  ;;  %v1816_v25 = vmul.f32 %v1808_v11, %v140_v41  ;;  %v1646_v48 = vmul.f32 %v6351_v46, %v6321_v52  ;;  %v141_v52 = vld [vmem:[%s7652_s24 + $0x30] sm:$0xff] }
 0x5c7   :  { %v6433_v24 = vadd.f32 %v1822_v28, %v1814_v22  ;;  %v1795_v30 = vadd.f32 %v1787_v17, %v1743_v36  ;;  %v1695_v4 = vadd.f32 %v1687_v55, %v1643_v62  ;;  %v1801_v27 = vadd.f32 %v1793_v6, %v1749_v51  ;;  %v142_v17 = vld [vmem:[%s7652_s24 + $0x38] sm:$0xff]  ;;  %v145_v6 = vld [vmem:[%s7653_s29 + $0x10] sm:$0xff] }
 0x5c8   :  { %v1812_v19 = vmul.f32 %v4933_v31, %v1804_v63  ;;  %v6441_v61 = vadd.f32 %v1824_v42, %v1816_v25  ;;  %v1698_v56 = vadd.f32 %v1690_v54, %v1646_v48  ;;  %v1794_v18 = vmul.f32 %v6360_v39, %v6323_v3  ;;  %v4836_v31 = vld [vmem:[#allocation8 + $0x20] ss:$8 sps:$4 sm:$0xff]  }
 0x5c9   :  { %4012 = vst [vmem:[%s7619_s20 + $0x18] sm:$0xff] %v6433_v24  ;;  %v1803_v38 = vsub.f32 1.0, %v1795_v30  ;;  %v1819_v0 = vmul.f32 %v6085_v47, %v1795_v30  ;;  %v1747_v34 = vadd.f32 %v1739_v32, %v1695_v4  ;;  %v1809_v33 = vsub.f32 1.0, %v1801_v27  ;;  %v4828_v30 = vld [vmem:[#allocation8 + $0x14] ss:$8 sps:$4 sm:$0xff]  }
 0x5ca   :  { %v6453_v13 = vadd.f32 %v1820_v26, %v1812_v19  ;;  %4014 = vst [vmem:[%s7619_s20 + $0x28] sm:$0xff] %v6441_v61  ;;  %v1825_v54 = vmul.f32 %v1801_v27, %v149_v57  ;;  %v1750_v35 = vadd.f32 %v1742_v23, %v1698_v56  ;;  %v1641_v3 = vmul.f32 %v6351_v46, %v6267_v16  ;;  %v139_v16 = vld [vmem:[%s7652_s24 + $0x20] sm:$0xff]  ;;  %v4830_v4 = vld [vmem:[#allocation8 + $0x10] ss:$8 sps:$4 sm:$0xff]   ;;  %v4834_v27 = vld [vmem:[#allocation8 + $0x24] ss:$8 sps:$4 sm:$0xff]  }
 0x5cb   :  { %v1811_v47 = vmul.f32 %v6464_v50, %v1803_v38  ;;  %v1799_v32 = vadd.f32 %v6381_v9, %v1747_v34  ;;  %v1817_v2 = vmul.f32 %v1809_v33, %v141_v52  ;;  %v1685_v21 = vmul.f32 %v6354_v60, %v6287_v45  ;;  %v147_v46 = vld [vmem:[%s7653_s29 + $0x20] sm:$0xff]  ;;  %v2136_v45 = vpop.permute.xlu0 %2135  ;;  %v2138_v60 = vpop.permute.xlu1 %2137 }
 0x5cc   :  { %4010 = vst [vmem:[%s7619_s20 + $0x8] sm:$0xff] %v6453_v13  ;;  %v1802_v23 = vadd.f32 %v1794_v18, %v1750_v35  ;;  %1891 = vrot.lane.b32.xlu1 %v6453_v13, %s5072_s26  ;;  %v2133_v9 = vmul.f32 %v6168_v10, %v2130_v43  ;;  %v1737_v44 = vmul.f32 %v6357_v7, %v6275_v58  ;;  %v4822_v43 = vld [vmem:[#allocation8 + $0x4] ss:$8 sps:$4 sm:$0xff]   ;;  %v153_v57 = vmax.f32 %v6464_v50, 0.0  ;;  %v4840_v38 = vld [vmem:[#allocation8 + $0x34] ss:$8 sps:$4 sm:$0xff]  }
 0x5cd   :  { %v6483_v20 = vadd.f32 %v1819_v0, %v1811_v47  ;;  %v1807_v40 = vsub.f32 1.0, %v1799_v32  ;;  %v6485_v29 = vadd.f32 %v1825_v54, %v1817_v2  ;;  %v1693_v41 = vadd.f32 %v1685_v21, %v1641_v3  ;;  %4109 = vmatprep.mubr.msk.bf16.mxu0 %vm447_vm0, %v4822_v43  ;;  %v4842_v0 = vld [vmem:[#allocation8 + $0x30] ss:$8 sps:$4 sm:$0xff]   ;;  %v6655_v34 = vld [vmem:[#allocation5 + $0x2] ss:$0 sm:$0xff] }
 0x5ce   :  { %v1810_v28 = vsub.f32 1.0, %v1802_v23  ;;  %v1789_v14 = vmul.f32 %v6360_v39, %v6285_v53  ;;  %v2134_v62 = vmul.f32 %v6168_v10, %v2132_v59  ;;  %v1823_v11 = vmul.f32 %v1799_v32, %v147_v46  ;;  %v4824_v59 = vld [vmem:[#allocation8] ss:$8 sps:$4 sm:$0xff]   ;;  %v6666_v2 = vld [vmem:[#allocation5] ss:$0 sm:$0xff] }
 0x5cf   :  { %4009 = vst [vmem:[%s7619_s20] sm:$0xff] %v6483_v20  ;;  %v1815_v49 = vmul.f32 %v1807_v40, %v139_v16  ;;  %4015 = vst [vmem:[%s7619_s20 + $0x30] sm:$0xff] %v6485_v29  ;;  %1889 = vrot.lane.b32.xlu0 %v6483_v20, %s5072_s26  ;;  %v2139_v58 = vmul.f32 %v6209_v1, %v2136_v45  ;;  %v2140_v53 = vmul.f32 %v6209_v1, %v2138_v60  ;;  %v137_v1 = vld [vmem:[%s7652_s24 + $0x10] sm:$0xff] }
 0x5d0   :  { %v1818_v10 = vmul.f32 %v1810_v28, %v142_v17  ;;  %v1826_v7 = vmul.f32 %v1802_v23, %v150_v37  ;;  %1843 = vrot.lane.b32.xlu1 %v6453_v13, %s5071_s6  ;;  %v1745_v39 = vadd.f32 %v1737_v44, %v1693_v41  ;;  %v2148_v42 = vpack.c.bf16 %v2134_v62, %v2133_v9  ;;  %v4843_v60 = vld [vmem:[%s7611_s12 + $0x10] ss:$20 sps:$4 sm:$0xff]  }
 0x5d1   :  { %v6512_v51 = vadd.f32 %v1823_v11, %v1815_v49  ;;  %v2149_v55 = vpack.c.bf16 %v2140_v53, %v2139_v58  ;;  %v154_v19 = vmin.f32 %v153_v57, 1.0  ;;  %v1835_v18 = vsub.f32 1.0, %v6344_v8  ;;  %v2723_v57 = vld [vmem:[%s7614_s15] sm:$0xff] }
 0x5d2   :  { %v6514_v22 = vadd.f32 %v1826_v7, %v1818_v10  ;;  %v1797_v36 = vadd.f32 %v1789_v14, %v1745_v39  ;;  %2221 = vmatpush1.bf16.msra.mxu0 %v2148_v42  ;;  %v7663_v3 = vstv %s5284_s9  ;;  %v1838_v16 = vmul.f32 %v6344_v8, %v6344_v8 }
 0x5d3   :  { %4013 = vst [vmem:[%s7619_s20 + $0x20] sm:$0xff] %v6512_v51  ;;  %1841 = vrot.lane.b32.xlu0 %v6483_v20, %s5071_s6  ;;  %2222 = vmatprep.subr.bf16.mxu0 %v5070_v5  ;;  %v4821_v5 = vld [vmem:[%s7611_s12 + $0x4] ss:$20 sps:$4 sm:$0xff]   ;;  %v156_v56 = vmul.f32 %v155_v12, %v154_v19  ;;  %v1836_v47 = vmul.f32 %v1835_v18, %v1835_v18 }
 0x5d4   :  { %4016 = vst [vmem:[%s7619_s20 + $0x38] sm:$0xff] %v6514_v22  ;;  %1895 = vrot.lane.b32.xlu1 %v6433_v24, %s5072_s26  ;;  %v1805_v63 = vsub.f32 1.0, %v1797_v36  ;;  %v1821_v25 = vmul.f32 %v1797_v36, %v145_v6  ;;  %2415 = vmatprep.mubr.bf16.mxu1 %v4821_v5  ;;  %v1839_v17 = vmul.f32 %v1838_v16, %v5306_v15 }
 0x5d5   :  { %v158_v50 = vadd.f32 %v7663_v3, %v156_v56  ;;  %v6720_v56 = vld [vmem:[#allocation5 + $0x3] ss:$0 sm:$0xff] }
 0x5d6   :  { %v1813_v26 = vmul.f32 %v1805_v63, %v137_v1  ;;  %2223 = vmatpush1.bf16.msra.mxu0 %v2149_v55 }
 0x5d7   :  { %v1837_v45 = vmul.f32 %v1836_v47, %v158_v50  ;;  %v2728_v50 = vld [vmem:[%s7614_s15 + $0x28] sm:$0xff] }
 0x5d8   :  { %v6535_v48 = vadd.f32 %v1821_v25, %v1813_v26  ;;  %1847 = vrot.lane.b32.xlu1 %v6433_v24, %s5071_s6 }
 0x5d9   :  { %2239 = vmatmul.mubr.bf16.vlgmr.msra.gmra.mrb[36].mxu0 %v4824_v59  ;;  %v6685_v37 = vadd.f32 %v1839_v17, %v1837_v45 }
 0x5da   :  { %4011 = vst [vmem:[%s7619_s20 + $0x10] sm:$0xff] %v6535_v48  ;;  %1893 = vrot.lane.b32.xlu0 %v6535_v48, %s5072_s26  ;;  %4110 = vmatprep.mubr.msk.bf16.mxu0 %vm447_vm0, %v4828_v30 }
 0x5dc   :  { %1899 = vrot.lane.b32.xlu1 %v6441_v61, %s5072_s26 }
 0x5de   :  { %1845 = vrot.lane.b32.xlu0 %v6535_v48, %s5071_s6 }
 0x5e0   :  { %1851 = vrot.lane.b32.xlu1 %v6441_v61, %s5071_s6 }
 0x5e1   :  { %2247 = vmatmul.mubr.bf16.gmra.mrb[40].mxu0 %v4830_v4 }
 0x5e2   :  { %1897 = vrot.lane.b32.xlu0 %v6512_v51, %s5072_s26  ;;  %4111 = vmatprep.mubr.msk.bf16.mxu0 %vm447_vm0, %v4834_v27 }
 0x5e4   :  { %1903 = vrot.lane.b32.xlu1 %v6514_v22, %s5072_s26 }
 0x5e6   :  { %1849 = vrot.lane.b32.xlu0 %v6512_v51, %s5071_s6 }
 0x5e8   :  { %1855 = vrot.lane.b32.xlu1 %v6514_v22, %s5071_s6 }
 0x5e9   :  { %2255 = vmatmul.mubr.bf16.gmra.mrb[44].mxu0 %v4836_v31 }
 0x5ea   :  { %1901 = vrot.lane.b32.xlu0 %v6485_v29, %s5072_s26  ;;  %4112 = vmatprep.mubr.msk.bf16.mxu0 %vm447_vm0, %v4840_v38  ;;  %v2726_v38 = vld [vmem:[%s7614_s15 + $0x18] sm:$0xff] }
 0x5ec   :  { %1915 = vrot.lane.b32.xlu1 %v6453_v13, %s7657_s23 }
 0x5ee   :  { %1853 = vrot.lane.b32.xlu0 %v6485_v29, %s5071_s6 }
 0x5f0   :  { %1867 = vrot.lane.b32.xlu1 %v6453_v13, %s7659_s21 }
 0x5f1   :  { %2263 = vmatmul.mubr.bf16.gmra.mrb[48].mxu0 %v4842_v0 }
 0x5f2   :  { %1913 = vrot.lane.b32.xlu0 %v6483_v20, %s7657_s23  ;;  %4666 = vmatprep.mubr.msk.bf16.mxu0 %vm989_vm3, %v4843_v60  ;;  %v2724_v60 = vld [vmem:[%s7614_s15 + $0x8] sm:$0xff] }
 0x5f4   :  { %1919 = vrot.lane.b32.xlu1 %v6433_v24, %s7657_s23 }
 0x5f6   :  { %1865 = vrot.lane.b32.xlu0 %v6483_v20, %s7659_s21 }
 0x5f8   :  { %1871 = vrot.lane.b32.xlu1 %v6433_v24, %s7659_s21 }
 0x5fa   :  { %1917 = vrot.lane.b32.xlu0 %v6535_v48, %s7657_s23 }
 0x5fc   :  { %1923 = vrot.lane.b32.xlu1 %v6441_v61, %s7657_s23 }
 0x5fe   :  { %1869 = vrot.lane.b32.xlu0 %v6535_v48, %s7659_s21 }
 0x600   :  { %1875 = vrot.lane.b32.xlu1 %v6441_v61, %s7659_s21 }
 0x602   :  { %1921 = vrot.lane.b32.xlu0 %v6512_v51, %s7657_s23 }
 0x604   :  { %1927 = vrot.lane.b32.xlu1 %v6514_v22, %s7657_s23 }
 0x606   :  { %1873 = vrot.lane.b32.xlu0 %v6512_v51, %s7659_s21 }
 0x608   :  { %1879 = vrot.lane.b32.xlu1 %v6514_v22, %s7659_s21 }
 0x60a   :  { %1925 = vrot.lane.b32.xlu0 %v6485_v29, %s7657_s23 }
 0x60c   :  { %1963 = vrot.lane.b32.xlu1 %v6453_v13, %s7658_s14 }
 0x60e   :  { %1877 = vrot.lane.b32.xlu0 %v6485_v29, %s7659_s21 }
 0x610   :  { %1967 = vrot.lane.b32.xlu1 %v6433_v24, %s7658_s14 }
 0x612   :  { %1961 = vrot.lane.b32.xlu0 %v6483_v20, %s7658_s14 }
 0x614   :  { %1971 = vrot.lane.b32.xlu1 %v6441_v61, %s7658_s14 }
 0x616   :  { %1965 = vrot.lane.b32.xlu0 %v6535_v48, %s7658_s14 }
 0x618   :  { %1975 = vrot.lane.b32.xlu1 %v6514_v22, %s7658_s14 }
 0x61a   :  { %1969 = vrot.lane.b32.xlu0 %v6512_v51, %s7658_s14 }
 0x61c   :  { %2011 = vrot.lane.b32.xlu1 %v6453_v13, %s7662_s5 }
 0x61e   :  { %1973 = vrot.lane.b32.xlu0 %v6485_v29, %s7658_s14 }
 0x620   :  { %1987 = vrot.lane.b32.xlu1 %v6453_v13, %s7660_s1 }
 0x622   :  { %2009 = vrot.lane.b32.xlu0 %v6483_v20, %s7662_s5 }
 0x624   :  { %1939 = vrot.lane.b32.xlu1 %v6453_v13, %s7661_s13 }
 0x626   :  { %1985 = vrot.lane.b32.xlu0 %v6483_v20, %s7660_s1 }
 0x628   :  { %2015 = vrot.lane.b32.xlu1 %v6433_v24, %s7662_s5 }
 0x62a   :  { %1937 = vrot.lane.b32.xlu0 %v6483_v20, %s7661_s13 }
 0x62c   :  { %1991 = vrot.lane.b32.xlu1 %v6433_v24, %s7660_s1 }
 0x62e   :  { %2013 = vrot.lane.b32.xlu0 %v6535_v48, %s7662_s5 }
 0x630   :  { %1943 = vrot.lane.b32.xlu1 %v6433_v24, %s7661_s13 }
 0x632   :  { %1989 = vrot.lane.b32.xlu0 %v6535_v48, %s7660_s1 }
 0x634   :  { %2019 = vrot.lane.b32.xlu1 %v6441_v61, %s7662_s5 }
 0x636   :  { %1941 = vrot.lane.b32.xlu0 %v6535_v48, %s7661_s13 }
 0x638   :  { %1995 = vrot.lane.b32.xlu1 %v6441_v61, %s7660_s1 }
 0x63a   :  { %2017 = vrot.lane.b32.xlu0 %v6512_v51, %s7662_s5 }
 0x63c   :  { %1947 = vrot.lane.b32.xlu1 %v6441_v61, %s7661_s13 }
 0x63e   :  { %1993 = vrot.lane.b32.xlu0 %v6512_v51, %s7660_s1  ;;  %v1892_v52 = vpop.permute.xlu1 %1891 }
 0x63f   :  { %v1906_v33 = vmul.f32 %v6655_v34, %v1892_v52 }
 0x640   :  { %2023 = vrot.lane.b32.xlu1 %v6514_v22, %s7662_s5 }
 0x641   :  { %v1890_v54 = vpop.permute.xlu0 %1889 }
 0x642   :  { %1945 = vrot.lane.b32.xlu0 %v6512_v51, %s7661_s13  ;;  %v1905_v35 = vmul.f32 %v6655_v34, %v1890_v54  ;;  %v1844_v12 = vpop.permute.xlu1 %1843 }
 0x643   :  { %v1858_v21 = vmul.f32 %v6666_v2, %v1844_v12  ;;  %v6727_v12 = vld [vmem:[#allocation5 + $0x1] ss:$0 sm:$0xff] }
 0x644   :  { %v2041_v32 = vpack.c.bf16 %v1906_v33, %v1905_v35  ;;  %1999 = vrot.lane.b32.xlu1 %v6514_v22, %s7660_s1 }
 0x645   :  { %v1842_v46 = vpop.permute.xlu0 %1841 }
 0x646   :  { %2021 = vrot.lane.b32.xlu0 %v6485_v29, %s7662_s5  ;;  %v1857_v23 = vmul.f32 %v6666_v2, %v1842_v46  ;;  %4339 = vmatprep.subr.bf16.mxu1 %v2041_v32  ;;  %v1896_v9 = vpop.permute.xlu1 %1895 }
 0x647   :  { %v1908_v44 = vmul.f32 %v6655_v34, %v1896_v9 }
 0x648   :  { %v2033_v40 = vpack.c.bf16 %v1858_v21, %v1857_v23  ;;  %1951 = vrot.lane.b32.xlu1 %v6514_v22, %s7661_s13  ;;  %v2730_v23 = vld [vmem:[%s7614_s15 + $0x38] sm:$0xff] }
 0x64a   :  { %1997 = vrot.lane.b32.xlu0 %v6485_v29, %s7660_s1  ;;  %4340 = vmatpush3.bf16.msra.mxu1 %v2033_v40  ;;  %v1848_v8 = vpop.permute.xlu1 %1847 }
 0x64b   :  { %v1860_v62 = vmul.f32 %v6666_v2, %v1848_v8 }
 0x64c   :  { %v1894_v28 = vpop.permute.xlu0 %1893  ;;  %2581 = vrot.lane.b32.xlu1 %v6685_v37, %s7659_s21 }
 0x64d   :  { %v1907_v41 = vmul.f32 %v6655_v34, %v1894_v28 }
 0x64e   :  { %1949 = vrot.lane.b32.xlu0 %v6485_v29, %s7661_s13  ;;  %v1900_v15 = vpop.permute.xlu1 %1899 }
 0x64f   :  { %v2042_v14 = vpack.c.bf16 %v1908_v44, %v1907_v41  ;;  %v1910_v10 = vmul.f32 %v6655_v34, %v1900_v15  ;;  %v2725_v44 = vld [vmem:[%s7614_s15 + $0x10] sm:$0xff] }
 0x650   :  { %v1846_v49 = vpop.permute.xlu0 %1845  ;;  %2587 = vrot.lane.b32.xlu1 %v6685_v37, %s7657_s23 }
 0x651   :  { %v1859_v11 = vmul.f32 %v6666_v2, %v1846_v49  ;;  %4341 = vmatprep.subr.bf16.mxu1 %v2042_v14  ;;  %v2727_v49 = vld [vmem:[%s7614_s15 + $0x20] sm:$0xff] }
 0x652   :  { %2578 = vrot.lane.b32.xlu0 %v6685_v37, %s5071_s6  ;;  %v1852_v58 = vpop.permute.xlu1 %1851 }
 0x653   :  { %v2034_v53 = vpack.c.bf16 %v1860_v62, %v1859_v11  ;;  %v1862_v55 = vmul.f32 %v6666_v2, %v1852_v58 }
 0x654   :  { %v1898_v7 = vpop.permute.xlu0 %1897  ;;  %2593 = vrot.lane.b32.xlu1 %v6685_v37, %s7658_s14 }
 0x655   :  { %v1909_v39 = vmul.f32 %v6655_v34, %v1898_v7  ;;  %4342 = vmatpush3.bf16.msra.mxu1 %v2034_v53 }
 0x656   :  { %2584 = vrot.lane.b32.xlu0 %v6685_v37, %s5072_s26  ;;  %v1904_v42 = vpop.permute.xlu1 %1903 }
 0x657   :  { %v2043_v36 = vpack.c.bf16 %v1910_v10, %v1909_v39  ;;  %v1912_v25 = vmul.f32 %v6655_v34, %v1904_v42  ;;  %v2729_v39 = vld [vmem:[%s7614_s15 + $0x30] sm:$0xff] }
 0x658   :  { %v1850_v1 = vpop.permute.xlu0 %1849  ;;  %2599 = vrot.lane.b32.xlu1 %v6685_v37, %s7662_s5 }
 0x659   :  { %v1861_v6 = vmul.f32 %v6666_v2, %v1850_v1  ;;  %4343 = vmatprep.subr.bf16.mxu1 %v2043_v36 }
 0x65a   :  { %2590 = vrot.lane.b32.xlu0 %v6685_v37, %s7661_s13  ;;  %v1856_v63 = vpop.permute.xlu1 %1855 }
 0x65b   :  { %v2035_v26 = vpack.c.bf16 %v1862_v55, %v1861_v6  ;;  %v1864_v4 = vmul.f32 %v6666_v2, %v1856_v63 }
 0x65c   :  { %v1902_v5 = vpop.permute.xlu0 %1901  ;;  %2738 = vperm.xlu1 %4769, %v2724_v60  }
 0x65d   :  { %v1911_v43 = vmul.f32 %v6655_v34, %v1902_v5  ;;  %4344 = vmatpush3.bf16.msra.mxu1 %v2035_v26 }
 0x65e   :  { %2596 = vrot.lane.b32.xlu0 %v6685_v37, %s7660_s1  ;;  %v1916_v59 = vpop.permute.xlu1 %1915 }
 0x65f   :  { %v2044_v30 = vpack.c.bf16 %v1912_v25, %v1911_v43  ;;  %v1930_v18 = vmul.f32 %v6720_v56, %v1916_v59 }
 0x660   :  { %v1854_v27 = vpop.permute.xlu0 %1853  ;;  %2743 = vperm.xlu1 %4769, %v2725_v44   ;;  %v6789_v44 = vld [vmem:[#allocation5 + $0x8] ss:$0 sm:$0xff] }
 0x661   :  { %v1863_v31 = vmul.f32 %v6666_v2, %v1854_v27  ;;  %4345 = vmatprep.subr.bf16.mxu1 %v2044_v30  ;;  %v6761_v27 = vld [vmem:[#allocation5 + $0x6] ss:$0 sm:$0xff] }
 0x662   :  { %2733 = vperm.xlu0 %4767, %v2723_v57   ;;  %v1868_v19 = vpop.permute.xlu1 %1867 }
 0x663   :  { %v2036_v52 = vpack.c.bf16 %v1864_v4, %v1863_v31  ;;  %v1882_v3 = vmul.f32 %v6727_v12, %v1868_v19 }
 0x664   :  { %v1914_v0 = vpop.permute.xlu0 %1913  ;;  %2753 = vperm.xlu1 %4769, %v2727_v49  }
 0x665   :  { %v1929_v33 = vmul.f32 %v6720_v56, %v1914_v0  ;;  %4346 = vmatpush3.bf16.msra.mxu1 %v2036_v52  ;;  %v4819_v52 = vld [vmem:[%s7611_s12] ss:$20 sps:$4 sm:$0xff]  }
 0x666   :  { %2748 = vperm.xlu0 %4767, %v2726_v38   ;;  %v1920_v54 = vpop.permute.xlu1 %1919  ;;  %v4825_v38 = vld [vmem:[%s7611_s12 + $0x2c] ss:$20 sps:$4 sm:$0xff]  }
 0x667   :  { %v2045_v35 = vpack.c.bf16 %v1930_v18, %v1929_v33  ;;  %v1932_v46 = vmul.f32 %v6720_v56, %v1920_v54 }
 0x668   :  { %v1866_v47 = vpop.permute.xlu0 %1865  ;;  %2763 = vperm.xlu1 %4769, %v2729_v39  }
 0x669   :  { %v1881_v32 = vmul.f32 %v6727_v12, %v1866_v47  ;;  %4347 = vmatprep.subr.bf16.mxu1 %v2045_v35 }
 0x66a   :  { %2758 = vperm.xlu0 %4767, %v2728_v50   ;;  %v1872_v21 = vpop.permute.xlu1 %1871 }
 0x66b   :  { %v2037_v16 = vpack.c.bf16 %v1882_v3, %v1881_v32  ;;  %v1884_v8 = vmul.f32 %v6727_v12, %v1872_v21  ;;  %v2049_v3 = vpack.c.bf16 %v6453_v13, %v6483_v20  ;;  %v4831_v13 = vld [vmem:[%s7611_s12 + $0x54] ss:$20 sps:$4 sm:$0xff]  }
 0x66c   :  { %v1918_v9 = vpop.permute.xlu0 %1917 }
 0x66d   :  { %v1931_v45 = vmul.f32 %v6720_v56, %v1918_v9  ;;  %4348 = vmatpush3.bf16.msra.mxu1 %v2037_v16 }
 0x66e   :  { %2768 = vperm.xlu0 %4767, %v2730_v23   ;;  %v1924_v40 = vpop.permute.xlu1 %1923  ;;  %v4827_v23 = vld [vmem:[%s7611_s12 + $0x28] ss:$20 sps:$4 sm:$0xff]  }
 0x66f   :  { %v2046_v17 = vpack.c.bf16 %v1932_v46, %v1931_v45  ;;  %v1934_v62 = vmul.f32 %v6720_v56, %v1924_v40  ;;  %v2050_v46 = vpack.c.bf16 %v6433_v24, %v6535_v48  ;;  %v2051_v24 = vpack.c.bf16 %v6441_v61, %v6512_v51  ;;  %v4833_v61 = vld [vmem:[%s7611_s12 + $0x50] ss:$20 sps:$4 sm:$0xff]  }
 0x670   :  { %v1870_v28 = vpop.permute.xlu0 %1869 }
 0x671   :  { %v1883_v41 = vmul.f32 %v6727_v12, %v1870_v28  ;;  %4349 = vmatprep.subr.bf16.mxu1 %v2046_v17 }
 0x672   :  { %v1876_v15 = vpop.permute.xlu1 %1875 }
 0x673   :  { %v2038_v14 = vpack.c.bf16 %v1884_v8, %v1883_v41  ;;  %v1886_v7 = vmul.f32 %v6727_v12, %v1876_v15  ;;  %v2052_v15 = vpack.c.bf16 %v6514_v22, %v6485_v29 }
 0x674   :  { %v1922_v11 = vpop.permute.xlu0 %1921 }
 0x675   :  { %v1933_v58 = vmul.f32 %v6720_v56, %v1922_v11  ;;  %4350 = vmatpush3.bf16.msra.mxu1 %v2038_v14  ;;  %v4837_v14 = vld [vmem:[%s7611_s12 + $0x7c] ss:$20 sps:$4 sm:$0xff]   ;;  %v6801_v11 = vld [vmem:[#allocation5 + $0x7] ss:$0 sm:$0xff] }
 0x676   :  { %v1928_v53 = vpop.permute.xlu1 %1927 }
 0x677   :  { %v2047_v10 = vpack.c.bf16 %v1934_v62, %v1933_v58  ;;  %v1936_v6 = vmul.f32 %v6720_v56, %v1928_v53 }
 0x678   :  { %v1874_v42 = vpop.permute.xlu0 %1873 }
 0x679   :  { %v1885_v36 = vmul.f32 %v6727_v12, %v1874_v42  ;;  %4351 = vmatprep.subr.bf16.mxu1 %v2047_v10 }
 0x67a   :  { %v1880_v55 = vpop.permute.xlu1 %1879 }
 0x67b   :  { %v2039_v1 = vpack.c.bf16 %v1886_v7, %v1885_v36  ;;  %v1888_v43 = vmul.f32 %v6727_v12, %v1880_v55  ;;  %v6805_v7 = vld [vmem:[#allocation5 + $0x5] ss:$0 sm:$0xff]  ;;  %v4839_v36 = vld [vmem:[%s7611_s12 + $0x78] ss:$20 sps:$4 sm:$0xff]  }
 0x67c   :  { %v1926_v63 = vpop.permute.xlu0 %1925 }
 0x67d   :  { %v1935_v26 = vmul.f32 %v6720_v56, %v1926_v63  ;;  %4352 = vmatpush3.bf16.msra.mxu1 %v2039_v1  ;;  %v4846_v1 = vld [vmem:[%s7611_s12 + $0xc] ss:$20 sps:$4 sm:$0xff]  }
 0x67e   :  { %v1964_v25 = vpop.permute.xlu1 %1963 }
 0x67f   :  { %v2048_v5 = vpack.c.bf16 %v1936_v6, %v1935_v26  ;;  %v1978_v31 = vmul.f32 %v6761_v27, %v1964_v25 }
 0x680   :  { %v1878_v59 = vpop.permute.xlu0 %1877 }
 0x681   :  { %v1887_v30 = vmul.f32 %v6727_v12, %v1878_v59  ;;  %4353 = vmatprep.subr.bf16.mxu1 %v2048_v5 }
 0x682   :  { %v1968_v4 = vpop.permute.xlu1 %1967 }
 0x683   :  { %v2040_v57 = vpack.c.bf16 %v1888_v43, %v1887_v30  ;;  %v1980_v54 = vmul.f32 %v6761_v27, %v1968_v4 }
 0x684   :  { %v1962_v19 = vpop.permute.xlu0 %1961 }
 0x685   :  { %v1977_v18 = vmul.f32 %v6761_v27, %v1962_v19  ;;  %4354 = vmatpush3.bf16.msra.mxu1 %v2040_v57 }
 0x686   :  { %v1972_v0 = vpop.permute.xlu1 %1971 }
 0x687   :  { %v2057_v33 = vpack.c.bf16 %v1978_v31, %v1977_v18  ;;  %v1982_v21 = vmul.f32 %v6761_v27, %v1972_v0 }
 0x688   :  { %v1966_v35 = vpop.permute.xlu0 %1965  ;;  %2416 = vmatmul.mubr.bf16.vlgmr.msra.gmra.mrb[40].mxu1 %v4819_v52 }
 0x689   :  { %v1979_v50 = vmul.f32 %v6761_v27, %v1966_v35  ;;  %4379 = vmatprep.subr.bf16.mxu1 %v2057_v33  ;;  %2423 = vmatprep.mubr.bf16.mxu1 %v4825_v38 }
 0x68a   :  { %4380 = vmatpush3.bf16.msra.mxu1 %v2049_v3  ;;  %v1976_v47 = vpop.permute.xlu1 %1975 }
 0x68b   :  { %v2058_v32 = vpack.c.bf16 %v1980_v54, %v1979_v50  ;;  %v1984_v60 = vmul.f32 %v6761_v27, %v1976_v47 }
 0x68c   :  { %v1970_v16 = vpop.permute.xlu0 %1969 }
 0x68d   :  { %v1981_v9 = vmul.f32 %v6761_v27, %v1970_v16  ;;  %4381 = vmatprep.subr.bf16.mxu1 %v2058_v32 }
 0x68e   :  { %4382 = vmatpush3.bf16.msra.mxu1 %v2050_v46  ;;  %v2012_v20 = vpop.permute.xlu1 %2011 }
 0x68f   :  { %v2059_v45 = vpack.c.bf16 %v1982_v21, %v1981_v9  ;;  %v2026_v28 = vmul.f32 %v6789_v44, %v2012_v20 }
 0x690   :  { %v1974_v40 = vpop.permute.xlu0 %1973  ;;  %2424 = vmatmul.mubr.bf16.gmra.mrb[44].mxu1 %v4827_v23 }
 0x691   :  { %v1983_v48 = vmul.f32 %v6761_v27, %v1974_v40  ;;  %4383 = vmatprep.subr.bf16.mxu1 %v2059_v45  ;;  %2431 = vmatprep.mubr.bf16.mxu1 %v4831_v13 }
 0x692   :  { %4384 = vmatpush3.bf16.msra.mxu1 %v2051_v24  ;;  %v1988_v17 = vpop.permute.xlu1 %1987 }
 0x693   :  { %v2060_v8 = vpack.c.bf16 %v1984_v60, %v1983_v48  ;;  %v2002_v58 = vmul.f32 %v6801_v11, %v1988_v17 }
 0x694   :  { %v2010_v41 = vpop.permute.xlu0 %2009 }
 0x695   :  { %v2025_v51 = vmul.f32 %v6789_v44, %v2010_v41  ;;  %4385 = vmatprep.subr.bf16.mxu1 %v2060_v8 }
 0x696   :  { %4386 = vmatpush3.bf16.msra.mxu1 %v2052_v15  ;;  %v1940_v62 = vpop.permute.xlu1 %1939 }
 0x697   :  { %v2065_v49 = vpack.c.bf16 %v2026_v28, %v2025_v51  ;;  %v1954_v39 = vmul.f32 %v6805_v7, %v1940_v62 }
 0x698   :  { %v1986_v53 = vpop.permute.xlu0 %1985  ;;  %2432 = vmatmul.mubr.bf16.gmra.mrb[48].mxu1 %v4833_v61  ;;  %v4847_v61 = vld [vmem:[%s7611_s12 + $0x38] ss:$20 sps:$4 sm:$0xff]  }
 0x699   :  { %v2001_v29 = vmul.f32 %v6801_v11, %v1986_v53  ;;  %4658 = vmatprep.subr.bf16.mxu0 %v2065_v49  ;;  %2439 = vmatprep.mubr.bf16.mxu1 %v4837_v14  ;;  %v4851_v14 = vld [vmem:[%s7611_s12 + $0x60] ss:$20 sps:$4 sm:$0xff]  }
 0x69a   :  { %4659 = vmatpush3.bf16.msra.mxu0 %v2065_v49  ;;  %v2016_v22 = vpop.permute.xlu1 %2015 }
 0x69b   :  { %v2061_v10 = vpack.c.bf16 %v2002_v58, %v2001_v29  ;;  %v2028_v26 = vmul.f32 %v6789_v44, %v2016_v22 }
 0x69c   :  { %v1938_v42 = vpop.permute.xlu0 %1937 }
 0x69d   :  { %v1953_v55 = vmul.f32 %v6805_v7, %v1938_v42  ;;  %4387 = vmatprep.subr.bf16.mxu1 %v2061_v10  ;;  %v4844_v42 = vld [vmem:[%s7611_s12 + $0x8] ss:$20 sps:$4 sm:$0xff]  }
 0x69e   :  { %v1992_v6 = vpop.permute.xlu1 %1991 }
 0x69f   :  { %v2053_v63 = vpack.c.bf16 %v1954_v39, %v1953_v55  ;;  %v2004_v30 = vmul.f32 %v6801_v11, %v1992_v6  ;;  %v4848_v55 = vld [vmem:[%s7611_s12 + $0x34] ss:$20 sps:$4 sm:$0xff]  }
 0x6a0   :  { %v2014_v25 = vpop.permute.xlu0 %2013  ;;  %2440 = vmatmul.mubr.bf16.gmra.mrb[52].mxu1 %v4839_v36 }
 0x6a1   :  { %v2027_v5 = vmul.f32 %v6789_v44, %v2014_v25  ;;  %4388 = vmatpush3.bf16.msra.mxu1 %v2053_v63  ;;  %2480 = vmatprep.mubr.bf16.mxu1 %v4846_v1  ;;  %v4852_v63 = vld [vmem:[%s7611_s12 + $0x88] ss:$20 sps:$4 sm:$0xff]  }
 0x6a2   :  { %v1944_v43 = vpop.permute.xlu1 %1943  ;;  %v4856_v25 = vld [vmem:[#allocation9] sm:$0xff]  }
 0x6a3   :  { %v2066_v59 = vpack.c.bf16 %v2028_v26, %v2027_v5  ;;  %v1956_v52 = vmul.f32 %v6805_v7, %v1944_v43 }
 0x6a4   :  { %v1990_v4 = vpop.permute.xlu0 %1989 }
 0x6a5   :  { %v2003_v57 = vmul.f32 %v6801_v11, %v1990_v4  ;;  %4660 = vmatprep.subr.bf16.mxu0 %v2066_v59 }
 0x6a6   :  { %4661 = vmatpush3.bf16.msra.mxu0 %v2066_v59  ;;  %v2020_v31 = vpop.permute.xlu1 %2019 }
 0x6a7   :  { %v2062_v19 = vpack.c.bf16 %v2004_v30, %v2003_v57  ;;  %v2030_v54 = vmul.f32 %v6789_v44, %v2020_v31 }
 0x6a8   :  { %v1942_v18 = vpop.permute.xlu0 %1941 }
 0x6a9   :  { %v1955_v38 = vmul.f32 %v6805_v7, %v1942_v18  ;;  %4389 = vmatprep.subr.bf16.mxu1 %v2062_v19 }
 0x6aa   :  { %v1996_v0 = vpop.permute.xlu1 %1995 }
 0x6ab   :  { %v2054_v33 = vpack.c.bf16 %v1956_v52, %v1955_v38  ;;  %v2006_v32 = vmul.f32 %v6801_v11, %v1996_v0  ;;  %v4855_v38 = vld [vmem:[%s7611_s12 + $0x58] ss:$20 sps:$4 sm:$0xff]  }
 0x6ac   :  { %v2018_v35 = vpop.permute.xlu0 %2017 }
 0x6ad   :  { %v2029_v3 = vmul.f32 %v6789_v44, %v2018_v35  ;;  %4390 = vmatpush3.bf16.msra.mxu1 %v2054_v33  ;;  %v4857_v33 = vld [vmem:[#allocation9 + $0x8] sm:$0xff]   ;;  %v4860_v35 = vld [vmem:[%s7611_s12 + $0x80] ss:$20 sps:$4 sm:$0xff]  }
 0x6ae   :  { %v1948_v50 = vpop.permute.xlu1 %1947 }
 0x6af   :  { %v2067_v47 = vpack.c.bf16 %v2030_v54, %v2029_v3  ;;  %v1958_v9 = vmul.f32 %v6805_v7, %v1948_v50  ;;  %v4861_v54 = vld [vmem:[#allocation9 + $0x10] sm:$0xff]   ;;  %v4862_v3 = vld [vmem:[#allocation9 + $0x18] sm:$0xff]   ;;  %v2240_v50 = vpop.f32.mrb[36].mxu0 }
 0x6b0   :  { %v1994_v21 = vpop.permute.xlu0 %1993 }
 0x6b1   :  { %v2005_v16 = vmul.f32 %v6801_v11, %v1994_v21  ;;  %4662 = vmatprep.subr.bf16.mxu0 %v2067_v47 }
 0x6b2   :  { %4663 = vmatpush3.bf16.msra.mxu0 %v2067_v47  ;;  %v2024_v46 = vpop.permute.xlu1 %2023  ;;  %v2242_v47 = vpop.f32.mrb[37].mxu0 }
 0x6b3   :  { %v2063_v23 = vpack.c.bf16 %v2006_v32, %v2005_v16  ;;  %v2032_v40 = vmul.f32 %v6789_v44, %v2024_v46  ;;  %v2243_v32 = vpop.f32.mrb[38].mxu0 }
 0x6b4   :  { %v1946_v13 = vpop.permute.xlu0 %1945  ;;  %v2245_v21 = vpop.f32.mrb[39].mxu0 }
 0x6b5   :  { %v1957_v20 = vmul.f32 %v6805_v7, %v1946_v13  ;;  %4391 = vmatprep.subr.bf16.mxu1 %v2063_v23  ;;  %v2248_v16 = vpop.f32.mrb[40].mxu0 }
 0x6b6   :  { %v2000_v45 = vpop.permute.xlu1 %1999  ;;  %v2250_v46 = vpop.f32.mrb[41].mxu0 }
 0x6b7   :  { %v2055_v60 = vpack.c.bf16 %v1958_v9, %v1957_v20  ;;  %v2008_v28 = vmul.f32 %v6801_v11, %v2000_v45  ;;  %v2251_v23 = vpop.f32.mrb[42].mxu0 }
 0x6b8   :  { %v2022_v24 = vpop.permute.xlu0 %2021  ;;  %v2253_v9 = vpop.f32.mrb[43].mxu0 }
 0x6b9   :  { %v2031_v48 = vmul.f32 %v6789_v44, %v2022_v24  ;;  %4392 = vmatpush3.bf16.msra.mxu1 %v2055_v60 }
 0x6ba   :  { %v1952_v17 = vpop.permute.xlu1 %1951 }
 0x6bb   :  { %v2068_v8 = vpack.c.bf16 %v2032_v40, %v2031_v48  ;;  %v1960_v49 = vmul.f32 %v6805_v7, %v1952_v17 }
 0x6bc   :  { %v1998_v41 = vpop.permute.xlu0 %1997  ;;  %v2256_v13 = vpop.f32.mrb[44].mxu0 }
 0x6bd   :  { %v2007_v15 = vmul.f32 %v6801_v11, %v1998_v41  ;;  %4664 = vmatprep.subr.bf16.mxu0 %v2068_v8  ;;  %v2258_v20 = vpop.f32.mrb[45].mxu0 }
 0x6be   :  { %4665 = vmatpush3.bf16.msra.mxu0 %v2068_v8  ;;  %v2582_v51 = vpop.permute.xlu1 %2581  ;;  %v2259_v45 = vpop.f32.mrb[46].mxu0 }
 0x6bf   :  { %v2064_v62 = vpack.c.bf16 %v2008_v28, %v2007_v15  ;;  %v2583_v10 = vmul.f32 %v6727_v12, %v2582_v51  ;;  %v2261_v60 = vpop.f32.mrb[47].mxu0 }
 0x6c0   :  { %v1950_v58 = vpop.permute.xlu0 %1949 }
 0x6c1   :  { %v1959_v53 = vmul.f32 %v6805_v7, %v1950_v58  ;;  %4393 = vmatprep.subr.bf16.mxu1 %v2064_v62  ;;  %4667 = vmatmul.mubr.msk.bf16.vlgmr.msra.gmra.mrb[52].mxu0 %vm989_vm3, %v4847_v61 }
 0x6c2   :  { %v2588_v29 = vpop.permute.xlu1 %2587  ;;  %4670 = vmatprep.mubr.msk.bf16.mxu0 %vm989_vm3, %v4851_v14 }
 0x6c3   :  { %v2056_v22 = vpack.c.bf16 %v1960_v49, %v1959_v53  ;;  %v2589_v6 = vmul.f32 %v6720_v56, %v2588_v29  ;;  %v4850_v56 = vld [vmem:[%s7611_s12 + $0x30] ss:$20 sps:$4 sm:$0xff]  }
 0x6c4   :  { %v2579_v39 = vpop.permute.xlu0 %2578  ;;  %v2264_v40 = vpop.f32.mrb[48].mxu0 }
 0x6c5   :  { %v2580_v36 = vmul.f32 %v6666_v2, %v2579_v39  ;;  %4394 = vmatpush3.bf16.msra.mxu1 %v2056_v22  ;;  %v2266_v24 = vpop.f32.mrb[49].mxu0 }
 0x6c6   :  { %v2594_v26 = vpop.permute.xlu1 %2593  ;;  %v2267_v48 = vpop.f32.mrb[50].mxu0 }
 0x6c7   :  { %v2602_v1 = vpack.c.bf16 %v2583_v10, %v2580_v36  ;;  %v2595_v31 = vmul.f32 %v6761_v27, %v2594_v26  ;;  %v2269_v17 = vpop.f32.mrb[51].mxu0 }
 0x6c8   :  { %2481 = vmatmul.mubr.bf16.vlgmr.msra.gmra.mrb[56].mxu1 %v4844_v42  ;;  %v2585_v12 = vpop.permute.xlu0 %2584 }
 0x6c9   :  { %v2586_v5 = vmul.f32 %v6655_v34, %v2585_v12  ;;  %4674 = vmatprep.subr.bf16.mxu0 %v2602_v1  ;;  %2488 = vmatprep.mubr.bf16.mxu1 %v4848_v55  ;;  %v4853_v34 = vld [vmem:[%s7611_s12 + $0x5c] ss:$20 sps:$4 sm:$0xff]  }
 0x6ca   :  { %4675 = vmatpush3.bf16.msra.mxu0 %v2602_v1  ;;  %v2600_v30 = vpop.permute.xlu1 %2599 }
 0x6cb   :  { %v2603_v2 = vpack.c.bf16 %v2589_v6, %v2586_v5  ;;  %4671 = vmatmul.mubr.msk.bf16.gmra.mrb[56].mxu0 %vm989_vm3, %v4852_v63  ;;  %v2601_v19 = vmul.f32 %v6789_v44, %v2600_v30 }
 0x6cc   :  { %v2591_v43 = vpop.permute.xlu0 %2590  ;;  %4684 = vmatprep.mubr.msk.bf16.mxu0 %vm329_vm1, %v4856_v25 }
 0x6cd   :  { %v2592_v59 = vmul.f32 %v6805_v7, %v2591_v43  ;;  %4676 = vmatprep.subr.bf16.mxu0 %v2603_v2  ;;  %v2606_v0 = vpack.c.bf16 %v2601_v19, %v2601_v19 }
 0x6ce   :  { %4677 = vmatpush3.bf16.msra.mxu0 %v2603_v2 }
 0x6cf   :  { %v2604_v4 = vpack.c.bf16 %v2592_v59, %v6685_v37  ;;  %v4858_v37 = vld [vmem:[%s7611_s12 + $0x84] ss:$20 sps:$4 sm:$0xff]   ;;  %v2648_v44 = vsel %vm342_vm2, %v2606_v0, 0 }
 0x6d0   :  { %2489 = vmatmul.mubr.bf16.gmra.mrb[60].mxu1 %v4850_v56  ;;  %v2597_v57 = vpop.permute.xlu0 %2596 }
 0x6d1   :  { %v2598_v52 = vmul.f32 %v6801_v11, %v2597_v57  ;;  %4678 = vmatprep.subr.bf16.mxu0 %v2604_v4  ;;  %2496 = vmatprep.mubr.bf16.mxu1 %v4853_v34 }
 0x6d2   :  { %4679 = vmatpush3.bf16.msra.mxu0 %v2604_v4 }
 0x6d3   :  { %v2605_v18 = vpack.c.bf16 %v2598_v52, %v2595_v31 }
 0x6d5   :  { %4680 = vmatprep.subr.bf16.mxu0 %v2605_v18 }
 0x6d6   :  { %4681 = vmatpush3.bf16.msra.mxu0 %v2605_v18 }
 0x6d7   :  { %4725 = vmatprep.subr.msk.bf16.mxu0 %vm342_vm2, %v2606_v0 }
 0x6d8   :  { %2497 = vmatmul.mubr.bf16.gmra.mrb[64].mxu1 %v4855_v38 }
 0x6d9   :  { %2504 = vmatprep.mubr.bf16.mxu1 %v4858_v37 }
 0x6da   :  { %4683 = vmatpush3.bf16.msra.mxu0 %v2648_v44 }
 0x6dd   :  { %4685 = vmatmul.mubr.msk.bf16.vlgmr.msra.gmra.mrb[60].mxu0 %vm329_vm1, %v4857_v33 }
 0x6de   :  { %4688 = vmatprep.mubr.msk.bf16.mxu0 %vm329_vm1, %v4861_v54 }
 0x6e0   :  { %2505 = vmatmul.mubr.bf16.gmra.mrb[68].mxu1 %v4860_v35 }
 0x6e5   :  { %4689 = vmatmul.mubr.msk.bf16.gmra.mrb[64].mxu0 %vm329_vm1, %v4862_v3 }
 0x75b   :  { %v4355_v8 = vpop.f32.mrb[40].mxu1 }
 0x75c   :  { %v4356_v28 = vpop.f32.mrb[41].mxu1 }
 0x75d   :  { %v4357_v41 = vadd.f32 %v4356_v28, %v4355_v8  ;;  %v4358_v15 = vpop.f32.mrb[42].mxu1 }
 0x75e   :  { %v4359_v61 = vpop.f32.mrb[43].mxu1 }
 0x75f   :  { %v2418_v51 = vadd.f32 %v4357_v41, %v2240_v50  ;;  %v4360_v14 = vadd.f32 %v4359_v61, %v4358_v15 }
 0x761   :  { %v2421_v62 = vadd.f32 %v4360_v14, %v2243_v32 }
 0x763   :  { %v4361_v49 = vpop.f32.mrb[44].mxu1 }
 0x764   :  { %v4362_v58 = vpop.f32.mrb[45].mxu1 }
 0x765   :  { %v4363_v53 = vadd.f32 %v4362_v58, %v4361_v49  ;;  %v4364_v29 = vpop.f32.mrb[46].mxu1 }
 0x766   :  { %v4365_v22 = vpop.f32.mrb[47].mxu1 }
 0x767   :  { %v2426_v10 = vadd.f32 %v4363_v53, %v2248_v16  ;;  %v4366_v39 = vadd.f32 %v4365_v22, %v4364_v29  ;;  %v2734_v29 = vpop.permute.xlu0 %2733 }
 0x769   :  { %v2429_v42 = vadd.f32 %v4366_v39, %v2251_v23 }
 0x76b   :  { %v4367_v36 = vpop.f32.mrb[48].mxu1 }
 0x76c   :  { %v4368_v55 = vpop.f32.mrb[49].mxu1 }
 0x76d   :  { %v4369_v1 = vadd.f32 %v4368_v55, %v4367_v36  ;;  %v4370_v6 = vpop.f32.mrb[50].mxu1 }
 0x76e   :  { %v4371_v63 = vpop.f32.mrb[51].mxu1 }
 0x76f   :  { %v2434_v12 = vadd.f32 %v4369_v1, %v2256_v13  ;;  %v4372_v26 = vadd.f32 %v4371_v63, %v4370_v6 }
 0x771   :  { %v2437_v25 = vadd.f32 %v4372_v26, %v2259_v45  ;;  %v2739_v26 = vpop.permute.xlu1 %2738 }
 0x773   :  { %v4373_v5 = vpop.f32.mrb[52].mxu1 }
 0x774   :  { %v4374_v2 = vpop.f32.mrb[53].mxu1 }
 0x775   :  { %v4375_v43 = vadd.f32 %v4374_v2, %v4373_v5  ;;  %v4376_v56 = vpop.f32.mrb[54].mxu1 }
 0x776   :  { %v4377_v59 = vpop.f32.mrb[55].mxu1 }
 0x777   :  { %v2442_v34 = vadd.f32 %v4375_v43, %v2264_v40  ;;  %v4378_v30 = vadd.f32 %v4377_v59, %v4376_v56 }
 0x779   :  { %v2445_v4 = vadd.f32 %v4378_v30, %v2267_v48 }
 0x794   :  { %v4668_v57 = vpop.f32.mrb[52].mxu0 }
 0x795   :  { %v2547_v31 = vpop.f32.mrb[53].mxu0 }
 0x796   :  { %v4669_v19 = vpop.f32.mrb[54].mxu0 }
 0x797   :  { %v2550_v52 = vpop.f32.mrb[55].mxu0 }
 0x79b   :  { %v4395_v18 = vpop.f32.mrb[56].mxu1 }
 0x79c   :  { %v4396_v38 = vpop.f32.mrb[57].mxu1 }
 0x79d   :  { %v4397_v0 = vadd.f32 %v4396_v38, %v4395_v18  ;;  %v4398_v37 = vpop.f32.mrb[58].mxu1 }
 0x79e   :  { %v4399_v44 = vpop.f32.mrb[59].mxu1  ;;  %v4672_v33 = vpop.f32.mrb[56].mxu0 }
 0x79f   :  { %v2483_v54 = vadd.f32 %v4397_v0, %v2418_v51  ;;  %v4400_v35 = vadd.f32 %v4399_v44, %v4398_v37  ;;  %v2563_v3 = vpop.f32.mrb[57].mxu0 }
 0x7a0   :  { %v4673_v50 = vpop.f32.mrb[58].mxu0 }
 0x7a1   :  { %v2486_v47 = vadd.f32 %v4400_v35, %v2421_v62  ;;  %v2566_v32 = vpop.f32.mrb[59].mxu0  ;;  %v2548_v21 = vadd.f32 %v2547_v31, %v2483_v54  ;;  %v2749_v35 = vpop.permute.xlu0 %2748 }
 0x7a3   :  { %v4401_v16 = vpop.f32.mrb[60].mxu1  ;;  %v2551_v46 = vadd.f32 %v2550_v52, %v2486_v47 }
 0x7a4   :  { %v4402_v23 = vpop.f32.mrb[61].mxu1 }
 0x7a5   :  { %v4403_v9 = vadd.f32 %v4402_v23, %v4401_v16  ;;  %v4404_v13 = vpop.f32.mrb[62].mxu1  ;;  %v2759_v16 = vpop.permute.xlu0 %2758 }
 0x7a6   :  { %v4405_v20 = vpop.f32.mrb[63].mxu1 }
 0x7a7   :  { %v2491_v45 = vadd.f32 %v4403_v9, %v2426_v10  ;;  %v4406_v60 = vadd.f32 %v4405_v20, %v4404_v13 }
 0x7a9   :  { %v2494_v40 = vadd.f32 %v4406_v60, %v2429_v42  ;;  %v2556_v24 = vadd.f32 %v4668_v57, %v2491_v45  ;;  %v2769_v45 = vpop.permute.xlu0 %2768 }
 0x7ab   :  { %v4407_v48 = vpop.f32.mrb[64].mxu1  ;;  %v2559_v17 = vadd.f32 %v4669_v19, %v2494_v40 }
 0x7ac   :  { %v4408_v8 = vpop.f32.mrb[65].mxu1 }
 0x7ad   :  { %v4409_v28 = vadd.f32 %v4408_v8, %v4407_v48  ;;  %v4410_v41 = vpop.f32.mrb[66].mxu1  ;;  %v4865_v48 = vld [vmem:[%s7615_s16 + $0x4] ss:$20 sps:$4 sm:$0xff]  }
 0x7ae   :  { %v4411_v15 = vpop.f32.mrb[67].mxu1  ;;  %3231 = vmatprep.mubr.bf16.mxu1 %v4865_v48 }
 0x7af   :  { %v2499_v61 = vadd.f32 %v4409_v28, %v2434_v12  ;;  %v4412_v51 = vadd.f32 %v4411_v15, %v4410_v41  ;;  %v7021_v41 = vld [vmem:[#allocation5 + $0x2] ss:$0 sm:$0xff] }
 0x7b0   :  { %v4686_v14 = vpop.f32.mrb[60].mxu0 }
 0x7b1   :  { %v2502_v62 = vadd.f32 %v4412_v51, %v2437_v25  ;;  %v2717_v49 = vadd.f32 %v4686_v14, %v2556_v24  ;;  %v2684_v58 = vpop.f32.mrb[61].mxu0  ;;  %v2564_v53 = vadd.f32 %v2563_v3, %v2499_v61 }
 0x7b2   :  { %v2715_v22 = vadd.f32 %v2684_v58, %v2548_v21  ;;  %v4687_v39 = vpop.f32.mrb[62].mxu0 }
 0x7b3   :  { %v2718_v10 = vadd.f32 %v4687_v39, %v2559_v17  ;;  %v4413_v36 = vpop.f32.mrb[68].mxu1  ;;  %v2687_v42 = vpop.f32.mrb[63].mxu0  ;;  %v2567_v55 = vadd.f32 %v2566_v32, %v2502_v62  ;;  %v4873_v17 = vld [vmem:[%s7615_s16 + $0xc] ss:$20 sps:$4 sm:$0xff]  }
 0x7b4   :  { %v2771_v1 = vadd.f32 %v2734_v29, %v2715_v22  ;;  %v2716_v6 = vadd.f32 %v2687_v42, %v2551_v46  ;;  %v4414_v63 = vpop.f32.mrb[69].mxu1  ;;  %3296 = vmatprep.mubr.bf16.mxu0 %v4873_v17  ;;  %v3040_v42 = vld [vmem:[%s7616_s17 + $0x8] sm:$0xff] }
 0x7b5   :  { %v4415_v5 = vadd.f32 %v4414_v63, %v4413_v36  ;;  %v4416_v2 = vpop.f32.mrb[70].mxu1  ;;  %v2774_v3 = vadd.f32 %v2749_v35, %v2718_v10  ;;  %v3039_v10 = vld [vmem:[%s7616_s17] sm:$0xff]  ;;  %v3041_v63 = vld [vmem:[%s7616_s17 + $0x10] sm:$0xff] }
 0x7b6   :  { %v6881_v12 = vmax.f32 %v2771_v1, 0.0  ;;  %v2772_v43 = vadd.f32 %v2739_v26, %v2716_v6  ;;  %v4417_v25 = vpop.f32.mrb[71].mxu1 }
 0x7b7   :  { %v2507_v56 = vadd.f32 %v4415_v5, %v2442_v34  ;;  %v4418_v59 = vadd.f32 %v4417_v25, %v4416_v2  ;;  %v6915_v47 = vmax.f32 %v2774_v3, 0.0  ;;  %v3042_v2 = vld [vmem:[%s7616_s17 + $0x18] sm:$0xff] }
 0x7b8   :  { %v6883_v30 = vmax.f32 %v2772_v43, 0.0  ;;  %v4690_v57 = vpop.f32.mrb[64].mxu0  ;;  %2835 = vrot.lane.b32.xlu1 %v6881_v12, %s5072_s26 }
 0x7b9   :  { %v2510_v31 = vadd.f32 %v4418_v59, %v2445_v4  ;;  %v2572_v19 = vadd.f32 %v4672_v33, %v2507_v56  ;;  %v2700_v52 = vpop.f32.mrb[65].mxu0  ;;  %v2744_v4 = vpop.permute.xlu1 %2743  ;;  %v3043_v56 = vld [vmem:[%s7616_s17 + $0x20] sm:$0xff] }
 0x7ba   :  { %v2719_v18 = vadd.f32 %v2700_v52, %v2564_v53  ;;  %2837 = vrot.lane.b32.xlu0 %v6883_v30, %s5072_s26  ;;  %v4691_v38 = vpop.f32.mrb[66].mxu0  ;;  %v2773_v33 = vadd.f32 %v2744_v4, %v2717_v49  ;;  %v7029_v49 = vld [vmem:[#allocation5] ss:$0 sm:$0xff]  ;;  %v2995_v25 = vpack.c.bf16 %v6883_v30, %v6881_v12 }
 0x7bb   :  { %v2721_v0 = vadd.f32 %v4690_v57, %v2572_v19  ;;  %v2575_v37 = vadd.f32 %v4673_v50, %v2510_v31  ;;  %v2703_v44 = vpop.f32.mrb[67].mxu0  ;;  %v3044_v57 = vld [vmem:[%s7616_s17 + $0x28] sm:$0xff]  ;;  %v3046_v19 = vld [vmem:[%s7616_s17 + $0x38] sm:$0xff] }
 0x7bc   :  { %v2720_v54 = vadd.f32 %v2703_v44, %v2567_v55  ;;  %2787 = vrot.lane.b32.xlu1 %v6881_v12, %s5071_s6  ;;  %v6911_v50 = vmax.f32 %v2773_v33, 0.0 }
 0x7bd   :  { %v2722_v34 = vadd.f32 %v4691_v38, %v2575_v37  ;;  %v2754_v32 = vpop.permute.xlu1 %2753 }
 0x7be   :  { %2789 = vrot.lane.b32.xlu0 %v6883_v30, %s5071_s6  ;;  %v2775_v21 = vadd.f32 %v2754_v32, %v2719_v18  ;;  %v2776_v46 = vadd.f32 %v2759_v16, %v2720_v54  ;;  %v2996_v48 = vpack.c.bf16 %v6915_v47, %v6911_v50 }
 0x7bf   :  { %v2778_v60 = vadd.f32 %v2769_v45, %v2722_v34 }
 0x7c0   :  { %2859 = vrot.lane.b32.xlu1 %v6881_v12, %s7657_s23  ;;  %v6939_v23 = vmax.f32 %v2775_v21, 0.0  ;;  %v6943_v9 = vmax.f32 %v2776_v46, 0.0 }
 0x7c1   :  { %v2764_v13 = vpop.permute.xlu1 %2763  ;;  %v6967_v24 = vmax.f32 %v2778_v60, 0.0 }
 0x7c2   :  { %2861 = vrot.lane.b32.xlu0 %v6883_v30, %s7657_s23  ;;  %v2777_v20 = vadd.f32 %v2764_v13, %v2721_v0 }
 0x7c4   :  { %2907 = vrot.lane.b32.xlu1 %v6881_v12, %s7658_s14  ;;  %v6963_v40 = vmax.f32 %v2777_v20, 0.0 }
 0x7c6   :  { %2909 = vrot.lane.b32.xlu0 %v6883_v30, %s7658_s14 }
 0x7c8   :  { %2811 = vrot.lane.b32.xlu1 %v6881_v12, %s7659_s21 }
 0x7ca   :  { %2813 = vrot.lane.b32.xlu0 %v6883_v30, %s7659_s21 }
 0x7cc   :  { %2931 = vrot.lane.b32.xlu1 %v6881_v12, %s7660_s1 }
 0x7ce   :  { %2933 = vrot.lane.b32.xlu0 %v6883_v30, %s7660_s1 }
 0x7d0   :  { %2883 = vrot.lane.b32.xlu1 %v6881_v12, %s7661_s13 }
 0x7d2   :  { %2885 = vrot.lane.b32.xlu0 %v6883_v30, %s7661_s13 }
 0x7d4   :  { %2839 = vrot.lane.b32.xlu1 %v6911_v50, %s5072_s26 }
 0x7d6   :  { %2841 = vrot.lane.b32.xlu0 %v6915_v47, %s5072_s26 }
 0x7d8   :  { %2791 = vrot.lane.b32.xlu1 %v6911_v50, %s5071_s6 }
 0x7da   :  { %2793 = vrot.lane.b32.xlu0 %v6915_v47, %s5071_s6 }
 0x7dc   :  { %2863 = vrot.lane.b32.xlu1 %v6911_v50, %s7657_s23 }
 0x7de   :  { %2865 = vrot.lane.b32.xlu0 %v6915_v47, %s7657_s23 }
 0x7e0   :  { %2911 = vrot.lane.b32.xlu1 %v6911_v50, %s7658_s14 }
 0x7e2   :  { %2913 = vrot.lane.b32.xlu0 %v6915_v47, %s7658_s14 }
 0x7e4   :  { %2815 = vrot.lane.b32.xlu1 %v6911_v50, %s7659_s21 }
 0x7e6   :  { %2817 = vrot.lane.b32.xlu0 %v6915_v47, %s7659_s21 }
 0x7e8   :  { %2935 = vrot.lane.b32.xlu1 %v6911_v50, %s7660_s1 }
 0x7ea   :  { %2937 = vrot.lane.b32.xlu0 %v6915_v47, %s7660_s1 }
 0x7ec   :  { %2843 = vrot.lane.b32.xlu1 %v6939_v23, %s5072_s26 }
 0x7ee   :  { %2845 = vrot.lane.b32.xlu0 %v6943_v9, %s5072_s26 }
 0x7f0   :  { %2795 = vrot.lane.b32.xlu1 %v6939_v23, %s5071_s6 }
 0x7f2   :  { %2797 = vrot.lane.b32.xlu0 %v6943_v9, %s5071_s6 }
 0x7f4   :  { %2867 = vrot.lane.b32.xlu1 %v6939_v23, %s7657_s23 }
 0x7f6   :  { %2869 = vrot.lane.b32.xlu0 %v6943_v9, %s7657_s23 }
 0x7f8   :  { %2915 = vrot.lane.b32.xlu1 %v6939_v23, %s7658_s14 }
 0x7fa   :  { %2917 = vrot.lane.b32.xlu0 %v6943_v9, %s7658_s14 }
 0x7fc   :  { %2819 = vrot.lane.b32.xlu1 %v6939_v23, %s7659_s21 }
 0x7fe   :  { %2821 = vrot.lane.b32.xlu0 %v6943_v9, %s7659_s21 }
 0x800   :  { %2847 = vrot.lane.b32.xlu1 %v6963_v40, %s5072_s26 }
 0x802   :  { %2849 = vrot.lane.b32.xlu0 %v6967_v24, %s5072_s26 }
 0x804   :  { %2799 = vrot.lane.b32.xlu1 %v6963_v40, %s5071_s6 }
 0x806   :  { %2801 = vrot.lane.b32.xlu0 %v6967_v24, %s5071_s6 }
 0x808   :  { %2887 = vrot.lane.b32.xlu1 %v6911_v50, %s7661_s13 }
 0x80a   :  { %2889 = vrot.lane.b32.xlu0 %v6915_v47, %s7661_s13 }
 0x80c   :  { %2871 = vrot.lane.b32.xlu1 %v6963_v40, %s7657_s23 }
 0x80e   :  { %2873 = vrot.lane.b32.xlu0 %v6967_v24, %s7657_s23 }
 0x810   :  { %2919 = vrot.lane.b32.xlu1 %v6963_v40, %s7658_s14 }
 0x812   :  { %2921 = vrot.lane.b32.xlu0 %v6967_v24, %s7658_s14 }
 0x814   :  { %2823 = vrot.lane.b32.xlu1 %v6963_v40, %s7659_s21 }
 0x816   :  { %2825 = vrot.lane.b32.xlu0 %v6967_v24, %s7659_s21 }
 0x818   :  { %2939 = vrot.lane.b32.xlu1 %v6939_v23, %s7660_s1 }
 0x81a   :  { %2941 = vrot.lane.b32.xlu0 %v6943_v9, %s7660_s1 }
 0x81c   :  { %2891 = vrot.lane.b32.xlu1 %v6939_v23, %s7661_s13 }
 0x81e   :  { %2893 = vrot.lane.b32.xlu0 %v6943_v9, %s7661_s13 }
 0x820   :  { %2943 = vrot.lane.b32.xlu1 %v6963_v40, %s7660_s1 }
 0x822   :  { %2945 = vrot.lane.b32.xlu0 %v6967_v24, %s7660_s1 }
 0x824   :  { %2895 = vrot.lane.b32.xlu1 %v6963_v40, %s7661_s13 }
 0x826   :  { %2897 = vrot.lane.b32.xlu0 %v6967_v24, %s7661_s13 }
 0x828   :  { %2955 = vrot.lane.b32.xlu1 %v6881_v12, %s7662_s5  ;;  %v3045_v12 = vld [vmem:[%s7616_s17 + $0x30] sm:$0xff] }
 0x82a   :  { %v2836_v8 = vpop.permute.xlu1 %2835  ;;  %2957 = vrot.lane.b32.xlu0 %v6883_v30, %s7662_s5 }
 0x82b   :  { %v2851_v15 = vmul.f32 %v7021_v41, %v2836_v8 }
 0x82c   :  { %2959 = vrot.lane.b32.xlu1 %v6911_v50, %s7662_s5  ;;  %v2838_v28 = vpop.permute.xlu0 %2837 }
 0x82d   :  { %v2852_v61 = vmul.f32 %v7021_v41, %v2838_v28 }
 0x82e   :  { %v2788_v51 = vpop.permute.xlu1 %2787  ;;  %2961 = vrot.lane.b32.xlu0 %v6915_v47, %s7662_s5 }
 0x82f   :  { %v2987_v14 = vpack.c.bf16 %v2852_v61, %v2851_v15  ;;  %v2803_v58 = vmul.f32 %v7029_v49, %v2788_v51 }
 0x830   :  { %2963 = vrot.lane.b32.xlu1 %v6939_v23, %s7662_s5  ;;  %v2790_v62 = vpop.permute.xlu0 %2789 }
 0x831   :  { %v2804_v53 = vmul.f32 %v7029_v49, %v2790_v62  ;;  %4436 = vmatprep.subr.bf16.mxu1 %v2987_v14 }
 0x832   :  { %v7033_v29 = vpop.permute.xlu1 %2859  ;;  %2965 = vrot.lane.b32.xlu0 %v6943_v9, %s7662_s5 }
 0x833   :  { %v2979_v22 = vpack.c.bf16 %v2804_v53, %v2803_v58 }
 0x834   :  { %2967 = vrot.lane.b32.xlu1 %v6963_v40, %s7662_s5  ;;  %v7039_v39 = vpop.permute.xlu0 %2861 }
 0x835   :  { %4437 = vmatpush3.bf16.msra.mxu1 %v2979_v22 }
 0x836   :  { %v2908_v36 = vpop.permute.xlu1 %2907  ;;  %2969 = vrot.lane.b32.xlu0 %v6967_v24, %s7662_s5 }
 0x837   :  { %v2923_v1 = vmul.f32 %v6761_v27, %v2908_v36 }
 0x838   :  { %3049 = vperm.xlu1 %4769, %v3039_v10   ;;  %v2910_v55 = vpop.permute.xlu0 %2909 }
 0x839   :  { %v2924_v6 = vmul.f32 %v6761_v27, %v2910_v55 }
 0x83a   :  { %v7054_v26 = vpop.permute.xlu1 %2811  ;;  %3054 = vperm.xlu0 %4767, %v3040_v42  }
 0x83b   :  { %v3003_v5 = vpack.c.bf16 %v2924_v6, %v2923_v1 }
 0x83c   :  { %3059 = vperm.xlu1 %4769, %v3041_v63   ;;  %v7059_v43 = vpop.permute.xlu0 %2813 }
 0x83d   :  { %4476 = vmatprep.subr.bf16.mxu0 %v3003_v5 }
 0x83e   :  { %v7066_v59 = vpop.permute.xlu1 %2931  ;;  %3064 = vperm.xlu0 %4767, %v3042_v2   ;;  %4477 = vmatpush3.bf16.msra.mxu0 %v2995_v25  ;;  %v2997_v2 = vpack.c.bf16 %v6943_v9, %v6939_v23 }
 0x840   :  { %3069 = vperm.xlu1 %4769, %v3043_v56   ;;  %v7071_v31 = vpop.permute.xlu0 %2933 }
 0x842   :  { %v7076_v30 = vpop.permute.xlu1 %2883  ;;  %3074 = vperm.xlu0 %4767, %v3044_v57  }
 0x844   :  { %3079 = vperm.xlu1 %4769, %v3045_v12   ;;  %v7081_v52 = vpop.permute.xlu0 %2885 }
 0x846   :  { %v2840_v18 = vpop.permute.xlu1 %2839  ;;  %3084 = vperm.xlu0 %4767, %v3046_v19  }
 0x847   :  { %v2853_v0 = vmul.f32 %v7021_v41, %v2840_v18 }
 0x848   :  { %v2842_v38 = vpop.permute.xlu0 %2841 }
 0x849   :  { %v2854_v37 = vmul.f32 %v7021_v41, %v2842_v38  ;;  %v7105_v38 = vld [vmem:[#allocation5 + $0x3] ss:$0 sm:$0xff] }
 0x84a   :  { %v2792_v44 = vpop.permute.xlu1 %2791  ;;  %v2875_v9 = vmul.f32 %v7105_v38, %v7033_v29 }
 0x84b   :  { %v2988_v54 = vpack.c.bf16 %v2854_v37, %v2853_v0  ;;  %v2805_v4 = vmul.f32 %v7029_v49, %v2792_v44 }
 0x84c   :  { %v2794_v34 = vpop.permute.xlu0 %2793 }
 0x84d   :  { %v2806_v33 = vmul.f32 %v7029_v49, %v2794_v34  ;;  %4438 = vmatprep.subr.bf16.mxu1 %v2988_v54  ;;  %v7115_v54 = vld [vmem:[#allocation5 + $0x1] ss:$0 sm:$0xff] }
 0x84e   :  { %v2864_v35 = vpop.permute.xlu1 %2863  ;;  %v2828_v34 = vmul.f32 %v7115_v54, %v7059_v43 }
 0x84f   :  { %v2980_v3 = vpack.c.bf16 %v2806_v33, %v2805_v4 }
 0x850   :  { %v2866_v32 = vpop.permute.xlu0 %2865 }
 0x851   :  { %4439 = vmatpush3.bf16.msra.mxu1 %v2980_v3 }
 0x852   :  { %v2912_v21 = vpop.permute.xlu1 %2911 }
 0x853   :  { %v2925_v46 = vmul.f32 %v6761_v27, %v2912_v21  ;;  %v2827_v21 = vmul.f32 %v7115_v54, %v7054_v26 }
 0x854   :  { %v2914_v16 = vpop.permute.xlu0 %2913 }
 0x855   :  { %v2926_v13 = vmul.f32 %v6761_v27, %v2914_v16  ;;  %v2877_v16 = vmul.f32 %v7105_v38, %v2864_v35  ;;  %v2983_v29 = vpack.c.bf16 %v2828_v34, %v2827_v21  ;;  %v2948_v35 = vmul.f32 %v6801_v11, %v7071_v31 }
 0x856   :  { %v2816_v20 = vpop.permute.xlu1 %2815 }
 0x857   :  { %v3004_v45 = vpack.c.bf16 %v2926_v13, %v2925_v46 }
 0x858   :  { %v2818_v60 = vpop.permute.xlu0 %2817 }
 0x859   :  { %4478 = vmatprep.subr.bf16.mxu0 %v3004_v45  ;;  %v2830_v13 = vmul.f32 %v7115_v54, %v2818_v60 }
 0x85a   :  { %v7091_v17 = vpop.permute.xlu1 %2935  ;;  %4479 = vmatpush3.bf16.msra.mxu0 %v2996_v48 }
 0x85c   :  { %v7093_v8 = vpop.permute.xlu0 %2937 }
 0x85e   :  { %v2844_v28 = vpop.permute.xlu1 %2843 }
 0x85f   :  { %v2855_v61 = vmul.f32 %v7021_v41, %v2844_v28  ;;  %v2829_v28 = vmul.f32 %v7115_v54, %v2816_v20 }
 0x860   :  { %v2846_v15 = vpop.permute.xlu0 %2845 }
 0x861   :  { %v2856_v51 = vmul.f32 %v7021_v41, %v2846_v15  ;;  %v2984_v26 = vpack.c.bf16 %v2830_v13, %v2829_v28  ;;  %v7174_v13 = vld [vmem:[#allocation5 + $0x5] ss:$0 sm:$0xff] }
 0x862   :  { %v2796_v14 = vpop.permute.xlu1 %2795 }
 0x863   :  { %v2989_v62 = vpack.c.bf16 %v2856_v51, %v2855_v61  ;;  %v2807_v53 = vmul.f32 %v7029_v49, %v2796_v14 }
 0x864   :  { %v2798_v58 = vpop.permute.xlu0 %2797 }
 0x865   :  { %v2808_v22 = vmul.f32 %v7029_v49, %v2798_v58  ;;  %4440 = vmatprep.subr.bf16.mxu1 %v2989_v62  ;;  %v7132_v58 = vld [vmem:[#allocation5 + $0x6] ss:$0 sm:$0xff] }
 0x866   :  { %v2868_v50 = vpop.permute.xlu1 %2867 }
 0x867   :  { %v2981_v47 = vpack.c.bf16 %v2808_v22, %v2807_v53  ;;  %v2947_v22 = vmul.f32 %v6801_v11, %v7066_v59 }
 0x868   :  { %v2870_v10 = vpop.permute.xlu0 %2869 }
 0x869   :  { %4441 = vmatpush3.bf16.msra.mxu1 %v2981_v47  ;;  %v2880_v48 = vmul.f32 %v7105_v38, %v2870_v10 }
 0x86a   :  { %v2916_v36 = vpop.permute.xlu1 %2915 }
 0x86b   :  { %v2927_v55 = vmul.f32 %v6761_v27, %v2916_v36  ;;  %v3007_v36 = vpack.c.bf16 %v2948_v35, %v2947_v22 }
 0x86c   :  { %v2918_v42 = vpop.permute.xlu0 %2917 }
 0x86d   :  { %v2928_v1 = vmul.f32 %v6761_v27, %v2918_v42  ;;  %v2876_v27 = vmul.f32 %v7105_v38, %v7039_v39  ;;  %v2878_v39 = vmul.f32 %v7105_v38, %v2866_v32  ;;  %v2879_v32 = vmul.f32 %v7105_v38, %v2868_v50 }
 0x86e   :  { %v2820_v6 = vpop.permute.xlu1 %2819  ;;  %v2900_v42 = vmul.f32 %v6805_v7, %v7081_v52  ;;  %v2949_v52 = vmul.f32 %v6801_v11, %v7091_v17 }
 0x86f   :  { %v3005_v63 = vpack.c.bf16 %v2928_v1, %v2927_v55  ;;  %v2991_v33 = vpack.c.bf16 %v2876_v27, %v2875_v9  ;;  %v2992_v45 = vpack.c.bf16 %v2878_v39, %v2877_v16  ;;  %v2993_v51 = vpack.c.bf16 %v2880_v48, %v2879_v32 }
 0x870   :  { %v2822_v5 = vpop.permute.xlu0 %2821  ;;  %v2831_v62 = vmul.f32 %v7115_v54, %v2820_v6  ;;  %v2998_v6 = vpack.c.bf16 %v6967_v24, %v6963_v40 }
 0x871   :  { %4480 = vmatprep.subr.bf16.mxu0 %v3005_v63  ;;  %v2832_v61 = vmul.f32 %v7115_v54, %v2822_v5  ;;  %v2950_v63 = vmul.f32 %v6801_v11, %v7093_v8 }
 0x872   :  { %v2848_v25 = vpop.permute.xlu1 %2847  ;;  %4481 = vmatpush3.bf16.msra.mxu0 %v2997_v2  ;;  %v2899_v2 = vmul.f32 %v6805_v7, %v7076_v30  ;;  %v4866_v30 = vld [vmem:[%s7615_s16 + $0x2c] ss:$20 sps:$4 sm:$0xff]  }
 0x873   :  { %v2857_v57 = vmul.f32 %v7021_v41, %v2848_v25  ;;  %v2985_v31 = vpack.c.bf16 %v2832_v61, %v2831_v62  ;;  %v7184_v61 = vld [vmem:[#allocation5 + $0x8] ss:$0 sm:$0xff] }
 0x874   :  { %v2850_v56 = vpop.permute.xlu0 %2849  ;;  %v2999_v40 = vpack.c.bf16 %v2900_v42, %v2899_v2  ;;  %v4877_v62 = vld [vmem:[%s7615_s16 + $0x34] ss:$20 sps:$4 sm:$0xff]   ;;  %v4880_v42 = vld [vmem:[%s7615_s16 + $0x30] ss:$20 sps:$4 sm:$0xff]  }
 0x875   :  { %v2858_v12 = vmul.f32 %v7021_v41, %v2850_v56 }
 0x876   :  { %v2800_v19 = vpop.permute.xlu1 %2799 }
 0x877   :  { %v2990_v18 = vpack.c.bf16 %v2858_v12, %v2857_v57  ;;  %v2809_v37 = vmul.f32 %v7029_v49, %v2800_v19  ;;  %v4863_v57 = vld [vmem:[%s7615_s16] ss:$20 sps:$4 sm:$0xff]   ;;  %v3008_v12 = vpack.c.bf16 %v2950_v63, %v2949_v52 }
 0x878   :  { %v2802_v0 = vpop.permute.xlu0 %2801 }
 0x879   :  { %v2810_v23 = vmul.f32 %v7029_v49, %v2802_v0  ;;  %4442 = vmatprep.subr.bf16.mxu1 %v2990_v18 }
 0x87a   :  { %v7113_v44 = vpop.permute.xlu1 %2887 }
 0x87b   :  { %v2982_v4 = vpack.c.bf16 %v2810_v23, %v2809_v37  ;;  %v2901_v17 = vmul.f32 %v6805_v7, %v7113_v44  ;;  %v4868_v44 = vld [vmem:[%s7615_s16 + $0x28] ss:$20 sps:$4 sm:$0xff]  }
 0x87c   :  { %v2890_v3 = vpop.permute.xlu0 %2889 }
 0x87d   :  { %4443 = vmatpush3.bf16.msra.mxu1 %v2982_v4  ;;  %v2902_v24 = vmul.f32 %v6805_v7, %v2890_v3 }
 0x87e   :  { %v2872_v46 = vpop.permute.xlu1 %2871  ;;  %4444 = vmatprep.subr.bf16.mxu1 %v2991_v33 }
 0x87f   :  { %v2881_v50 = vmul.f32 %v7105_v38, %v2872_v46  ;;  %v3000_v0 = vpack.c.bf16 %v2902_v24, %v2901_v17  ;;  %v4885_v24 = vld [vmem:[%s7615_s16 + $0x38] ss:$20 sps:$4 sm:$0xff]  }
 0x880   :  { %v2874_v43 = vpop.permute.xlu0 %2873 }
 0x881   :  { %4445 = vmatpush3.bf16.msra.mxu1 %v2983_v29  ;;  %v2882_v60 = vmul.f32 %v7105_v38, %v2874_v43 }
 0x882   :  { %v2920_v15 = vpop.permute.xlu1 %2919  ;;  %4446 = vmatprep.subr.bf16.mxu1 %v2992_v45 }
 0x883   :  { %v2929_v20 = vmul.f32 %v7132_v58, %v2920_v15  ;;  %v2994_v55 = vpack.c.bf16 %v2882_v60, %v2881_v50  ;;  %v4871_v15 = vld [vmem:[%s7615_s16 + $0x8] ss:$20 sps:$4 sm:$0xff]  }
 0x884   :  { %v2922_v14 = vpop.permute.xlu0 %2921  ;;  %v4875_v60 = vld [vmem:[%s7615_s16 + $0x7c] ss:$20 sps:$4 sm:$0xff]  }
 0x885   :  { %v2930_v53 = vmul.f32 %v7132_v58, %v2922_v14  ;;  %4447 = vmatpush3.bf16.msra.mxu1 %v2984_v26  ;;  %v4874_v26 = vld [vmem:[%s7615_s16 + $0x50] ss:$20 sps:$4 sm:$0xff]  }
 0x886   :  { %v2824_v47 = vpop.permute.xlu1 %2823  ;;  %4448 = vmatprep.subr.bf16.mxu1 %v2993_v51 }
 0x887   :  { %v3006_v10 = vpack.c.bf16 %v2930_v53, %v2929_v20  ;;  %v2833_v59 = vmul.f32 %v7115_v54, %v2824_v47 }
 0x888   :  { %v2826_v1 = vpop.permute.xlu0 %2825 }
 0x889   :  { %v2834_v5 = vmul.f32 %v7115_v54, %v2826_v1  ;;  %4449 = vmatpush3.bf16.msra.mxu1 %v2985_v31  ;;  %4482 = vmatprep.subr.bf16.mxu0 %v3006_v10 }
 0x88a   :  { %v2940_v25 = vpop.permute.xlu1 %2939  ;;  %4450 = vmatprep.subr.bf16.mxu1 %v2994_v55  ;;  %4483 = vmatpush3.bf16.msra.mxu0 %v2998_v6  ;;  %v4881_v6 = vld [vmem:[%s7615_s16 + $0x5c] ss:$20 sps:$4 sm:$0xff]  }
 0x88b   :  { %v2986_v56 = vpack.c.bf16 %v2834_v5, %v2833_v59  ;;  %4484 = vmatprep.subr.bf16.mxu0 %v3007_v36  ;;  %v2951_v27 = vmul.f32 %v6801_v11, %v2940_v25  ;;  %v4879_v36 = vld [vmem:[%s7615_s16 + $0x78] ss:$20 sps:$4 sm:$0xff]   ;;  %v4884_v59 = vld [vmem:[%s7615_s16 + $0x10] ss:$20 sps:$4 sm:$0xff]  }
 0x88c   :  { %v2942_v8 = vpop.permute.xlu0 %2941 }
 0x88d   :  { %v2952_v19 = vmul.f32 %v6801_v11, %v2942_v8  ;;  %4451 = vmatpush3.bf16.msra.mxu1 %v2986_v56  ;;  %v7167_v11 = vld [vmem:[#allocation5 + $0x7] ss:$0 sm:$0xff] }
 0x88e   :  { %v2892_v18 = vpop.permute.xlu1 %2891  ;;  %4485 = vmatpush3.bf16.msra.mxu0 %v2999_v40  ;;  %v4883_v40 = vld [vmem:[%s7615_s16 + $0x58] ss:$20 sps:$4 sm:$0xff]  }
 0x88f   :  { %4486 = vmatprep.subr.bf16.mxu0 %v3008_v12  ;;  %v3009_v23 = vpack.c.bf16 %v2952_v19, %v2951_v27  ;;  %v2903_v9 = vmul.f32 %v6805_v7, %v2892_v18  ;;  %v4886_v8 = vld [vmem:[%s7615_s16 + $0x84] ss:$20 sps:$4 sm:$0xff]   ;;  %v4888_v12 = vld [vmem:[%s7615_s16 + $0x80] ss:$20 sps:$4 sm:$0xff]   ;;  %v4890_v19 = vld [vmem:[%s7615_s16 + $0x88] ss:$20 sps:$4 sm:$0xff]  }
 0x890   :  { %3232 = vmatmul.mubr.bf16.vlgmr.msra.gmra.mrb[72].mxu1 %v4863_v57  ;;  %v2894_v37 = vpop.permute.xlu0 %2893  ;;  %v4889_v57 = vld [vmem:[%s7615_s16 + $0x60] ss:$20 sps:$4 sm:$0xff]  }
 0x891   :  { %v2904_v34 = vmul.f32 %v6805_v7, %v2894_v37  ;;  %3239 = vmatprep.mubr.bf16.mxu1 %v4866_v30  ;;  %v4869_v7 = vld [vmem:[%s7615_s16 + $0x54] ss:$20 sps:$4 sm:$0xff]  }
 0x892   :  { %v2944_v4 = vpop.permute.xlu1 %2943  ;;  %4487 = vmatpush3.bf16.msra.mxu0 %v3000_v0 }
 0x893   :  { %v3001_v33 = vpack.c.bf16 %v2904_v34, %v2903_v9  ;;  %4488 = vmatprep.subr.bf16.mxu0 %v3009_v23  ;;  %v2953_v3 = vmul.f32 %v7167_v11, %v2944_v4 }
 0x894   :  { %v2946_v39 = vpop.permute.xlu0 %2945 }
 0x895   :  { %v2954_v21 = vmul.f32 %v7167_v11, %v2946_v39 }
 0x896   :  { %v2896_v16 = vpop.permute.xlu1 %2895  ;;  %4489 = vmatpush3.bf16.msra.mxu0 %v3001_v33 }
 0x897   :  { %v3010_v46 = vpack.c.bf16 %v2954_v21, %v2953_v3  ;;  %v2905_v45 = vmul.f32 %v7174_v13, %v2896_v16 }
 0x898   :  { %3240 = vmatmul.mubr.bf16.gmra.mrb[76].mxu1 %v4868_v44  ;;  %v2898_v29 = vpop.permute.xlu0 %2897 }
 0x899   :  { %v2906_v48 = vmul.f32 %v7174_v13, %v2898_v29  ;;  %4490 = vmatprep.subr.bf16.mxu0 %v3010_v46  ;;  %3247 = vmatprep.mubr.bf16.mxu1 %v4869_v7 }
 0x89a   :  { %v2956_v43 = vpop.permute.xlu1 %2955 }
 0x89b   :  { %v3002_v28 = vpack.c.bf16 %v2906_v48, %v2905_v45  ;;  %v2971_v35 = vmul.f32 %v7184_v61, %v2956_v43 }
 0x89c   :  { %v2958_v32 = vpop.permute.xlu0 %2957 }
 0x89d   :  { %v2972_v51 = vmul.f32 %v7184_v61, %v2958_v32  ;;  %4491 = vmatpush3.bf16.msra.mxu0 %v3002_v28 }
 0x89e   :  { %v2960_v14 = vpop.permute.xlu1 %2959 }
 0x89f   :  { %v3011_v20 = vpack.c.bf16 %v2972_v51, %v2971_v35  ;;  %v2973_v22 = vmul.f32 %v7184_v61, %v2960_v14 }
 0x8a0   :  { %3248 = vmatmul.mubr.bf16.gmra.mrb[80].mxu1 %v4874_v26  ;;  %3297 = vmatmul.mubr.bf16.vlgmr.msra.gmra.mrb[68].mxu0 %v4871_v15  ;;  %v2962_v53 = vpop.permute.xlu0 %2961 }
 0x8a1   :  { %v2974_v50 = vmul.f32 %v7184_v61, %v2962_v53  ;;  %4692 = vmatprep.subr.bf16.mxu1 %v3011_v20  ;;  %3255 = vmatprep.mubr.bf16.mxu1 %v4875_v60 }
 0x8a2   :  { %v2964_v47 = vpop.permute.xlu1 %2963  ;;  %4693 = vmatpush3.bf16.msra.mxu1 %v3011_v20  ;;  %3304 = vmatprep.mubr.bf16.mxu0 %v4877_v62 }
 0x8a3   :  { %v3012_v31 = vpack.c.bf16 %v2974_v50, %v2973_v22  ;;  %v2975_v55 = vmul.f32 %v7184_v61, %v2964_v47 }
 0x8a4   :  { %v2966_v10 = vpop.permute.xlu0 %2965 }
 0x8a5   :  { %v2976_v1 = vmul.f32 %v7184_v61, %v2966_v10  ;;  %4694 = vmatprep.subr.bf16.mxu1 %v3012_v31 }
 0x8a6   :  { %v2968_v63 = vpop.permute.xlu1 %2967  ;;  %4695 = vmatpush3.bf16.msra.mxu1 %v3012_v31 }
 0x8a7   :  { %v3013_v5 = vpack.c.bf16 %v2976_v1, %v2975_v55  ;;  %v2977_v25 = vmul.f32 %v7184_v61, %v2968_v63 }
 0x8a8   :  { %3256 = vmatmul.mubr.bf16.gmra.mrb[84].mxu1 %v4879_v36  ;;  %3305 = vmatmul.mubr.bf16.gmra.mrb[72].mxu0 %v4880_v42  ;;  %v2970_v2 = vpop.permute.xlu0 %2969 }
 0x8a9   :  { %v2978_v52 = vmul.f32 %v7184_v61, %v2970_v2  ;;  %4696 = vmatprep.subr.bf16.mxu1 %v3013_v5  ;;  %3312 = vmatprep.mubr.bf16.mxu0 %v4881_v6 }
 0x8aa   :  { %4697 = vmatpush3.bf16.msra.mxu1 %v3013_v5  ;;  %4700 = vmatprep.mubr.msk.bf16.mxu1 %vm989_vm3, %v4884_v59 }
 0x8ab   :  { %v3014_v56 = vpack.c.bf16 %v2978_v52, %v2977_v25 }
 0x8ad   :  { %4698 = vmatprep.subr.bf16.mxu1 %v3014_v56 }
 0x8ae   :  { %4699 = vmatpush3.bf16.msra.mxu1 %v3014_v56 }
 0x8b0   :  { %3313 = vmatmul.mubr.bf16.gmra.mrb[76].mxu0 %v4883_v40 }
 0x8b1   :  { %4701 = vmatmul.mubr.msk.bf16.vlgmr.msra.gmra.mrb[88].mxu1 %vm989_vm3, %v4885_v24  ;;  %3320 = vmatprep.mubr.bf16.mxu0 %v4886_v8 }
 0x8b2   :  { %4704 = vmatprep.mubr.msk.bf16.mxu1 %vm989_vm3, %v4889_v57 }
 0x8b7   :  { %v3050_v44 = vpop.permute.xlu1 %3049 }
 0x8b8   :  { %3321 = vmatmul.mubr.bf16.gmra.mrb[80].mxu0 %v4888_v12 }
 0x8b9   :  { %4705 = vmatmul.mubr.msk.bf16.gmra.mrb[92].mxu1 %vm989_vm3, %v4890_v19  ;;  %v3055_v3 = vpop.permute.xlu0 %3054 }
 0x8bb   :  { %v3060_v62 = vpop.permute.xlu1 %3059 }
 0x8bd   :  { %v3065_v20 = vpop.permute.xlu0 %3064 }
 0x8bf   :  { %v3070_v52 = vpop.permute.xlu1 %3069 }
 0x8c1   :  { %v3075_v56 = vpop.permute.xlu0 %3074 }
 0x963   :  { %v4452_v30 = vpop.f32.mrb[72].mxu1 }
 0x964   :  { %v4453_v17 = vpop.f32.mrb[73].mxu1 }
 0x965   :  { %v4454_v18 = vadd.f32 %v4453_v17, %v4452_v30  ;;  %v4455_v27 = vpop.f32.mrb[74].mxu1 }
 0x966   :  { %v4456_v0 = vpop.f32.mrb[75].mxu1 }
 0x967   :  { %v4457_v37 = vadd.f32 %v4456_v0, %v4455_v27  ;;  %v3234_v29 = vadd.f32 %v4454_v18, %v3050_v44 }
 0x969   :  { %v3237_v26 = vadd.f32 %v4457_v37, %v3055_v3 }
 0x96b   :  { %v4458_v23 = vpop.f32.mrb[76].mxu1 }
 0x96c   :  { %v4459_v9 = vpop.f32.mrb[77].mxu1 }
 0x96d   :  { %v4460_v34 = vadd.f32 %v4459_v9, %v4458_v23  ;;  %v4461_v4 = vpop.f32.mrb[78].mxu1 }
 0x96e   :  { %v4462_v33 = vpop.f32.mrb[79].mxu1 }
 0x96f   :  { %v4463_v39 = vadd.f32 %v4462_v33, %v4461_v4  ;;  %v3242_v31 = vadd.f32 %v4460_v34, %v3060_v62 }
 0x971   :  { %v3245_v63 = vadd.f32 %v4463_v39, %v3065_v20 }
 0x973   :  { %v4464_v21 = vpop.f32.mrb[80].mxu1  ;;  %v4492_v7 = vpop.f32.mrb[68].mxu0 }
 0x974   :  { %v4465_v16 = vpop.f32.mrb[81].mxu1  ;;  %v4493_v46 = vpop.f32.mrb[69].mxu0 }
 0x975   :  { %v4466_v45 = vadd.f32 %v4465_v16, %v4464_v21  ;;  %v4494_v48 = vadd.f32 %v4493_v46, %v4492_v7  ;;  %v4467_v43 = vpop.f32.mrb[82].mxu1  ;;  %v4495_v28 = vpop.f32.mrb[70].mxu0 }
 0x976   :  { %v4468_v32 = vpop.f32.mrb[83].mxu1  ;;  %v4496_v15 = vpop.f32.mrb[71].mxu0 }
 0x977   :  { %v4469_v35 = vadd.f32 %v4468_v32, %v4467_v43  ;;  %v4497_v51 = vadd.f32 %v4496_v15, %v4495_v28  ;;  %v3299_v60 = vadd.f32 %v4494_v48, %v3234_v29  ;;  %v3250_v57 = vadd.f32 %v4466_v45, %v3070_v52  ;;  %v3080_v21 = vpop.permute.xlu1 %3079  ;;  %v3085_v7 = vpop.permute.xlu0 %3084  ;;  %v3654_v52 = vld [vmem:[%s7618_s19] sm:$0xff] }
 0x979   :  { %v3302_v14 = vadd.f32 %v4497_v51, %v3237_v26  ;;  %v3253_v18 = vadd.f32 %v4469_v35, %v3075_v56 }
 0x97b   :  { %v4470_v53 = vpop.f32.mrb[84].mxu1  ;;  %v4498_v22 = vpop.f32.mrb[72].mxu0 }
 0x97c   :  { %v4471_v50 = vpop.f32.mrb[85].mxu1  ;;  %v4499_v47 = vpop.f32.mrb[73].mxu0 }
 0x97d   :  { %v4472_v10 = vadd.f32 %v4471_v50, %v4470_v53  ;;  %v4500_v36 = vadd.f32 %v4499_v47, %v4498_v22  ;;  %v4473_v42 = vpop.f32.mrb[86].mxu1  ;;  %v4501_v55 = vpop.f32.mrb[74].mxu0 }
 0x97e   :  { %v4474_v1 = vpop.f32.mrb[87].mxu1  ;;  %v4502_v6 = vpop.f32.mrb[75].mxu0 }
 0x97f   :  { %v4475_v59 = vadd.f32 %v4474_v1, %v4473_v42  ;;  %v4503_v5 = vadd.f32 %v4502_v6, %v4501_v55  ;;  %v3307_v2 = vadd.f32 %v4500_v36, %v3242_v31  ;;  %v3258_v45 = vadd.f32 %v4472_v10, %v3080_v21  ;;  %v4893_v55 = vld [vmem:[%s7617_s18 + $0x4] ss:$20 sps:$4 sm:$0xff]   ;;  %v4899_v1 = vld [vmem:[%s7617_s18 + $0xc] ss:$20 sps:$4 sm:$0xff]   ;;  %v3660_v21 = vld [vmem:[%s7618_s19 + $0x30] sm:$0xff] }
 0x980   :  { %3846 = vmatprep.mubr.bf16.mxu0 %v4893_v55  ;;  %3911 = vmatprep.mubr.bf16.mxu1 %v4899_v1 }
 0x981   :  { %v3310_v25 = vadd.f32 %v4503_v5, %v3245_v63  ;;  %v3261_v35 = vadd.f32 %v4475_v59, %v3085_v7 }
 0x983   :  { %v4504_v40 = vpop.f32.mrb[76].mxu0 }
 0x984   :  { %v4505_v24 = vpop.f32.mrb[77].mxu0  ;;  %v4702_v8 = vpop.f32.mrb[88].mxu1 }
 0x985   :  { %v4506_v12 = vadd.f32 %v4505_v24, %v4504_v40  ;;  %v3372_v19 = vadd.f32 %v4702_v8, %v3307_v2  ;;  %v4507_v30 = vpop.f32.mrb[78].mxu0  ;;  %v3363_v17 = vpop.f32.mrb[89].mxu1  ;;  %v3655_v40 = vld [vmem:[%s7618_s19 + $0x8] sm:$0xff] }
 0x986   :  { %v3364_v27 = vadd.f32 %v3363_v17, %v3299_v60  ;;  %v4508_v0 = vpop.f32.mrb[79].mxu0  ;;  %v4703_v37 = vpop.f32.mrb[90].mxu1  ;;  %v3657_v17 = vld [vmem:[%s7618_s19 + $0x18] sm:$0xff] }
 0x987   :  { %v7234_v23 = vmax.f32 %v3372_v19, 0.0  ;;  %v4509_v9 = vadd.f32 %v4508_v0, %v4507_v30  ;;  %v3375_v34 = vadd.f32 %v4703_v37, %v3310_v25  ;;  %v3366_v4 = vpop.f32.mrb[91].mxu1  ;;  %v3315_v33 = vadd.f32 %v4506_v12, %v3250_v57  ;;  %v3656_v12 = vld [vmem:[%s7618_s19 + $0x10] sm:$0xff]  ;;  %v3658_v37 = vld [vmem:[%s7618_s19 + $0x20] sm:$0xff] }
 0x988   :  { %v3367_v39 = vadd.f32 %v3366_v4, %v3302_v14  ;;  %v7260_v50 = vmax.f32 %v3364_v27, 0.0  ;;  %v3659_v4 = vld [vmem:[%s7618_s19 + $0x28] sm:$0xff] }
 0x989   :  { %v7236_v44 = vmax.f32 %v3375_v34, 0.0  ;;  %3454 = vrot.lane.b32.xlu1 %v7234_v23, %s5072_s26  ;;  %v3318_v3 = vadd.f32 %v4509_v9, %v3253_v18 }
 0x98a   :  { %v7264_v47 = vmax.f32 %v3367_v39, 0.0 }
 0x98b   :  { %v4510_v16 = vpop.f32.mrb[80].mxu0  ;;  %3456 = vrot.lane.b32.xlu0 %v7236_v44, %s5072_s26 }
 0x98c   :  { %v4511_v46 = vpop.f32.mrb[81].mxu0  ;;  %v4706_v29 = vpop.f32.mrb[92].mxu1 }
 0x98d   :  { %v4512_v48 = vadd.f32 %v4511_v46, %v4510_v16  ;;  %v4513_v43 = vpop.f32.mrb[82].mxu0  ;;  %3406 = vrot.lane.b32.xlu1 %v7234_v23, %s5071_s6  ;;  %v3379_v28 = vpop.f32.mrb[93].mxu1  ;;  %v3661_v46 = vld [vmem:[%s7618_s19 + $0x38] sm:$0xff] }
 0x98e   :  { %v3380_v32 = vadd.f32 %v3379_v28, %v3315_v33  ;;  %v4514_v15 = vpop.f32.mrb[83].mxu0  ;;  %v4707_v26 = vpop.f32.mrb[94].mxu1 }
 0x98f   :  { %v3323_v51 = vadd.f32 %v4512_v48, %v3258_v45  ;;  %v4515_v60 = vadd.f32 %v4514_v15, %v4513_v43  ;;  %v3382_v14 = vpop.f32.mrb[95].mxu1  ;;  %3408 = vrot.lane.b32.xlu0 %v7236_v44, %s5071_s6 }
 0x990   :  { %v3383_v62 = vadd.f32 %v3382_v14, %v3318_v3  ;;  %v7316_v36 = vmax.f32 %v3380_v32, 0.0 }
 0x991   :  { %v3388_v20 = vadd.f32 %v4706_v29, %v3323_v51  ;;  %v3326_v53 = vadd.f32 %v4515_v60, %v3261_v35  ;;  %3526 = vrot.lane.b32.xlu1 %v7234_v23, %s7658_s14 }
 0x992   :  { %v7320_v42 = vmax.f32 %v3383_v62, 0.0 }
 0x993   :  { %v3391_v22 = vadd.f32 %v4707_v26, %v3326_v53  ;;  %3528 = vrot.lane.b32.xlu0 %v7236_v44, %s7658_s14  ;;  %v7292_v31 = vmax.f32 %v3388_v20, 0.0 }
 0x995   :  { %3478 = vrot.lane.b32.xlu1 %v7234_v23, %s7657_s23  ;;  %v7296_v10 = vmax.f32 %v3391_v22, 0.0 }
 0x997   :  { %3480 = vrot.lane.b32.xlu0 %v7236_v44, %s7657_s23 }
 0x999   :  { %3430 = vrot.lane.b32.xlu1 %v7234_v23, %s7659_s21 }
 0x99b   :  { %3432 = vrot.lane.b32.xlu0 %v7236_v44, %s7659_s21 }
 0x99d   :  { %3550 = vrot.lane.b32.xlu1 %v7234_v23, %s7660_s1 }
 0x99f   :  { %3552 = vrot.lane.b32.xlu0 %v7236_v44, %s7660_s1 }
 0x9a1   :  { %3450 = vrot.lane.b32.xlu1 %v7260_v50, %s5072_s26 }
 0x9a3   :  { %3452 = vrot.lane.b32.xlu0 %v7264_v47, %s5072_s26 }
 0x9a5   :  { %3402 = vrot.lane.b32.xlu1 %v7260_v50, %s5071_s6 }
 0x9a7   :  { %3404 = vrot.lane.b32.xlu0 %v7264_v47, %s5071_s6 }
 0x9a9   :  { %3522 = vrot.lane.b32.xlu1 %v7260_v50, %s7658_s14 }
 0x9ab   :  { %3524 = vrot.lane.b32.xlu0 %v7264_v47, %s7658_s14 }
 0x9ad   :  { %3474 = vrot.lane.b32.xlu1 %v7260_v50, %s7657_s23 }
 0x9af   :  { %3476 = vrot.lane.b32.xlu0 %v7264_v47, %s7657_s23 }
 0x9b1   :  { %3426 = vrot.lane.b32.xlu1 %v7260_v50, %s7659_s21 }
 0x9b3   :  { %3428 = vrot.lane.b32.xlu0 %v7264_v47, %s7659_s21 }
 0x9b5   :  { %3546 = vrot.lane.b32.xlu1 %v7260_v50, %s7660_s1 }
 0x9b7   :  { %3548 = vrot.lane.b32.xlu0 %v7264_v47, %s7660_s1 }
 0x9b9   :  { %3498 = vrot.lane.b32.xlu1 %v7260_v50, %s7661_s13 }
 0x9bb   :  { %3500 = vrot.lane.b32.xlu0 %v7264_v47, %s7661_s13 }
 0x9bd   :  { %3462 = vrot.lane.b32.xlu1 %v7292_v31, %s5072_s26 }
 0x9bf   :  { %3464 = vrot.lane.b32.xlu0 %v7296_v10, %s5072_s26 }
 0x9c1   :  { %3414 = vrot.lane.b32.xlu1 %v7292_v31, %s5071_s6 }
 0x9c3   :  { %3416 = vrot.lane.b32.xlu0 %v7296_v10, %s5071_s6 }
 0x9c5   :  { %3534 = vrot.lane.b32.xlu1 %v7292_v31, %s7658_s14 }
 0x9c7   :  { %3536 = vrot.lane.b32.xlu0 %v7296_v10, %s7658_s14 }
 0x9c9   :  { %3486 = vrot.lane.b32.xlu1 %v7292_v31, %s7657_s23 }
 0x9cb   :  { %3488 = vrot.lane.b32.xlu0 %v7296_v10, %s7657_s23 }
 0x9cd   :  { %3438 = vrot.lane.b32.xlu1 %v7292_v31, %s7659_s21 }
 0x9cf   :  { %3440 = vrot.lane.b32.xlu0 %v7296_v10, %s7659_s21 }
 0x9d1   :  { %3458 = vrot.lane.b32.xlu1 %v7316_v36, %s5072_s26 }
 0x9d3   :  { %3460 = vrot.lane.b32.xlu0 %v7320_v42, %s5072_s26 }
 0x9d5   :  { %3410 = vrot.lane.b32.xlu1 %v7316_v36, %s5071_s6 }
 0x9d7   :  { %3412 = vrot.lane.b32.xlu0 %v7320_v42, %s5071_s6 }
 0x9d9   :  { %3502 = vrot.lane.b32.xlu1 %v7234_v23, %s7661_s13 }
 0x9db   :  { %3504 = vrot.lane.b32.xlu0 %v7236_v44, %s7661_s13 }
 0x9dd   :  { %3530 = vrot.lane.b32.xlu1 %v7316_v36, %s7658_s14 }
 0x9df   :  { %3532 = vrot.lane.b32.xlu0 %v7320_v42, %s7658_s14 }
 0x9e1   :  { %3482 = vrot.lane.b32.xlu1 %v7316_v36, %s7657_s23 }
 0x9e3   :  { %3484 = vrot.lane.b32.xlu0 %v7320_v42, %s7657_s23 }
 0x9e5   :  { %3434 = vrot.lane.b32.xlu1 %v7316_v36, %s7659_s21 }
 0x9e7   :  { %3436 = vrot.lane.b32.xlu0 %v7320_v42, %s7659_s21 }
 0x9e9   :  { %3554 = vrot.lane.b32.xlu1 %v7316_v36, %s7660_s1 }
 0x9eb   :  { %3560 = vrot.lane.b32.xlu0 %v7296_v10, %s7660_s1 }
 0x9ed   :  { %3506 = vrot.lane.b32.xlu1 %v7316_v36, %s7661_s13 }
 0x9ef   :  { %3556 = vrot.lane.b32.xlu0 %v7320_v42, %s7660_s1 }
 0x9f1   :  { %3558 = vrot.lane.b32.xlu1 %v7292_v31, %s7660_s1 }
 0x9f3   :  { %3508 = vrot.lane.b32.xlu0 %v7320_v42, %s7661_s13 }
 0x9f5   :  { %3510 = vrot.lane.b32.xlu1 %v7292_v31, %s7661_s13 }
 0x9f7   :  { %3512 = vrot.lane.b32.xlu0 %v7296_v10, %s7661_s13 }
 0x9f9   :  { %3570 = vrot.lane.b32.xlu1 %v7260_v50, %s7662_s5 }
 0x9fb   :  { %v3455_v6 = vpop.permute.xlu1 %3454  ;;  %3572 = vrot.lane.b32.xlu0 %v7264_v47, %s7662_s5 }
 0x9fc   :  { %v3468_v51 = vmul.f32 %v7021_v41, %v3455_v6 }
 0x9fd   :  { %3574 = vrot.lane.b32.xlu1 %v7234_v23, %s7662_s5  ;;  %v3457_v63 = vpop.permute.xlu0 %3456 }
 0x9fe   :  { %v3469_v32 = vmul.f32 %v7021_v41, %v3457_v63 }
 0x9ff   :  { %v3407_v59 = vpop.permute.xlu1 %3406  ;;  %3576 = vrot.lane.b32.xlu0 %v7236_v44, %s7662_s5 }
 0xa00   :  { %v3603_v20 = vpack.c.bf16 %v3469_v32, %v3468_v51  ;;  %v3420_v22 = vmul.f32 %v7029_v49, %v3407_v59 }
 0xa01   :  { %3578 = vrot.lane.b32.xlu1 %v7316_v36, %s7662_s5  ;;  %v3409_v5 = vpop.permute.xlu0 %3408 }
 0xa02   :  { %v3421_v14 = vmul.f32 %v7029_v49, %v3409_v5  ;;  %v3610_v5 = vpack.c.bf16 %v7264_v47, %v7260_v50 }
 0xa03   :  { %v3527_v2 = vpop.permute.xlu1 %3526  ;;  %3580 = vrot.lane.b32.xlu0 %v7320_v42, %s7662_s5 }
 0xa05   :  { %3582 = vrot.lane.b32.xlu1 %v7292_v31, %s7662_s5  ;;  %v3529_v25 = vpop.permute.xlu0 %3528 }
 0xa06   :  { %v3541_v55 = vmul.f32 %v7132_v58, %v3529_v25  ;;  %v3611_v25 = vpack.c.bf16 %v7236_v44, %v7234_v23 }
 0xa07   :  { %v3479_v56 = vpop.permute.xlu1 %3478  ;;  %3584 = vrot.lane.b32.xlu0 %v7296_v10, %s7662_s5 }
 0xa08   :  { %v7391_v8 = vmul.f32 %v7105_v38, %v3479_v56  ;;  %v3595_v56 = vpack.c.bf16 %v3421_v14, %v3420_v22 }
 0xa09   :  { %3664 = vperm.xlu1 %4769, %v3654_v52   ;;  %v3481_v24 = vpop.permute.xlu0 %3480 }
 0xa0a   :  { %v7394_v57 = vmul.f32 %v7105_v38, %v3481_v24 }
 0xa0b   :  { %v3431_v19 = vpop.permute.xlu1 %3430  ;;  %3669 = vperm.xlu0 %4767, %v3655_v40  }
 0xa0c   :  { %v3607_v30 = vpack.c.bf16 %v7394_v57, %v7391_v8  ;;  %v7405_v27 = vmul.f32 %v7115_v54, %v3431_v19 }
 0xa0d   :  { %3674 = vperm.xlu1 %4769, %v3656_v12   ;;  %v3433_v18 = vpop.permute.xlu0 %3432 }
 0xa0e   :  { %v7408_v0 = vmul.f32 %v7115_v54, %v3433_v18 }
 0xa0f   :  { %v3551_v9 = vpop.permute.xlu1 %3550  ;;  %3679 = vperm.xlu0 %4767, %v3657_v17  }
 0xa10   :  { %v3599_v34 = vpack.c.bf16 %v7408_v0, %v7405_v27  ;;  %v7419_v39 = vmul.f32 %v7167_v11, %v3551_v9 }
 0xa11   :  { %3684 = vperm.xlu1 %4769, %v3658_v37   ;;  %v3553_v33 = vpop.permute.xlu0 %3552 }
 0xa12   :  { %v7422_v3 = vmul.f32 %v7167_v11, %v3553_v33 }
 0xa13   :  { %v3451_v7 = vpop.permute.xlu1 %3450  ;;  %3689 = vperm.xlu0 %4767, %v3659_v4  }
 0xa14   :  { %v3623_v16 = vpack.c.bf16 %v7422_v3, %v7419_v39  ;;  %v3466_v45 = vmul.f32 %v7021_v41, %v3451_v7 }
 0xa15   :  { %3694 = vperm.xlu1 %4769, %v3660_v21   ;;  %v3453_v29 = vpop.permute.xlu0 %3452 }
 0xa16   :  { %v3467_v48 = vmul.f32 %v7021_v41, %v3453_v29  ;;  %v3540_v41 = vmul.f32 %v7132_v58, %v3527_v2  ;;  %v4951_v29 = vld [vmem:[#allocation5 + $0x2] ss:$0 sm:$0xff] }
 0xa17   :  { %v3403_v43 = vpop.permute.xlu1 %3402  ;;  %3699 = vperm.xlu0 %4767, %v3661_v46  }
 0xa18   :  { %v3602_v28 = vpack.c.bf16 %v3467_v48, %v3466_v45  ;;  %v3418_v26 = vmul.f32 %v7029_v49, %v3403_v43  ;;  %v3619_v24 = vpack.c.bf16 %v3541_v55, %v3540_v41 }
 0xa19   :  { %v3405_v15 = vpop.permute.xlu0 %3404 }
 0xa1a   :  { %v3419_v35 = vmul.f32 %v7029_v49, %v3405_v15  ;;  %4524 = vmatprep.subr.bf16.mxu0 %v3602_v28 }
 0xa1b   :  { %v3523_v60 = vpop.permute.xlu1 %3522 }
 0xa1c   :  { %v3594_v62 = vpack.c.bf16 %v3419_v35, %v3418_v26  ;;  %v3538_v1 = vmul.f32 %v7132_v58, %v3523_v60  ;;  %v4952_v26 = vld [vmem:[#allocation5] ss:$0 sm:$0xff] }
 0xa1d   :  { %v3525_v53 = vpop.permute.xlu0 %3524 }
 0xa1e   :  { %v3539_v63 = vmul.f32 %v7132_v58, %v3525_v53  ;;  %4525 = vmatpush3.bf16.msra.mxu0 %v3594_v62 }
 0xa1f   :  { %v3475_v52 = vpop.permute.xlu1 %3474  ;;  %4526 = vmatprep.subr.bf16.mxu0 %v3603_v20 }
 0xa20   :  { %v3618_v6 = vpack.c.bf16 %v3539_v63, %v3538_v1  ;;  %v3490_v63 = vmul.f32 %v7105_v38, %v3475_v52 }
 0xa21   :  { %v3477_v40 = vpop.permute.xlu0 %3476 }
 0xa22   :  { %4527 = vmatpush3.bf16.msra.mxu0 %v3595_v56  ;;  %4564 = vmatprep.subr.bf16.mxu1 %v3618_v6  ;;  %v3491_v53 = vmul.f32 %v7105_v38, %v3477_v40 }
 0xa23   :  { %v3427_v49 = vpop.permute.xlu1 %3426  ;;  %4565 = vmatpush3.bf16.msra.mxu1 %v3610_v5 }
 0xa24   :  { %4566 = vmatprep.subr.bf16.mxu1 %v3619_v24  ;;  %v3606_v5 = vpack.c.bf16 %v3491_v53, %v3490_v63 }
 0xa25   :  { %v3429_v59 = vpop.permute.xlu0 %3428 }
 0xa26   :  { %v3443_v41 = vmul.f32 %v7115_v54, %v3429_v59 }
 0xa27   :  { %v7448_v12 = vpop.permute.xlu1 %3546  ;;  %4567 = vmatpush3.bf16.msra.mxu1 %v3611_v25  ;;  %v3442_v25 = vmul.f32 %v7115_v54, %v3427_v49 }
 0xa29   :  { %v3549_v19 = vpop.permute.xlu0 %3548 }
 0xa2a   :  { %v3563_v59 = vmul.f32 %v7167_v11, %v3549_v19 }
 0xa2b   :  { %v7450_v2 = vpop.permute.xlu1 %3498 }
 0xa2c   :  { %v3514_v57 = vmul.f32 %v7174_v13, %v7450_v2 }
 0xa2d   :  { %v7452_v17 = vpop.permute.xlu0 %3500 }
 0xa2f   :  { %v3463_v18 = vpop.permute.xlu1 %3462 }
 0xa30   :  { %v3472_v60 = vmul.f32 %v4951_v29, %v3463_v18 }
 0xa31   :  { %v3465_v50 = vpop.permute.xlu0 %3464 }
 0xa32   :  { %v3473_v32 = vmul.f32 %v4951_v29, %v3465_v50 }
 0xa33   :  { %v3415_v47 = vpop.permute.xlu1 %3414 }
 0xa34   :  { %v3605_v22 = vpack.c.bf16 %v3473_v32, %v3472_v60  ;;  %v3424_v1 = vmul.f32 %v4952_v26, %v3415_v47 }
 0xa35   :  { %v3417_v37 = vpop.permute.xlu0 %3416 }
 0xa36   :  { %v3425_v62 = vmul.f32 %v4952_v26, %v3417_v37  ;;  %v3598_v37 = vpack.c.bf16 %v3443_v41, %v3442_v25  ;;  %v4900_v41 = vld [vmem:[%s7617_s18 + $0x54] ss:$20 sps:$4 sm:$0xff]  }
 0xa37   :  { %v3535_v9 = vpop.permute.xlu1 %3534 }
 0xa38   :  { %v3597_v6 = vpack.c.bf16 %v3425_v62, %v3424_v1  ;;  %v3544_v52 = vmul.f32 %v7132_v58, %v3535_v9  ;;  %v4896_v1 = vld [vmem:[%s7617_s18 + $0x28] ss:$20 sps:$4 sm:$0xff]  }
 0xa39   :  { %v3537_v4 = vpop.permute.xlu0 %3536 }
 0xa3a   :  { %v3545_v18 = vmul.f32 %v7132_v58, %v3537_v4 }
 0xa3b   :  { %v7454_v33 = vpop.permute.xlu1 %3486 }
 0xa3c   :  { %v3621_v49 = vpack.c.bf16 %v3545_v18, %v3544_v52 }
 0xa3d   :  { %v3489_v21 = vpop.permute.xlu0 %3488 }
 0xa3f   :  { %v7456_v7 = vpop.permute.xlu1 %3438 }
 0xa40   :  { %v3448_v0 = vmul.f32 %v7115_v54, %v7456_v7  ;;  %v4894_v7 = vld [vmem:[%s7617_s18 + $0x2c] ss:$20 sps:$4 sm:$0xff]  }
 0xa41   :  { %v7458_v23 = vpop.permute.xlu0 %3440 }
 0xa43   :  { %v3459_v44 = vpop.permute.xlu1 %3458 }
 0xa44   :  { %v3470_v45 = vmul.f32 %v4951_v29, %v3459_v44 }
 0xa45   :  { %v3461_v46 = vpop.permute.xlu0 %3460 }
 0xa46   :  { %v3471_v48 = vmul.f32 %v4951_v29, %v3461_v46  ;;  %v3612_v29 = vpack.c.bf16 %v7320_v42, %v7316_v36  ;;  %v3515_v36 = vmul.f32 %v7174_v13, %v7452_v17  ;;  %v3497_v42 = vmul.f32 %v7105_v38, %v3489_v21 }
 0xa47   :  { %v3411_v43 = vpop.permute.xlu1 %3410 }
 0xa48   :  { %v3604_v28 = vpack.c.bf16 %v3471_v48, %v3470_v45  ;;  %v3422_v35 = vmul.f32 %v4952_v26, %v3411_v43  ;;  %v3613_v43 = vpack.c.bf16 %v7296_v10, %v7292_v31  ;;  %v3449_v31 = vmul.f32 %v7115_v54, %v7458_v23 }
 0xa49   :  { %v3413_v15 = vpop.permute.xlu0 %3412  ;;  %v3614_v17 = vpack.c.bf16 %v3515_v36, %v3514_v57  ;;  %v4911_v57 = vld [vmem:[%s7617_s18 + $0x58] ss:$20 sps:$4 sm:$0xff]  }
 0xa4a   :  { %v3423_v51 = vmul.f32 %v4952_v26, %v3413_v15  ;;  %4528 = vmatprep.subr.bf16.mxu0 %v3604_v28  ;;  %v3601_v2 = vpack.c.bf16 %v3449_v31, %v3448_v0  ;;  %v4891_v26 = vld [vmem:[%s7617_s18] ss:$20 sps:$4 sm:$0xff]  }
 0xa4b   :  { %v3503_v14 = vpop.permute.xlu1 %3502  ;;  %v4916_v31 = vld [vmem:[%s7617_s18 + $0x80] ss:$20 sps:$4 sm:$0xff]  }
 0xa4c   :  { %v3596_v20 = vpack.c.bf16 %v3423_v51, %v3422_v35 }
 0xa4d   :  { %v3505_v55 = vpop.permute.xlu0 %3504 }
 0xa4e   :  { %4529 = vmatpush3.bf16.msra.mxu0 %v3596_v20  ;;  %v3517_v15 = vmul.f32 %v7174_v13, %v3505_v55 }
 0xa4f   :  { %v3531_v56 = vpop.permute.xlu1 %3530  ;;  %4530 = vmatprep.subr.bf16.mxu0 %v3605_v22 }
 0xa50   :  { %v3542_v50 = vmul.f32 %v7132_v58, %v3531_v56 }
 0xa51   :  { %v3533_v24 = vpop.permute.xlu0 %3532 }
 0xa52   :  { %v3543_v40 = vmul.f32 %v7132_v58, %v3533_v24  ;;  %4531 = vmatpush3.bf16.msra.mxu0 %v3597_v6  ;;  %v3562_v58 = vmul.f32 %v7167_v11, %v7448_v12  ;;  %v4897_v24 = vld [vmem:[%s7617_s18 + $0x8] ss:$20 sps:$4 sm:$0xff]  }
 0xa53   :  { %v3483_v47 = vpop.permute.xlu1 %3482  ;;  %4532 = vmatprep.subr.bf16.mxu0 %v3606_v5 }
 0xa54   :  { %v3620_v44 = vpack.c.bf16 %v3543_v40, %v3542_v50  ;;  %v3494_v4 = vmul.f32 %v7105_v38, %v3483_v47  ;;  %v3622_v28 = vpack.c.bf16 %v3563_v59, %v3562_v58  ;;  %v4906_v59 = vld [vmem:[%s7617_s18 + $0x7c] ss:$20 sps:$4 sm:$0xff]  }
 0xa55   :  { %v3485_v46 = vpop.permute.xlu0 %3484  ;;  %v4909_v58 = vld [vmem:[%s7617_s18 + $0x5c] ss:$20 sps:$4 sm:$0xff]  }
 0xa56   :  { %v3495_v45 = vmul.f32 %v7105_v38, %v3485_v46  ;;  %4533 = vmatpush3.bf16.msra.mxu0 %v3598_v37  ;;  %4568 = vmatprep.subr.bf16.mxu1 %v3620_v44  ;;  %v4902_v37 = vld [vmem:[%s7617_s18 + $0x50] ss:$20 sps:$4 sm:$0xff]  }
 0xa57   :  { %v3435_v48 = vpop.permute.xlu1 %3434  ;;  %4534 = vmatprep.subr.bf16.mxu0 %v3607_v30  ;;  %4569 = vmatpush3.bf16.msra.mxu1 %v3612_v29  ;;  %v3496_v30 = vmul.f32 %v7105_v38, %v7454_v33 }
 0xa58   :  { %v3608_v19 = vpack.c.bf16 %v3495_v45, %v3494_v4  ;;  %4570 = vmatprep.subr.bf16.mxu1 %v3621_v49  ;;  %v3446_v32 = vmul.f32 %v7115_v54, %v3435_v48  ;;  %v4905_v4 = vld [vmem:[%s7617_s18 + $0x30] ss:$20 sps:$4 sm:$0xff]  }
 0xa59   :  { %v3437_v9 = vpop.permute.xlu0 %3436  ;;  %v3609_v21 = vpack.c.bf16 %v3497_v42, %v3496_v30  ;;  %v4913_v30 = vld [vmem:[%s7617_s18 + $0x38] ss:$20 sps:$4 sm:$0xff]  }
 0xa5a   :  { %v3447_v8 = vmul.f32 %v7115_v54, %v3437_v9  ;;  %4535 = vmatpush3.bf16.msra.mxu0 %v3599_v34  ;;  %v3516_v34 = vmul.f32 %v7174_v13, %v3503_v14  ;;  %v4908_v9 = vld [vmem:[%s7617_s18 + $0x78] ss:$20 sps:$4 sm:$0xff]  }
 0xa5b   :  { %v3555_v12 = vpop.permute.xlu1 %3554  ;;  %4536 = vmatprep.subr.bf16.mxu0 %v3608_v19  ;;  %4571 = vmatpush3.bf16.msra.mxu1 %v3613_v43 }
 0xa5c   :  { %v3600_v10 = vpack.c.bf16 %v3447_v8, %v3446_v32  ;;  %4572 = vmatprep.subr.bf16.mxu1 %v3622_v28  ;;  %v3615_v33 = vpack.c.bf16 %v3517_v15, %v3516_v34  ;;  %v3566_v35 = vmul.f32 %v7167_v11, %v3555_v12  ;;  %v4912_v32 = vld [vmem:[%s7617_s18 + $0x10] ss:$20 sps:$4 sm:$0xff]   ;;  %v4917_v12 = vld [vmem:[%s7617_s18 + $0x60] ss:$20 sps:$4 sm:$0xff]  }
 0xa5d   :  { %v3561_v27 = vpop.permute.xlu0 %3560 }
 0xa5e   :  { %4537 = vmatpush3.bf16.msra.mxu0 %v3600_v10  ;;  %v3569_v62 = vmul.f32 %v7167_v11, %v3561_v27  ;;  %v4918_v10 = vld [vmem:[%s7617_s18 + $0x88] ss:$20 sps:$4 sm:$0xff]  }
 0xa5f   :  { %v3507_v38 = vpop.permute.xlu1 %3506  ;;  %4538 = vmatprep.subr.bf16.mxu0 %v3609_v21  ;;  %4573 = vmatpush3.bf16.msra.mxu1 %v3614_v17 }
 0xa60   :  { %4574 = vmatprep.subr.bf16.mxu1 %v3623_v16  ;;  %v3518_v16 = vmul.f32 %v7174_v13, %v3507_v38 }
 0xa61   :  { %v3557_v23 = vpop.permute.xlu0 %3556 }
 0xa62   :  { %v3567_v54 = vmul.f32 %v7167_v11, %v3557_v23  ;;  %4539 = vmatpush3.bf16.msra.mxu0 %v3601_v2 }
 0xa63   :  { %v3559_v51 = vpop.permute.xlu1 %3558  ;;  %4575 = vmatpush3.bf16.msra.mxu1 %v3615_v33 }
 0xa64   :  { %v3624_v60 = vpack.c.bf16 %v3567_v54, %v3566_v35  ;;  %v3568_v39 = vmul.f32 %v7167_v11, %v3559_v51 }
 0xa65   :  { %3847 = vmatmul.mubr.bf16.vlgmr.msra.gmra.mrb[84].mxu0 %v4891_v26  ;;  %v3509_v3 = vpop.permute.xlu0 %3508 }
 0xa66   :  { %v3519_v14 = vmul.f32 %v7174_v13, %v3509_v3  ;;  %4576 = vmatprep.subr.bf16.mxu1 %v3624_v60  ;;  %3854 = vmatprep.mubr.bf16.mxu0 %v4894_v7  ;;  %v3625_v22 = vpack.c.bf16 %v3569_v62, %v3568_v39 }
 0xa67   :  { %v3511_v20 = vpop.permute.xlu1 %3510 }
 0xa68   :  { %v3616_v53 = vpack.c.bf16 %v3519_v14, %v3518_v16  ;;  %v3520_v63 = vmul.f32 %v7174_v13, %v3511_v20 }
 0xa69   :  { %v3513_v55 = vpop.permute.xlu0 %3512 }
 0xa6a   :  { %v3521_v56 = vmul.f32 %v7174_v13, %v3513_v55  ;;  %4577 = vmatpush3.bf16.msra.mxu1 %v3616_v53  ;;  %v4903_v13 = vld [vmem:[%s7617_s18 + $0x34] ss:$20 sps:$4 sm:$0xff]  }
 0xa6b   :  { %v3571_v6 = vpop.permute.xlu1 %3570  ;;  %4578 = vmatprep.subr.bf16.mxu1 %v3625_v22 }
 0xa6c   :  { %v3617_v11 = vpack.c.bf16 %v3521_v56, %v3520_v63  ;;  %v3586_v25 = vmul.f32 %v7184_v61, %v3571_v6 }
 0xa6d   :  { %3855 = vmatmul.mubr.bf16.gmra.mrb[88].mxu0 %v4896_v1  ;;  %v3573_v5 = vpop.permute.xlu0 %3572 }
 0xa6e   :  { %v3587_v18 = vmul.f32 %v7184_v61, %v3573_v5  ;;  %4579 = vmatpush3.bf16.msra.mxu1 %v3617_v11  ;;  %3862 = vmatprep.mubr.bf16.mxu0 %v4900_v41 }
 0xa6f   :  { %v3575_v50 = vpop.permute.xlu1 %3574 }
 0xa70   :  { %v3626_v40 = vpack.c.bf16 %v3587_v18, %v3586_v25  ;;  %v3588_v52 = vmul.f32 %v7184_v61, %v3575_v50 }
 0xa71   :  { %3912 = vmatmul.mubr.bf16.vlgmr.msra.gmra.mrb[96].mxu1 %v4897_v24  ;;  %v3577_v47 = vpop.permute.xlu0 %3576 }
 0xa72   :  { %v3589_v44 = vmul.f32 %v7184_v61, %v3577_v47  ;;  %4708 = vmatprep.subr.bf16.mxu0 %v3626_v40  ;;  %3919 = vmatprep.mubr.bf16.mxu1 %v4903_v13 }
 0xa73   :  { %v3579_v46 = vpop.permute.xlu1 %3578  ;;  %4709 = vmatpush3.bf16.msra.mxu0 %v3626_v40 }
 0xa74   :  { %v3627_v29 = vpack.c.bf16 %v3589_v44, %v3588_v52  ;;  %v3590_v45 = vmul.f32 %v7184_v61, %v3579_v46 }
 0xa75   :  { %3863 = vmatmul.mubr.bf16.gmra.mrb[92].mxu0 %v4902_v37  ;;  %v3581_v49 = vpop.permute.xlu0 %3580 }
 0xa76   :  { %v3591_v48 = vmul.f32 %v7184_v61, %v3581_v49  ;;  %4710 = vmatprep.subr.bf16.mxu0 %v3627_v29  ;;  %3870 = vmatprep.mubr.bf16.mxu0 %v4906_v59 }
 0xa77   :  { %v3583_v19 = vpop.permute.xlu1 %3582  ;;  %4711 = vmatpush3.bf16.msra.mxu0 %v3627_v29 }
 0xa78   :  { %v3628_v36 = vpack.c.bf16 %v3591_v48, %v3590_v45  ;;  %v3592_v43 = vmul.f32 %v7184_v61, %v3583_v19 }
 0xa79   :  { %3920 = vmatmul.mubr.bf16.gmra.mrb[100].mxu1 %v4905_v4  ;;  %v3585_v42 = vpop.permute.xlu0 %3584 }
 0xa7a   :  { %v3593_v28 = vmul.f32 %v7184_v61, %v3585_v42  ;;  %4712 = vmatprep.subr.bf16.mxu0 %v3628_v36  ;;  %3927 = vmatprep.mubr.bf16.mxu1 %v4909_v58  ;;  %v4914_v61 = vld [vmem:[%s7617_s18 + $0x84] ss:$20 sps:$4 sm:$0xff]  }
 0xa7b   :  { %4713 = vmatpush3.bf16.msra.mxu0 %v3628_v36 }
 0xa7c   :  { %v3629_v8 = vpack.c.bf16 %v3593_v28, %v3592_v43 }
 0xa7d   :  { %3871 = vmatmul.mubr.bf16.gmra.mrb[96].mxu0 %v4908_v9 }
 0xa7e   :  { %4714 = vmatprep.subr.bf16.mxu0 %v3629_v8  ;;  %4716 = vmatprep.mubr.msk.bf16.mxu0 %vm989_vm3, %v4912_v32 }
 0xa7f   :  { %4715 = vmatpush3.bf16.msra.mxu0 %v3629_v8 }
 0xa81   :  { %3928 = vmatmul.mubr.bf16.gmra.mrb[104].mxu1 %v4911_v57 }
 0xa82   :  { %3935 = vmatprep.mubr.bf16.mxu1 %v4914_v61 }
 0xa85   :  { %4717 = vmatmul.mubr.msk.bf16.vlgmr.msra.gmra.mrb[100].mxu0 %vm989_vm3, %v4913_v30 }
 0xa86   :  { %4720 = vmatprep.mubr.msk.bf16.mxu0 %vm989_vm3, %v4917_v12 }
 0xa88   :  { %v3665_v7 = vpop.permute.xlu1 %3664 }
 0xa89   :  { %3936 = vmatmul.mubr.bf16.gmra.mrb[108].mxu1 %v4916_v31 }
 0xa8a   :  { %v3670_v16 = vpop.permute.xlu0 %3669 }
 0xa8c   :  { %v3675_v5 = vpop.permute.xlu1 %3674 }
 0xa8d   :  { %4721 = vmatmul.mubr.msk.bf16.gmra.mrb[104].mxu0 %vm989_vm3, %v4918_v10 }
 0xa8e   :  { %v3680_v50 = vpop.permute.xlu0 %3679 }
 0xa90   :  { %v3685_v58 = vpop.permute.xlu1 %3684 }
 0xa92   :  { %v3690_v43 = vpop.permute.xlu0 %3689 }
 0xb38   :  { %v4540_v17 = vpop.f32.mrb[84].mxu0 }
 0xb39   :  { %v4541_v21 = vpop.f32.mrb[85].mxu0 }
 0xb3a   :  { %v4542_v15 = vadd.f32 %v4541_v21, %v4540_v17  ;;  %v4543_v27 = vpop.f32.mrb[86].mxu0 }
 0xb3b   :  { %v4544_v0 = vpop.f32.mrb[87].mxu0 }
 0xb3c   :  { %v4545_v34 = vadd.f32 %v4544_v0, %v4543_v27  ;;  %v3849_v60 = vadd.f32 %v4542_v15, %v3665_v7 }
 0xb3e   :  { %v3852_v62 = vadd.f32 %v4545_v34, %v3670_v16  ;;  %v3695_v34 = vpop.permute.xlu1 %3694 }
 0xb40   :  { %v4546_v38 = vpop.f32.mrb[88].mxu0 }
 0xb41   :  { %v4547_v2 = vpop.f32.mrb[89].mxu0 }
 0xb42   :  { %v4548_v33 = vadd.f32 %v4547_v2, %v4546_v38  ;;  %v4549_v23 = vpop.f32.mrb[90].mxu0 }
 0xb43   :  { %v4550_v26 = vpop.f32.mrb[91].mxu0 }
 0xb44   :  { %v4551_v35 = vadd.f32 %v4550_v26, %v4549_v23  ;;  %v4580_v54 = vpop.f32.mrb[96].mxu1  ;;  %v3857_v25 = vadd.f32 %v4548_v33, %v3675_v5  ;;  %v3700_v26 = vpop.permute.xlu0 %3699 }
 0xb45   :  { %v4581_v51 = vpop.f32.mrb[97].mxu1 }
 0xb46   :  { %v4582_v39 = vadd.f32 %v4581_v51, %v4580_v54  ;;  %v4583_v3 = vpop.f32.mrb[98].mxu1  ;;  %v3860_v47 = vadd.f32 %v4551_v35, %v3680_v50 }
 0xb47   :  { %v4584_v14 = vpop.f32.mrb[99].mxu1 }
 0xb48   :  { %v4585_v20 = vadd.f32 %v4584_v14, %v4583_v3  ;;  %v4552_v53 = vpop.f32.mrb[92].mxu0  ;;  %v3914_v22 = vadd.f32 %v4582_v39, %v3849_v60 }
 0xb49   :  { %v4553_v55 = vpop.f32.mrb[93].mxu0 }
 0xb4a   :  { %v4554_v1 = vadd.f32 %v4553_v55, %v4552_v53  ;;  %v4555_v63 = vpop.f32.mrb[94].mxu0  ;;  %v3917_v56 = vadd.f32 %v4585_v20, %v3852_v62 }
 0xb4b   :  { %v4556_v41 = vpop.f32.mrb[95].mxu0 }
 0xb4c   :  { %v4557_v6 = vadd.f32 %v4556_v41, %v4555_v63  ;;  %v4586_v11 = vpop.f32.mrb[100].mxu1  ;;  %v3865_v36 = vadd.f32 %v4554_v1, %v3685_v58 }
 0xb4d   :  { %v4587_v24 = vpop.f32.mrb[101].mxu1 }
 0xb4e   :  { %v4588_v18 = vadd.f32 %v4587_v24, %v4586_v11  ;;  %v4589_v13 = vpop.f32.mrb[102].mxu1  ;;  %v3868_v32 = vadd.f32 %v4557_v6, %v3690_v43 }
 0xb4f   :  { %v4590_v40 = vpop.f32.mrb[103].mxu1 }
 0xb50   :  { %v4591_v37 = vadd.f32 %v4590_v40, %v4589_v13  ;;  %v4558_v52 = vpop.f32.mrb[96].mxu0  ;;  %v3922_v44 = vadd.f32 %v4588_v18, %v3857_v25 }
 0xb51   :  { %v4559_v59 = vpop.f32.mrb[97].mxu0 }
 0xb52   :  { %v4560_v46 = vadd.f32 %v4559_v59, %v4558_v52  ;;  %v4561_v29 = vpop.f32.mrb[98].mxu0  ;;  %v3925_v49 = vadd.f32 %v4591_v37, %v3860_v47 }
 0xb53   :  { %v4562_v4 = vpop.f32.mrb[99].mxu0 }
 0xb54   :  { %v4563_v45 = vadd.f32 %v4562_v4, %v4561_v29  ;;  %v4592_v48 = vpop.f32.mrb[104].mxu1  ;;  %v3873_v2 = vadd.f32 %v4560_v46, %v3695_v34 }
 0xb55   :  { %v4593_v19 = vpop.f32.mrb[105].mxu1 }
 0xb56   :  { %v4594_v42 = vadd.f32 %v4593_v19, %v4592_v48  ;;  %v4595_v9 = vpop.f32.mrb[106].mxu1  ;;  %v3876_v54 = vadd.f32 %v4563_v45, %v3700_v26 }
 0xb57   :  { %v4596_v28 = vpop.f32.mrb[107].mxu1 }
 0xb58   :  { %v4597_v8 = vadd.f32 %v4596_v28, %v4595_v9  ;;  %v4718_v57 = vpop.f32.mrb[100].mxu0  ;;  %v3930_v61 = vadd.f32 %v4594_v42, %v3865_v36 }
 0xb59   :  { %v3987_v30 = vadd.f32 %v4718_v57, %v3922_v44  ;;  %v3978_v12 = vpop.f32.mrb[101].mxu0 }
 0xb5a   :  { %v3979_v31 = vadd.f32 %v3978_v12, %v3914_v22  ;;  %v4719_v10 = vpop.f32.mrb[102].mxu0  ;;  %v3933_v17 = vadd.f32 %v4597_v8, %v3868_v32 }
 0xb5b   :  { %4019 = vst [vmem:[%s7664_s30 + $0x10] sm:$0xff] %v3987_v30  ;;  %v3990_v21 = vadd.f32 %v4719_v10, %v3925_v49  ;;  %v3981_v15 = vpop.f32.mrb[103].mxu0 }
 0xb5c   :  { %4017 = vst [vmem:[%s7664_s30] sm:$0xff] %v3979_v31  ;;  %v3982_v27 = vadd.f32 %v3981_v15, %v3917_v56  ;;  %v4598_v0 = vpop.f32.mrb[108].mxu1 }
 0xb5d   :  { %4020 = vst [vmem:[%s7664_s30 + $0x18] sm:$0xff] %v3990_v21  ;;  %v4599_v38 = vpop.f32.mrb[109].mxu1 }
 0xb5e   :  { %4018 = vst [vmem:[%s7664_s30 + $0x8] sm:$0xff] %v3982_v27  ;;  %v4600_v33 = vadd.f32 %v4599_v38, %v4598_v0  ;;  %v4601_v23 = vpop.f32.mrb[110].mxu1 }
 0xb5f   :  { %v4602_v35 = vpop.f32.mrb[111].mxu1 }
 0xb60   :  { %v4603_v7 = vadd.f32 %v4602_v35, %v4601_v23  ;;  %v3938_v51 = vadd.f32 %v4600_v33, %v3873_v2  ;;  %v4722_v60 = vpop.f32.mrb[104].mxu0 }
 0xb61   :  { %v3994_v39 = vpop.f32.mrb[105].mxu0 }
 0xb62   :  { %v4003_v3 = vadd.f32 %v4722_v60, %v3938_v51  ;;  %v3995_v16 = vadd.f32 %v3994_v39, %v3930_v61  ;;  %v3941_v14 = vadd.f32 %v4603_v7, %v3876_v54  ;;  %v4723_v62 = vpop.f32.mrb[106].mxu0 }
 0xb63   :  { %v3997_v20 = vpop.f32.mrb[107].mxu0 }
 0xb64   :  { %4023 = vst [vmem:[%s7664_s30 + $0x30] sm:$0xff] %v4003_v3  ;;  %4021 = vst [vmem:[%s7664_s30 + $0x20] sm:$0xff] %v3995_v16  ;;  %v4006_v53 = vadd.f32 %v4723_v62, %v3941_v14  ;;  %v3998_v22 = vadd.f32 %v3997_v20, %v3933_v17 }
 0xb66   :  { %4024 = vst [vmem:[%s7664_s30 + $0x38] sm:$0xff] %v4006_v53  ;;  %4022 = vst [vmem:[%s7664_s30 + $0x28] sm:$0xff] %v3998_v22 }
 0xb67   :  { %4038 = vsyncpa [#allocation3], 1 }
 0xb68   :  { %4039 = vsyncpa [#allocation7], 1 }
 0xb69   :  { %4040 = vsyncpa [#allocation10], 1 }
 0xb6a   :  { %4041 = vsyncpa [#allocation4], 1 }

</bundles_post_ra>
